<compile_context>
chip_gen: v6e
topology: v6e:2x2x1
jax: 0.10.0
libtpu: 0.0.40
codegen_flags: <defaults>
</compile_context>

<pallas_src>
import functools
import math

import jax
import jax.numpy as jnp
from jax import lax
from jax.experimental import pallas as pl
from jax.experimental.pallas import tpu as pltpu


# ----------------------------- hardware-aware budget -------------------------


@functools.lru_cache(maxsize=None)
def _vmem_limit_bytes():
    """Generation-aware scoped-VMEM budget: ~100 MiB on 128-MiB parts (v4/v5e/v6e),
    ~44 MiB on 64-MiB v7x-class parts.  Conservative fallback if the query fails."""
    cap = 64 << 20
    try:
        info_fn = getattr(pltpu, "get_tpu_info", None)
        if info_fn is not None:
            cap = int(getattr(info_fn(), "vmem_capacity_bytes", cap))
    except Exception:
        pass
    if cap >= (120 << 20):
        return 100 << 20
    return max(16 << 20, min(cap - (16 << 20), 44 << 20))


# ----------------------------- tiling helpers --------------------------------


def _round_up(x, m):
    return ((x + m - 1) // m) * m


def _pick_tile(dim, target, align):
    """Pad-to-tile selection: returns (tile, padded_dim).  Never falls back to a tiny
    tile or to the raw (unaligned) full dimension when dim > target."""
    if dim <= target:
        return dim, dim                      # full-dim block: always legal, no pad
    best_t, best_p = None, None
    t = max(align, (target // align) * align)
    for _ in range(3):                       # try target, target/2, target/4
        if t < align:
            break
        p = _round_up(dim, t)
        if best_p is None or p < best_p:
            best_t, best_p = t, p
        t = ((t // 2) // align) * align
    return best_t, best_p


def _pick_m_tile(M, target, min_blocks=1):
    """Like _pick_tile (align=8) but guarantees >= min_blocks blocks when possible so
    v7x's two TensorCores both get work on the (only) parallel axis."""
    tile, Mp = _pick_tile(M, target, 8)
    if Mp // tile < min_blocks and Mp >= 8 * min_blocks:
        Mp = _round_up(M, 8 * min_blocks)
        tile = Mp // min_blocks
    return tile, Mp


def _divisor_tile(dim, target, align):
    """Largest tile <= target that divides dim (multiple of align); else full dim.
    Used only for attention sequence tiling (padding a sequence needs extra masking)."""
    if dim <= target:
        return dim
    t = (target // align) * align
    while t >= align:
        if dim % t == 0:
            return t
        t -= align
    return dim


def _pad2d(a, rows, cols):
    r, c = a.shape
    if (r, c) == (rows, cols):
        return a
    return jnp.pad(a, ((0, rows - r), (0, cols - c)))


# ------------------------- tiled linear (bias, ReLU) -------------------------


def _linear_kernel(x_ref, w_ref, b_ref, o_ref, *, activation):
    k = pl.program_id(2)

    @pl.when(k == 0)
    def _init():
        o_ref[...] = jnp.zeros(o_ref.shape, o_ref.dtype)

    # bf16 MXU operands, f32 accumulation directly into the resident output block.
    o_ref[...] += jnp.dot(x_ref[...].astype(jnp.bfloat16), w_ref[...],
                          preferred_element_type=jnp.float32)

    @pl.when(k == pl.num_programs(2) - 1)
    def _epilogue():  # bias (+ReLU) added once per (i, j), not per k-step
        acc = o_ref[...] + b_ref[...].astype(jnp.float32)
        if activation == "relu":
            acc = jnp.maximum(acc, 0.0)
        o_ref[...] = acc


def linear(x2d, w, b, activation="none", *, tm=512, tn=512, tk=1024):
    """x2d: (M, K) f32; w: (K, N) bf16; b: (N,) f32 -> (M, N) f32."""
    M, K = x2d.shape
    N = w.shape[1]
    tm, Mp = _pick_tile(M, tm, 8)
    tn, Np = _pick_tile(N, tn, 128)
    tk, Kp = _pick_tile(K, tk, 128)
    xp = _pad2d(x2d, Mp, Kp)
    wp = _pad2d(w, Kp, Np)
    bp = _pad2d(b.reshape(1, N), 1, Np)

    cost = pl.CostEstimate(
        flops=int(2 * M * N * K), transcendentals=0,
        bytes_accessed=int(4 * M * K + 2 * K * N + 4 * M * N))
    out = pl.pallas_call(
        functools.partial(_linear_kernel, activation=activation),
        grid=(Mp // tm, Np // tn, Kp // tk),
        in_specs=[
            pl.BlockSpec((tm, tk), lambda i, j, k: (i, k)),
            pl.BlockSpec((tk, tn), lambda i, j, k: (k, j)),
            pl.BlockSpec((1, tn), lambda i, j, k: (0, j)),
        ],
        out_specs=pl.BlockSpec((tm, tn), lambda i, j, k: (i, j)),
        out_shape=jax.ShapeDtypeStruct((Mp, Np), jnp.float32),
        compiler_params=pltpu.CompilerParams(
            dimension_semantics=("parallel", "parallel", "arbitrary"),
            vmem_limit_bytes=_vmem_limit_bytes()),
        cost_estimate=cost,
    )(xp, wp, bp)
    if (Mp, Np) != (M, N):
        out = out[:M, :N]
    return out


# ------------- fused linear + bias + residual + LayerNorm epilogue -----------


def _linear_ln_res_kernel(x_ref, w_ref, b_ref, res_ref, g_ref, bt_ref, o_ref, *, eps):
    k = pl.program_id(1)

    @pl.when(k == 0)
    def _init():
        o_ref[...] = jnp.zeros(o_ref.shape, o_ref.dtype)

    o_ref[...] += jnp.dot(x_ref[...].astype(jnp.bfloat16), w_ref[...],
                          preferred_element_type=jnp.float32)

    @pl.when(k == pl.num_programs(1) - 1)
    def _epilogue():
        v = (o_ref[...] + b_ref[...].astype(jnp.float32)
             + res_ref[...].astype(jnp.float32))
        mean = jnp.mean(v, axis=-1, keepdims=True)
        cen = v - mean
        var = jnp.mean(cen * cen, axis=-1, keepdims=True)
        norm = cen * lax.rsqrt(var + eps)
        o_ref[...] = (norm * g_ref[...].astype(jnp.float32)
                      + bt_ref[...].astype(jnp.float32))


def _ln_res_tiles(M, K, N, limit):
    # resident (tm, N) residual + output blocks within ~40% of the VMEM budget
    tm_cap = int(0.4 * limit) // (4 * N * 4)
    tm_cap = max(8, (tm_cap // 8) * 8)
    tm, Mp = _pick_m_tile(M, min(256, tm_cap), min_blocks=2)
    # double-buffered bf16 (tk, N) weight slab + f32 (tm, tk) x slab within ~40%
    tk_cap = int(0.4 * limit) // (2 * N * 2 + 2 * tm * 4)
    tk_cap = max(128, (tk_cap // 128) * 128)
    tk, Kp = _pick_tile(K, min(1024, tk_cap), 128)
    return tm, Mp, tk, Kp


def linear_ln_residual(x2d, w, b, res2d, gamma, beta, *, eps=1e-5):
    """LayerNorm(res + (x @ w + b)).  N is never tiled/padded (LN needs the full row)."""
    M, K = x2d.shape
    N = w.shape[1]
    limit = _vmem_limit_bytes()
    tm, Mp, tk, Kp = _ln_res_tiles(M, K, N, limit)
    xp = _pad2d(x2d, Mp, Kp)
    wp = _pad2d(w, Kp, N)
    rp = _pad2d(res2d, Mp, N)

    cost = pl.CostEstimate(
        flops=int(2 * M * N * K + 10 * M * N), transcendentals=0,
        bytes_accessed=int(4 * M * K + 2 * K * N + 8 * M * N))
    out = pl.pallas_call(
        functools.partial(_linear_ln_res_kernel, eps=eps),
        grid=(Mp // tm, Kp // tk),
        in_specs=[
            pl.BlockSpec((tm, tk), lambda i, k: (i, k)),
            pl.BlockSpec((tk, N), lambda i, k: (k, 0)),
            pl.BlockSpec((1, N), lambda i, k: (0, 0)),
            pl.BlockSpec((tm, N), lambda i, k: (i, 0)),
            pl.BlockSpec((1, N), lambda i, k: (0, 0)),
            pl.BlockSpec((1, N), lambda i, k: (0, 0)),
        ],
        out_specs=pl.BlockSpec((tm, N), lambda i, k: (i, 0)),
        out_shape=jax.ShapeDtypeStruct((Mp, N), jnp.float32),
        # residual buffer is donated to the output; it is never reused after the call
        input_output_aliases={3: 0},
        compiler_params=pltpu.CompilerParams(
            dimension_semantics=("parallel", "arbitrary"),
            vmem_limit_bytes=limit),
        cost_estimate=cost,
    )(xp, wp, b.reshape(1, N), rp, gamma.reshape(1, N), beta.reshape(1, N))
    if Mp != M:
        out = out[:M]
    return out


# ---------------------- flash-style attention (online softmax) ---------------


def _flash_attn_kernel(q_ref, k_ref, v_ref, o_ref, m_sc, l_sc, acc_sc, *,
                       n_heads, scale, causal):
    qi = pl.program_id(1)
    ki = pl.program_id(2)
    nk = pl.num_programs(2)
    tq = q_ref.shape[1]
    tkv = k_ref.shape[1]
    D = q_ref.shape[2]
    Dh = D // n_heads

    @pl.when(ki == 0)
    def _init():
        m_sc[...] = jnp.full(m_sc.shape, -1e30, jnp.float32)  # finite: no exp(-inf)
        l_sc[...] = jnp.zeros(l_sc.shape, jnp.float32)
        acc_sc[...] = jnp.zeros(acc_sc.shape, jnp.float32)

    def _compute():
        if causal:
            row = qi * tq + lax.broadcasted_iota(jnp.int32, (tq, tkv), 0)
            col = ki * tkv + lax.broadcasted_iota(jnp.int32, (tq, tkv), 1)
            keep = col <= row
        for h in range(n_heads):
            hs = slice(h * Dh, (h + 1) * Dh)
            # slice heads straight off the refs; bf16 MXU operands, f32 accumulation
            q = q_ref[0, :, hs].astype(jnp.bfloat16)
            k = k_ref[0, :, hs].astype(jnp.bfloat16)
            v = v_ref[0, :, hs].astype(jnp.bfloat16)
            s = lax.dot_general(q, k, (((1,), (1,)), ((), ())),
                                preferred_element_type=jnp.float32) * scale
            if causal:
                s = jnp.where(keep, s, -1e30)
            m_prev = m_sc[h]
            m_new = jnp.maximum(m_prev, jnp.max(s, axis=-1, keepdims=True))
            alpha = jnp.exp(m_prev - m_new)
            p = jnp.exp(s - m_new)
            l_sc[h] = alpha * l_sc[h] + jnp.sum(p, axis=-1, keepdims=True)
            acc_sc[h] = alpha * acc_sc[h] + jnp.dot(
                p.astype(jnp.bfloat16), v, preferred_element_type=jnp.float32)
            m_sc[h] = m_new

    if causal:
        # skip KV tiles that are entirely above the diagonal for this query tile
        @pl.when(ki * tkv <= qi * tq + (tq - 1))
        def _run():
            _compute()
    else:
        _compute()

    @pl.when(ki == nk - 1)
    def _finalize():
        for h in range(n_heads):
            hs = slice(h * Dh, (h + 1) * Dh)
            # exact divide (runs once per query tile) — avoids approx-reciprocal drift
            o_ref[0, :, hs] = (acc_sc[h] / l_sc[h]).astype(o_ref.dtype)


def flash_attention(q, k, v, n_heads, causal):
    """q: (B, T, D); k, v: (B, S, D) -> (B, T, D). All heads lane-dense in D."""
    B, T, D = q.shape
    S = k.shape[1]
    Dh = D // n_heads
    scale = 1.0 / math.sqrt(Dh)
    tq = _divisor_tile(T, 256, 8)
    tkv = _divisor_tile(S, 512, 8)
    cost = pl.CostEstimate(
        flops=int(4 * B * T * S * D),
        transcendentals=int(B * n_heads * T * S),
        bytes_accessed=int(4 * (2 * B * T * D + 2 * B * S * D)))
    return pl.pallas_call(
        functools.partial(_flash_attn_kernel, n_heads=n_heads, scale=scale,
                          causal=causal),
        grid=(B, T // tq, S // tkv),
        in_specs=[
            pl.BlockSpec((1, tq, D), lambda b, qi, ki: (b, qi, 0)),
            pl.BlockSpec((1, tkv, D), lambda b, qi, ki: (b, ki, 0)),
            pl.BlockSpec((1, tkv, D), lambda b, qi, ki: (b, ki, 0)),
        ],
        out_specs=pl.BlockSpec((1, tq, D), lambda b, qi, ki: (b, qi, 0)),
        out_shape=jax.ShapeDtypeStruct((B, T, D), q.dtype),
        scratch_shapes=[
            pltpu.VMEM((n_heads, tq, 1), jnp.float32),   # running max
            pltpu.VMEM((n_heads, tq, 1), jnp.float32),   # running denom
            pltpu.VMEM((n_heads, tq, Dh), jnp.float32),  # output accumulator
        ],
        compiler_params=pltpu.CompilerParams(
            dimension_semantics=("parallel", "parallel", "arbitrary"),
            vmem_limit_bytes=_vmem_limit_bytes()),
        cost_estimate=cost,
    )(q, k, v)


# --------------------------- parameters / model ------------------------------


def _init_linear(key, d_in, d_out):
    kw, kb = jax.random.split(key)
    # weights stored bf16 once (halves weight DMA; f32 accumulation in-kernel)
    w = (jax.random.normal(kw, (d_in, d_out), jnp.float32) * 0.02).astype(jnp.bfloat16)
    b = jax.random.normal(kb, (d_out,), jnp.float32) * 0.02
    return w, b


def init_decoder_params(key, d_model, n_layers, d_ff):
    layers = []
    for _ in range(n_layers):
        keys = jax.random.split(key, 11)
        key = keys[0]
        layer = {
            # qkv_proj_self split column-wise (q | k | v) — same math as one Linear
            "wq_self": _init_linear(keys[1], d_model, d_model),
            "wk_self": _init_linear(keys[2], d_model, d_model),
            "wv_self": _init_linear(keys[3], d_model, d_model),
            "self_proj": _init_linear(keys[4], d_model, d_model),
            "cross_q": _init_linear(keys[5], d_model, d_model),
            # qkv_proj_cross_kv split column-wise (k | v)
            "cross_k": _init_linear(keys[6], d_model, d_model),
            "cross_v": _init_linear(keys[7], d_model, d_model),
            "cross_proj": _init_linear(keys[8], d_model, d_model),
            "ff1": _init_linear(keys[9], d_model, d_ff),
            "ff2": _init_linear(keys[10], d_ff, d_model),
            "norm1": (jnp.ones((d_model,), jnp.float32), jnp.zeros((d_model,), jnp.float32)),
            "norm2": (jnp.ones((d_model,), jnp.float32), jnp.zeros((d_model,), jnp.float32)),
            "norm3": (jnp.ones((d_model,), jnp.float32), jnp.zeros((d_model,), jnp.float32)),
        }
        layers.append(layer)
    return layers


def decoder_layer_forward(p, x, enc_out, n_heads):
    B, T, D = x.shape
    S = enc_out.shape[1]
    x2d = x.reshape(B * T, D)
    enc2d = enc_out.reshape(B * S, D)

    # ---- self attention (causal) ----
    q_s = linear(x2d, *p["wq_self"]).reshape(B, T, D)
    k_s = linear(x2d, *p["wk_self"]).reshape(B, T, D)
    v_s = linear(x2d, *p["wv_self"]).reshape(B, T, D)
    attn = flash_attention(q_s, k_s, v_s, n_heads, causal=True).reshape(B * T, D)
    x2d = linear_ln_residual(attn, *p["self_proj"], x2d, *p["norm1"])

    # ---- cross attention (not causal) ----
    q_c = linear(x2d, *p["cross_q"]).reshape(B, T, D)
    k_c = linear(enc2d, *p["cross_k"]).reshape(B, S, D)
    v_c = linear(enc2d, *p["cross_v"]).reshape(B, S, D)
    attn_c = flash_attention(q_c, k_c, v_c, n_heads, causal=False).reshape(B * T, D)
    x2d = linear_ln_residual(attn_c, *p["cross_proj"], x2d, *p["norm2"])

    # ---- feed forward: Linear -> ReLU -> (Linear + residual + LN fused) ----
    h = linear(x2d, *p["ff1"], activation="relu")
    x2d = linear_ln_residual(h, *p["ff2"], x2d, *p["norm3"])

    return x2d.reshape(B, T, D)


def decoder_forward(params, x, enc_out, n_heads):
    for p in params:
        x = decoder_layer_forward(p, x, enc_out, n_heads)
    return x


# --------------------------------- main ---------------------------------------

if __name__ == "__main__":
    # small shapes consistent with the module forward
    B, TGT, SRC = 2, 8, 16
    D_MODEL, N_HEADS, D_FF, N_LAYERS = 32, 4, 64, 2

    key = jax.random.PRNGKey(0)
    k_x, k_enc, k_params = jax.random.split(key, 3)
    x = jax.random.normal(k_x, (B, TGT, D_MODEL), jnp.float32)
    enc_out = jax.random.normal(k_enc, (B, SRC, D_MODEL), jnp.float32)

    params = init_decoder_params(k_params, D_MODEL, N_LAYERS, D_FF)

    fwd = jax.jit(functools.partial(decoder_forward, n_heads=N_HEADS))
    out = fwd(params, x, enc_out)
    jax.block_until_ready(out)

    assert out.shape == (B, TGT, D_MODEL)
    assert jnp.all(jnp.isfinite(out))
    print("KERNEL_OK")
</pallas_src>

<mosaic_0001>
module attributes {stable_mosaic.version = 11 : i64} {
  func.func @_linear_kernel(%arg0: i32, %arg1: i32, %arg2: i32, %arg3: memref<16x32xf32, #tpu.memory_space<vmem>>, %arg4: memref<32x32xbf16, #tpu.memory_space<vmem>>, %arg5: memref<1x32xf32, #tpu.memory_space<vmem>>, %arg6: memref<16x32xf32, #tpu.memory_space<vmem>>) attributes {dimension_semantics = [#tpu.dimension_semantics<parallel>, #tpu.dimension_semantics<parallel>, #tpu.dimension_semantics<arbitrary>], iteration_bounds = array<i64: 1, 1, 1>, scalar_prefetch = 0 : i64, scratch_operands = 0 : i64, tpu.core_type = #tpu.core_type<tc>, window_params = [{transform_indices = @transform_0, window_bounds = array<i64: 16, 32>}, {transform_indices = @transform_1, window_bounds = array<i64: 32, 32>}, {transform_indices = @transform_2, window_bounds = array<i64: 1, 32>}, {transform_indices = @transform_3, window_bounds = array<i64: 16, 32>}]} {
    %c0_i32 = arith.constant 0 : i32
    %0 = arith.cmpi eq, %arg2, %c0_i32 : i32
    %1 = arith.extui %0 : i1 to i32
    %c0_i32_0 = arith.constant 0 : i32
    %2 = arith.cmpi ne, %1, %c0_i32_0 : i32
    scf.if %2 {
      %cst_10 = arith.constant 0.000000e+00 : f32
      %13 = vector.broadcast %cst_10 : f32 to vector<16x32xf32>
      %c0_11 = arith.constant 0 : index
      %c0_12 = arith.constant 0 : index
      %14 = vector.load %arg6[%c0_11, %c0_12] : memref<16x32xf32, #tpu.memory_space<vmem>>, vector<16x32xf32>
      tpu.vector_store %arg6[%c0_11, %c0_12], %13 {strides = array<i32>} : memref<16x32xf32, #tpu.memory_space<vmem>>, vector<16x32xf32>,
    } else {
    }
    %c0 = arith.constant 0 : index
    %c0_1 = arith.constant 0 : index
    %3 = vector.load %arg6[%c0, %c0_1] : memref<16x32xf32, #tpu.memory_space<vmem>>, vector<16x32xf32>
    %c0_2 = arith.constant 0 : index
    %c0_3 = arith.constant 0 : index
    %4 = vector.load %arg3[%c0_2, %c0_3] : memref<16x32xf32, #tpu.memory_space<vmem>>, vector<16x32xf32>
    %5 = arith.truncf %4 : vector<16x32xf32> to vector<16x32xbf16>
    %c0_4 = arith.constant 0 : index
    %c0_5 = arith.constant 0 : index
    %6 = vector.load %arg4[%c0_4, %c0_5] : memref<32x32xbf16, #tpu.memory_space<vmem>>, vector<32x32xbf16>
    %cst = arith.constant dense<0.000000e+00> : vector<16x32xf32>
    %7 = tpu.matmul %5, %6, %cst {dimension_numbers = #tpu.dot_dimension_numbers<[1], [0], [0], [1], [0, 0, 1, 1], [], []>} : vector<16x32xbf16>, vector<32x32xbf16>, vector<16x32xf32> -> vector<16x32xf32>
    %8 = arith.addf %3, %7 : vector<16x32xf32>
    %c0_6 = arith.constant 0 : index
    %c0_7 = arith.constant 0 : index
    %9 = vector.load %arg6[%c0_6, %c0_7] : memref<16x32xf32, #tpu.memory_space<vmem>>, vector<16x32xf32>
    tpu.vector_store %arg6[%c0_6, %c0_7], %8 {strides = array<i32>} : memref<16x32xf32, #tpu.memory_space<vmem>>, vector<16x32xf32>,
    %c0_i32_8 = arith.constant 0 : i32
    %10 = arith.cmpi eq, %arg2, %c0_i32_8 : i32
    %11 = arith.extui %10 : i1 to i32
    %c0_i32_9 = arith.constant 0 : i32
    %12 = arith.cmpi ne, %11, %c0_i32_9 : i32
    scf.if %12 {
      %c0_10 = arith.constant 0 : index
      %c0_11 = arith.constant 0 : index
      %13 = vector.load %arg6[%c0_10, %c0_11] : memref<16x32xf32, #tpu.memory_space<vmem>>, vector<16x32xf32>
      %c0_12 = arith.constant 0 : index
      %c0_13 = arith.constant 0 : index
      %14 = vector.load %arg5[%c0_12, %c0_13] : memref<1x32xf32, #tpu.memory_space<vmem>>, vector<1x32xf32>
      %15 = vector.broadcast %14 : vector<1x32xf32> to vector<16x32xf32>
      %16 = arith.addf %13, %15 : vector<16x32xf32>
      %c0_14 = arith.constant 0 : index
      %c0_15 = arith.constant 0 : index
      %17 = vector.load %arg6[%c0_14, %c0_15] : memref<16x32xf32, #tpu.memory_space<vmem>>, vector<16x32xf32>
      tpu.vector_store %arg6[%c0_14, %c0_15], %16 {strides = array<i32>} : memref<16x32xf32, #tpu.memory_space<vmem>>, vector<16x32xf32>,
    } else {
    }
    return
  }
  func.func @transform_0(%arg0: i32, %arg1: i32, %arg2: i32) -> (i32, i32) {
    %c0_i32 = arith.constant 0 : i32
    return %arg0, %arg2 : i32, i32
  }
  func.func @transform_1(%arg0: i32, %arg1: i32, %arg2: i32) -> (i32, i32) {
    %c0_i32 = arith.constant 0 : i32
    return %arg2, %arg1 : i32, i32
  }
  func.func @transform_2(%arg0: i32, %arg1: i32, %arg2: i32) -> (i32, i32) {
    %c0_i32 = arith.constant 0 : i32
    %c0_i32_0 = arith.constant 0 : i32
    return %c0_i32, %arg1 : i32, i32
  }
  func.func @transform_3(%arg0: i32, %arg1: i32, %arg2: i32) -> (i32, i32) {
    %c0_i32 = arith.constant 0 : i32
    return %arg0, %arg1 : i32, i32
  }
}

module attributes {stable_mosaic.version = 11 : i64} {
  func.func @_linear_ln_res_kernel(%arg0: i32, %arg1: i32, %arg2: memref<8x32xf32, #tpu.memory_space<vmem>>, %arg3: memref<32x32xbf16, #tpu.memory_space<vmem>>, %arg4: memref<1x32xf32, #tpu.memory_space<vmem>>, %arg5: memref<8x32xf32, #tpu.memory_space<vmem>>, %arg6: memref<1x32xf32, #tpu.memory_space<vmem>>, %arg7: memref<1x32xf32, #tpu.memory_space<vmem>>, %arg8: memref<8x32xf32, #tpu.memory_space<vmem>>) attributes {dimension_semantics = [#tpu.dimension_semantics<parallel>, #tpu.dimension_semantics<arbitrary>], iteration_bounds = array<i64: 2, 1>, scalar_prefetch = 0 : i64, scratch_operands = 0 : i64, tpu.core_type = #tpu.core_type<tc>, window_params = [{transform_indices = @transform_0, window_bounds = array<i64: 8, 32>}, {transform_indices = @transform_1, window_bounds = array<i64: 32, 32>}, {pipeline_mode = #tpu.pipeline_mode<synchronous>, transform_indices = @transform_2, window_bounds = array<i64: 1, 32>}, {transform_indices = @transform_3, window_bounds = array<i64: 8, 32>}, {pipeline_mode = #tpu.pipeline_mode<synchronous>, transform_indices = @transform_4, window_bounds = array<i64: 1, 32>}, {pipeline_mode = #tpu.pipeline_mode<synchronous>, transform_indices = @transform_5, window_bounds = array<i64: 1, 32>}, {transform_indices = @transform_6, window_bounds = array<i64: 8, 32>}]} {
    %c0_i32 = arith.constant 0 : i32
    %0 = arith.cmpi eq, %arg1, %c0_i32 : i32
    %1 = arith.extui %0 : i1 to i32
    %c0_i32_0 = arith.constant 0 : i32
    %2 = arith.cmpi ne, %1, %c0_i32_0 : i32
    scf.if %2 {
      %cst_10 = arith.constant 0.000000e+00 : f32
      %13 = vector.broadcast %cst_10 : f32 to vector<8x32xf32>
      %c0_11 = arith.constant 0 : index
      %c0_12 = arith.constant 0 : index
      %14 = vector.load %arg8[%c0_11, %c0_12] : memref<8x32xf32, #tpu.memory_space<vmem>>, vector<8x32xf32>
      tpu.vector_store %arg8[%c0_11, %c0_12], %13 {strides = array<i32>} : memref<8x32xf32, #tpu.memory_space<vmem>>, vector<8x32xf32>,
    } else {
    }
    %c0 = arith.constant 0 : index
    %c0_1 = arith.constant 0 : index
    %3 = vector.load %arg8[%c0, %c0_1] : memref<8x32xf32, #tpu.memory_space<vmem>>, vector<8x32xf32>
    %c0_2 = arith.constant 0 : index
    %c0_3 = arith.constant 0 : index
    %4 = vector.load %arg2[%c0_2, %c0_3] : memref<8x32xf32, #tpu.memory_space<vmem>>, vector<8x32xf32>
    %5 = arith.truncf %4 : vector<8x32xf32> to vector<8x32xbf16>
    %c0_4 = arith.constant 0 : index
    %c0_5 = arith.constant 0 : index
    %6 = vector.load %arg3[%c0_4, %c0_5] : memref<32x32xbf16, #tpu.memory_space<vmem>>, vector<32x32xbf16>
    %cst = arith.constant dense<0.000000e+00> : vector<8x32xf32>
    %7 = tpu.matmul %5, %6, %cst {dimension_numbers = #tpu.dot_dimension_numbers<[1], [0], [0], [1], [0, 0, 1, 1], [], []>} : vector<8x32xbf16>, vector<32x32xbf16>, vector<8x32xf32> -> vector<8x32xf32>
    %8 = arith.addf %3, %7 : vector<8x32xf32>
    %c0_6 = arith.constant 0 : index
    %c0_7 = arith.constant 0 : index
    %9 = vector.load %arg8[%c0_6, %c0_7] : memref<8x32xf32, #tpu.memory_space<vmem>>, vector<8x32xf32>
    tpu.vector_store %arg8[%c0_6, %c0_7], %8 {strides = array<i32>} : memref<8x32xf32, #tpu.memory_space<vmem>>, vector<8x32xf32>,
    %c0_i32_8 = arith.constant 0 : i32
    %10 = arith.cmpi eq, %arg1, %c0_i32_8 : i32
    %11 = arith.extui %10 : i1 to i32
    %c0_i32_9 = arith.constant 0 : i32
    %12 = arith.cmpi ne, %11, %c0_i32_9 : i32
    scf.if %12 {
      %c0_10 = arith.constant 0 : index
      %c0_11 = arith.constant 0 : index
      %13 = vector.load %arg8[%c0_10, %c0_11] : memref<8x32xf32, #tpu.memory_space<vmem>>, vector<8x32xf32>
      %c0_12 = arith.constant 0 : index
      %c0_13 = arith.constant 0 : index
      %14 = vector.load %arg4[%c0_12, %c0_13] : memref<1x32xf32, #tpu.memory_space<vmem>>, vector<1x32xf32>
      %15 = vector.broadcast %14 : vector<1x32xf32> to vector<8x32xf32>
      %16 = arith.addf %13, %15 : vector<8x32xf32>
      %c0_14 = arith.constant 0 : index
      %c0_15 = arith.constant 0 : index
      %17 = vector.load %arg5[%c0_14, %c0_15] : memref<8x32xf32, #tpu.memory_space<vmem>>, vector<8x32xf32>
      %18 = arith.addf %16, %17 : vector<8x32xf32>
      %cst_16 = arith.constant dense<0.000000e+00> : vector<8xf32>
      %19 = vector.multi_reduction <add>, %18, %cst_16 [1] : vector<8x32xf32> to vector<8xf32>
      %20 = vector.shape_cast %19 : vector<8xf32> to vector<8x1xf32>
      %cst_17 = arith.constant 3.200000e+01 : f32
      %21 = vector.broadcast %cst_17 : f32 to vector<8x1xf32>
      %22 = arith.divf %20, %21 : vector<8x1xf32>
      %23 = vector.broadcast %22 : vector<8x1xf32> to vector<8x32xf32>
      %24 = arith.subf %18, %23 : vector<8x32xf32>
      %25 = arith.mulf %24, %24 : vector<8x32xf32>
      %cst_18 = arith.constant dense<0.000000e+00> : vector<8xf32>
      %26 = vector.multi_reduction <add>, %25, %cst_18 [1] : vector<8x32xf32> to vector<8xf32>
      %27 = vector.shape_cast %26 : vector<8xf32> to vector<8x1xf32>
      %cst_19 = arith.constant 3.200000e+01 : f32
      %28 = vector.broadcast %cst_19 : f32 to vector<8x1xf32>
      %29 = arith.divf %27, %28 : vector<8x1xf32>
      %cst_20 = arith.constant 9.99999974E-6 : f32
      %30 = vector.broadcast %cst_20 : f32 to vector<8x1xf32>
      %31 = arith.addf %29, %30 : vector<8x1xf32>
      %32 = math.rsqrt %31 : vector<8x1xf32>
      %33 = vector.broadcast %32 : vector<8x1xf32> to vector<8x32xf32>
      %34 = arith.mulf %24, %33 : vector<8x32xf32>
      %c0_21 = arith.constant 0 : index
      %c0_22 = arith.constant 0 : index
      %35 = vector.load %arg6[%c0_21, %c0_22] : memref<1x32xf32, #tpu.memory_space<vmem>>, vector<1x32xf32>
      %36 = vector.broadcast %35 : vector<1x32xf32> to vector<8x32xf32>
      %37 = arith.mulf %34, %36 : vector<8x32xf32>
      %c0_23 = arith.constant 0 : index
      %c0_24 = arith.constant 0 : index
      %38 = vector.load %arg7[%c0_23, %c0_24] : memref<1x32xf32, #tpu.memory_space<vmem>>, vector<1x32xf32>
      %39 = vector.broadcast %38 : vector<1x32xf32> to vector<8x32xf32>
      %40 = arith.addf %37, %39 : vector<8x32xf32>
      %c0_25 = arith.constant 0 : index
      %c0_26 = arith.constant 0 : index
      %41 = vector.load %arg8[%c0_25, %c0_26] : memref<8x32xf32, #tpu.memory_space<vmem>>, vector<8x32xf32>
      tpu.vector_store %arg8[%c0_25, %c0_26], %40 {strides = array<i32>} : memref<8x32xf32, #tpu.memory_space<vmem>>, vector<8x32xf32>,
    } else {
    }
    return
  }
  func.func @transform_0(%arg0: i32, %arg1: i32) -> (i32, i32) {
    %c0_i32 = arith.constant 0 : i32
    return %arg0, %arg1 : i32, i32
  }
  func.func @transform_1(%arg0: i32, %arg1: i32) -> (i32, i32) {
    %c0_i32 = arith.constant 0 : i32
    %c0_i32_0 = arith.constant 0 : i32
    return %arg1, %c0_i32 : i32, i32
  }
  func.func @transform_2(%arg0: i32, %arg1: i32) -> (i32, i32) {
    %c0_i32 = arith.constant 0 : i32
    %c0_i32_0 = arith.constant 0 : i32
    %c0_i32_1 = arith.constant 0 : i32
    return %c0_i32, %c0_i32_0 : i32, i32
  }
  func.func @transform_3(%arg0: i32, %arg1: i32) -> (i32, i32) {
    %c0_i32 = arith.constant 0 : i32
    %c0_i32_0 = arith.constant 0 : i32
    return %arg0, %c0_i32 : i32, i32
  }
  func.func @transform_4(%arg0: i32, %arg1: i32) -> (i32, i32) {
    %c0_i32 = arith.constant 0 : i32
    %c0_i32_0 = arith.constant 0 : i32
    %c0_i32_1 = arith.constant 0 : i32
    return %c0_i32, %c0_i32_0 : i32, i32
  }
  func.func @transform_5(%arg0: i32, %arg1: i32) -> (i32, i32) {
    %c0_i32 = arith.constant 0 : i32
    %c0_i32_0 = arith.constant 0 : i32
    %c0_i32_1 = arith.constant 0 : i32
    return %c0_i32, %c0_i32_0 : i32, i32
  }
  func.func @transform_6(%arg0: i32, %arg1: i32) -> (i32, i32) {
    %c0_i32 = arith.constant 0 : i32
    %c0_i32_0 = arith.constant 0 : i32
    return %arg0, %c0_i32 : i32, i32
  }
}

module attributes {stable_mosaic.version = 11 : i64} {
  func.func @_flash_attn_kernel(%arg0: i32, %arg1: i32, %arg2: i32, %arg3: memref<1x8x32xf32, #tpu.memory_space<vmem>>, %arg4: memref<1x8x32xf32, #tpu.memory_space<vmem>>, %arg5: memref<1x8x32xf32, #tpu.memory_space<vmem>>, %arg6: memref<1x8x32xf32, #tpu.memory_space<vmem>>, %arg7: memref<4x8x1xf32, #tpu.memory_space<vmem>>, %arg8: memref<4x8x1xf32, #tpu.memory_space<vmem>>, %arg9: memref<4x8x8xf32, #tpu.memory_space<vmem>>) attributes {dimension_semantics = [#tpu.dimension_semantics<parallel>, #tpu.dimension_semantics<parallel>, #tpu.dimension_semantics<arbitrary>], iteration_bounds = array<i64: 2, 1, 1>, scalar_prefetch = 0 : i64, scratch_operands = 3 : i64, tpu.core_type = #tpu.core_type<tc>, window_params = [{transform_indices = @transform_0, window_bounds = array<i64: 1, 8, 32>}, {transform_indices = @transform_1, window_bounds = array<i64: 1, 8, 32>}, {transform_indices = @transform_2, window_bounds = array<i64: 1, 8, 32>}, {transform_indices = @transform_3, window_bounds = array<i64: 1, 8, 32>}]} {
    %c0_i32 = arith.constant 0 : i32
    %0 = arith.cmpi eq, %arg2, %c0_i32 : i32
    %1 = arith.extui %0 : i1 to i32
    %c0_i32_0 = arith.constant 0 : i32
    %2 = arith.cmpi ne, %1, %c0_i32_0 : i32
    scf.if %2 {
      %cst = arith.constant -1.000000e+30 : f32
      %12 = vector.broadcast %cst : f32 to vector<4x8x1xf32>
      %c0 = arith.constant 0 : index
      %c0_5 = arith.constant 0 : index
      %c0_6 = arith.constant 0 : index
      %13 = vector.load %arg7[%c0, %c0_5, %c0_6] : memref<4x8x1xf32, #tpu.memory_space<vmem>>, vector<4x8x1xf32>
      tpu.vector_store %arg7[%c0, %c0_5, %c0_6], %12 {strides = array<i32>} : memref<4x8x1xf32, #tpu.memory_space<vmem>>, vector<4x8x1xf32>,
      %cst_7 = arith.constant 0.000000e+00 : f32
      %14 = vector.broadcast %cst_7 : f32 to vector<4x8x1xf32>
      %c0_8 = arith.constant 0 : index
      %c0_9 = arith.constant 0 : index
      %c0_10 = arith.constant 0 : index
      %15 = vector.load %arg8[%c0_8, %c0_9, %c0_10] : memref<4x8x1xf32, #tpu.memory_space<vmem>>, vector<4x8x1xf32>
      tpu.vector_store %arg8[%c0_8, %c0_9, %c0_10], %14 {strides = array<i32>} : memref<4x8x1xf32, #tpu.memory_space<vmem>>, vector<4x8x1xf32>,
      %cst_11 = arith.constant 0.000000e+00 : f32
      %16 = vector.broadcast %cst_11 : f32 to vector<4x8x8xf32>
      %c0_12 = arith.constant 0 : index
      %c0_13 = arith.constant 0 : index
      %c0_14 = arith.constant 0 : index
      %17 = vector.load %arg9[%c0_12, %c0_13, %c0_14] : memref<4x8x8xf32, #tpu.memory_space<vmem>>, vector<4x8x8xf32>
      tpu.vector_store %arg9[%c0_12, %c0_13, %c0_14], %16 {strides = array<i32>} : memref<4x8x8xf32, #tpu.memory_space<vmem>>, vector<4x8x8xf32>,
    } else {
    }
    %c8_i32 = arith.constant 8 : i32
    %3 = arith.muli %arg2, %c8_i32 : i32
    %c8_i32_1 = arith.constant 8 : i32
    %4 = arith.muli %arg1, %c8_i32_1 : i32
    %c7_i32 = arith.constant 7 : i32
    %5 = arith.addi %4, %c7_i32 : i32
    %6 = arith.cmpi sle, %3, %5 : i32
    %7 = arith.extui %6 : i1 to i32
    %c0_i32_2 = arith.constant 0 : i32
    %8 = arith.cmpi ne, %7, %c0_i32_2 : i32
    scf.if %8 {
      %c8_i32_5 = arith.constant 8 : i32
      %12 = arith.muli %arg1, %c8_i32_5 : i32
      %13 = tpu.iota {dimensions = array<i32: 0>} : vector<8x8xi32>
      %14 = vector.broadcast %12 : i32 to vector<8x8xi32>
      %15 = arith.addi %14, %13 : vector<8x8xi32>
      %c8_i32_6 = arith.constant 8 : i32
      %16 = arith.muli %arg2, %c8_i32_6 : i32
      %17 = tpu.iota {dimensions = array<i32: 1>} : vector<8x8xi32>
      %18 = vector.broadcast %16 : i32 to vector<8x8xi32>
      %19 = arith.addi %18, %17 : vector<8x8xi32>
      %20 = arith.cmpi sle, %19, %15 : vector<8x8xi32>
      %c0 = arith.constant 0 : index
      %c0_7 = arith.constant 0 : index
      %c0_8 = arith.constant 0 : index
      %21 = vector.load %arg3[%c0, %c0_7, %c0_8] : memref<1x8x32xf32, #tpu.memory_space<vmem>>, vector<1x8x8xf32>
      %22 = vector.shape_cast %21 : vector<1x8x8xf32> to vector<8x8xf32>
      %23 = arith.truncf %22 : vector<8x8xf32> to vector<8x8xbf16>
      %c0_9 = arith.constant 0 : index
      %c0_10 = arith.constant 0 : index
      %c0_11 = arith.constant 0 : index
      %24 = vector.load %arg4[%c0_9, %c0_10, %c0_11] : memref<1x8x32xf32, #tpu.memory_space<vmem>>, vector<1x8x8xf32>
      %25 = vector.shape_cast %24 : vector<1x8x8xf32> to vector<8x8xf32>
      %26 = arith.truncf %25 : vector<8x8xf32> to vector<8x8xbf16>
      %c0_12 = arith.constant 0 : index
      %c0_13 = arith.constant 0 : index
      %c0_14 = arith.constant 0 : index
      %27 = vector.load %arg5[%c0_12, %c0_13, %c0_14] : memref<1x8x32xf32, #tpu.memory_space<vmem>>, vector<1x8x8xf32>
      %28 = vector.shape_cast %27 : vector<1x8x8xf32> to vector<8x8xf32>
      %29 = arith.truncf %28 : vector<8x8xf32> to vector<8x8xbf16>
      %cst = arith.constant dense<0.000000e+00> : vector<8x8xf32>
      %30 = tpu.matmul %23, %26, %cst {dimension_numbers = #tpu.dot_dimension_numbers<[1], [1], [0], [0], [0, 0, 1, 0], [], []>} : vector<8x8xbf16>, vector<8x8xbf16>, vector<8x8xf32> -> vector<8x8xf32>
      %cst_15 = arith.constant 0.353553385 : f32
      %31 = vector.broadcast %cst_15 : f32 to vector<8x8xf32>
      %32 = arith.mulf %30, %31 : vector<8x8xf32>
      %cst_16 = arith.constant -1.000000e+30 : f32
      %33 = vector.broadcast %cst_16 : f32 to vector<8x8xf32>
      %34 = arith.select %20, %32, %33 : vector<8x8xi1>, vector<8x8xf32>
      %c0_17 = arith.constant 0 : index
      %c0_18 = arith.constant 0 : index
      %c0_19 = arith.constant 0 : index
      %35 = vector.load %arg7[%c0_17, %c0_18, %c0_19] : memref<4x8x1xf32, #tpu.memory_space<vmem>>, vector<1x8x1xf32>
      %36 = vector.shape_cast %35 : vector<1x8x1xf32> to vector<8x1xf32>
      %cst_20 = arith.constant dense<0xFF800000> : vector<8xf32>
      %37 = vector.multi_reduction <maximumf>, %34, %cst_20 [1] : vector<8x8xf32> to vector<8xf32>
      %38 = vector.shape_cast %37 : vector<8xf32> to vector<8x1xf32>
      %39 = arith.maximumf %36, %38 : vector<8x1xf32>
      %40 = arith.subf %36, %39 : vector<8x1xf32>
      %41 = math.exp %40 : vector<8x1xf32>
      %42 = vector.broadcast %39 : vector<8x1xf32> to vector<8x8xf32>
      %43 = arith.subf %34, %42 : vector<8x8xf32>
      %44 = math.exp %43 : vector<8x8xf32>
      %c0_21 = arith.constant 0 : index
      %c0_22 = arith.constant 0 : index
      %c0_23 = arith.constant 0 : index
      %45 = vector.load %arg8[%c0_21, %c0_22, %c0_23] : memref<4x8x1xf32, #tpu.memory_space<vmem>>, vector<1x8x1xf32>
      %46 = vector.shape_cast %45 : vector<1x8x1xf32> to vector<8x1xf32>
      %47 = arith.mulf %41, %46 : vector<8x1xf32>
      %cst_24 = arith.constant dense<0.000000e+00> : vector<8xf32>
      %48 = vector.multi_reduction <add>, %44, %cst_24 [1] : vector<8x8xf32> to vector<8xf32>
      %49 = vector.shape_cast %48 : vector<8xf32> to vector<8x1xf32>
      %50 = arith.addf %47, %49 : vector<8x1xf32>
      %c0_25 = arith.constant 0 : index
      %c0_26 = arith.constant 0 : index
      %c0_27 = arith.constant 0 : index
      %51 = vector.load %arg8[%c0_25, %c0_26, %c0_27] : memref<4x8x1xf32, #tpu.memory_space<vmem>>, vector<1x8x1xf32>
      %52 = vector.shape_cast %51 : vector<1x8x1xf32> to vector<8x1xf32>
      %53 = vector.shape_cast %50 : vector<8x1xf32> to vector<1x8x1xf32>
      tpu.vector_store %arg8[%c0_25, %c0_26, %c0_27], %53 {strides = array<i32>} : memref<4x8x1xf32, #tpu.memory_space<vmem>>, vector<1x8x1xf32>,
      %c0_28 = arith.constant 0 : index
      %c0_29 = arith.constant 0 : index
      %c0_30 = arith.constant 0 : index
      %54 = vector.load %arg9[%c0_28, %c0_29, %c0_30] : memref<4x8x8xf32, #tpu.memory_space<vmem>>, vector<1x8x8xf32>
      %55 = vector.shape_cast %54 : vector<1x8x8xf32> to vector<8x8xf32>
      %56 = vector.broadcast %41 : vector<8x1xf32> to vector<8x8xf32>
      %57 = arith.mulf %56, %55 : vector<8x8xf32>
      %58 = arith.truncf %44 : vector<8x8xf32> to vector<8x8xbf16>
      %cst_31 = arith.constant dense<0.000000e+00> : vector<8x8xf32>
      %59 = tpu.matmul %58, %29, %cst_31 {dimension_numbers = #tpu.dot_dimension_numbers<[1], [0], [0], [1], [0, 0, 1, 1], [], []>} : vector<8x8xbf16>, vector<8x8xbf16>, vector<8x8xf32> -> vector<8x8xf32>
      %60 = arith.addf %57, %59 : vector<8x8xf32>
      %c0_32 = arith.constant 0 : index
      %c0_33 = arith.constant 0 : index
      %c0_34 = arith.constant 0 : index
      %61 = vector.load %arg9[%c0_32, %c0_33, %c0_34] : memref<4x8x8xf32, #tpu.memory_space<vmem>>, vector<1x8x8xf32>
      %62 = vector.shape_cast %61 : vector<1x8x8xf32> to vector<8x8xf32>
      %63 = vector.shape_cast %60 : vector<8x8xf32> to vector<1x8x8xf32>
      tpu.vector_store %arg9[%c0_32, %c0_33, %c0_34], %63 {strides = array<i32>} : memref<4x8x8xf32, #tpu.memory_space<vmem>>, vector<1x8x8xf32>,
      %c0_35 = arith.constant 0 : index
      %c0_36 = arith.constant 0 : index
      %c0_37 = arith.constant 0 : index
      %64 = vector.load %arg7[%c0_35, %c0_36, %c0_37] : memref<4x8x1xf32, #tpu.memory_space<vmem>>, vector<1x8x1xf32>
      %65 = vector.shape_cast %64 : vector<1x8x1xf32> to vector<8x1xf32>
      %66 = vector.shape_cast %39 : vector<8x1xf32> to vector<1x8x1xf32>
      tpu.vector_store %arg7[%c0_35, %c0_36, %c0_37], %66 {strides = array<i32>} : memref<4x8x1xf32, #tpu.memory_space<vmem>>, vector<1x8x1xf32>,
      %c0_38 = arith.constant 0 : index
      %c0_39 = arith.constant 0 : index
      %c8 = arith.constant 8 : index
      %67 = vector.load %arg3[%c0_38, %c0_39, %c8] : memref<1x8x32xf32, #tpu.memory_space<vmem>>, vector<1x8x8xf32>
      %68 = vector.shape_cast %67 : vector<1x8x8xf32> to vector<8x8xf32>
      %69 = arith.truncf %68 : vector<8x8xf32> to vector<8x8xbf16>
      %c0_40 = arith.constant 0 : index
      %c0_41 = arith.constant 0 : index
      %c8_42 = arith.constant 8 : index
      %70 = vector.load %arg4[%c0_40, %c0_41, %c8_42] : memref<1x8x32xf32, #tpu.memory_space<vmem>>, vector<1x8x8xf32>
      %71 = vector.shape_cast %70 : vector<1x8x8xf32> to vector<8x8xf32>
      %72 = arith.truncf %71 : vector<8x8xf32> to vector<8x8xbf16>
      %c0_43 = arith.constant 0 : index
      %c0_44 = arith.constant 0 : index
      %c8_45 = arith.constant 8 : index
      %73 = vector.load %arg5[%c0_43, %c0_44, %c8_45] : memref<1x8x32xf32, #tpu.memory_space<vmem>>, vector<1x8x8xf32>
      %74 = vector.shape_cast %73 : vector<1x8x8xf32> to vector<8x8xf32>
      %75 = arith.truncf %74 : vector<8x8xf32> to vector<8x8xbf16>
      %cst_46 = arith.constant dense<0.000000e+00> : vector<8x8xf32>
      %76 = tpu.matmul %69, %72, %cst_46 {dimension_numbers = #tpu.dot_dimension_numbers<[1], [1], [0], [0], [0, 0, 1, 0], [], []>} : vector<8x8xbf16>, vector<8x8xbf16>, vector<8x8xf32> -> vector<8x8xf32>
      %cst_47 = arith.constant 0.353553385 : f32
      %77 = vector.broadcast %cst_47 : f32 to vector<8x8xf32>
      %78 = arith.mulf %76, %77 : vector<8x8xf32>
      %cst_48 = arith.constant -1.000000e+30 : f32
      %79 = vector.broadcast %cst_48 : f32 to vector<8x8xf32>
      %80 = arith.select %20, %78, %79 : vector<8x8xi1>, vector<8x8xf32>
      %c1 = arith.constant 1 : index
      %c0_49 = arith.constant 0 : index
      %c0_50 = arith.constant 0 : index
      %81 = vector.load %arg7[%c1, %c0_49, %c0_50] : memref<4x8x1xf32, #tpu.memory_space<vmem>>, vector<1x8x1xf32>
      %82 = vector.shape_cast %81 : vector<1x8x1xf32> to vector<8x1xf32>
      %cst_51 = arith.constant dense<0xFF800000> : vector<8xf32>
      %83 = vector.multi_reduction <maximumf>, %80, %cst_51 [1] : vector<8x8xf32> to vector<8xf32>
      %84 = vector.shape_cast %83 : vector<8xf32> to vector<8x1xf32>
      %85 = arith.maximumf %82, %84 : vector<8x1xf32>
      %86 = arith.subf %82, %85 : vector<8x1xf32>
      %87 = math.exp %86 : vector<8x1xf32>
      %88 = vector.broadcast %85 : vector<8x1xf32> to vector<8x8xf32>
      %89 = arith.subf %80, %88 : vector<8x8xf32>
      %90 = math.exp %89 : vector<8x8xf32>
      %c1_52 = arith.constant 1 : index
      %c0_53 = arith.constant 0 : index
      %c0_54 = arith.constant 0 : index
      %91 = vector.load %arg8[%c1_52, %c0_53, %c0_54] : memref<4x8x1xf32, #tpu.memory_space<vmem>>, vector<1x8x1xf32>
      %92 = vector.shape_cast %91 : vector<1x8x1xf32> to vector<8x1xf32>
      %93 = arith.mulf %87, %92 : vector<8x1xf32>
      %cst_55 = arith.constant dense<0.000000e+00> : vector<8xf32>
      %94 = vector.multi_reduction <add>, %90, %cst_55 [1] : vector<8x8xf32> to vector<8xf32>
      %95 = vector.shape_cast %94 : vector<8xf32> to vector<8x1xf32>
      %96 = arith.addf %93, %95 : vector<8x1xf32>
      %c1_56 = arith.constant 1 : index
      %c0_57 = arith.constant 0 : index
      %c0_58 = arith.constant 0 : index
      %97 = vector.load %arg8[%c1_56, %c0_57, %c0_58] : memref<4x8x1xf32, #tpu.memory_space<vmem>>, vector<1x8x1xf32>
      %98 = vector.shape_cast %97 : vector<1x8x1xf32> to vector<8x1xf32>
      %99 = vector.shape_cast %96 : vector<8x1xf32> to vector<1x8x1xf32>
      tpu.vector_store %arg8[%c1_56, %c0_57, %c0_58], %99 {strides = array<i32>} : memref<4x8x1xf32, #tpu.memory_space<vmem>>, vector<1x8x1xf32>,
      %c1_59 = arith.constant 1 : index
      %c0_60 = arith.constant 0 : index
      %c0_61 = arith.constant 0 : index
      %100 = vector.load %arg9[%c1_59, %c0_60, %c0_61] : memref<4x8x8xf32, #tpu.memory_space<vmem>>, vector<1x8x8xf32>
      %101 = vector.shape_cast %100 : vector<1x8x8xf32> to vector<8x8xf32>
      %102 = vector.broadcast %87 : vector<8x1xf32> to vector<8x8xf32>
      %103 = arith.mulf %102, %101 : vector<8x8xf32>
      %104 = arith.truncf %90 : vector<8x8xf32> to vector<8x8xbf16>
      %cst_62 = arith.constant dense<0.000000e+00> : vector<8x8xf32>
      %105 = tpu.matmul %104, %75, %cst_62 {dimension_numbers = #tpu.dot_dimension_numbers<[1], [0], [0], [1], [0, 0, 1, 1], [], []>} : vector<8x8xbf16>, vector<8x8xbf16>, vector<8x8xf32> -> vector<8x8xf32>
      %106 = arith.addf %103, %105 : vector<8x8xf32>
      %c1_63 = arith.constant 1 : index
      %c0_64 = arith.constant 0 : index
      %c0_65 = arith.constant 0 : index
      %107 = vector.load %arg9[%c1_63, %c0_64, %c0_65] : memref<4x8x8xf32, #tpu.memory_space<vmem>>, vector<1x8x8xf32>
      %108 = vector.shape_cast %107 : vector<1x8x8xf32> to vector<8x8xf32>
      %109 = vector.shape_cast %106 : vector<8x8xf32> to vector<1x8x8xf32>
      tpu.vector_store %arg9[%c1_63, %c0_64, %c0_65], %109 {strides = array<i32>} : memref<4x8x8xf32, #tpu.memory_space<vmem>>, vector<1x8x8xf32>,
      %c1_66 = arith.constant 1 : index
      %c0_67 = arith.constant 0 : index
      %c0_68 = arith.constant 0 : index
      %110 = vector.load %arg7[%c1_66, %c0_67, %c0_68] : memref<4x8x1xf32, #tpu.memory_space<vmem>>, vector<1x8x1xf32>
      %111 = vector.shape_cast %110 : vector<1x8x1xf32> to vector<8x1xf32>
      %112 = vector.shape_cast %85 : vector<8x1xf32> to vector<1x8x1xf32>
      tpu.vector_store %arg7[%c1_66, %c0_67, %c0_68], %112 {strides = array<i32>} : memref<4x8x1xf32, #tpu.memory_space<vmem>>, vector<1x8x1xf32>,
      %c0_69 = arith.constant 0 : index
      %c0_70 = arith.constant 0 : index
      %c16 = arith.constant 16 : index
      %113 = vector.load %arg3[%c0_69, %c0_70, %c16] : memref<1x8x32xf32, #tpu.memory_space<vmem>>, vector<1x8x8xf32>
      %114 = vector.shape_cast %113 : vector<1x8x8xf32> to vector<8x8xf32>
      %115 = arith.truncf %114 : vector<8x8xf32> to vector<8x8xbf16>
      %c0_71 = arith.constant 0 : index
      %c0_72 = arith.constant 0 : index
      %c16_73 = arith.constant 16 : index
      %116 = vector.load %arg4[%c0_71, %c0_72, %c16_73] : memref<1x8x32xf32, #tpu.memory_space<vmem>>, vector<1x8x8xf32>
      %117 = vector.shape_cast %116 : vector<1x8x8xf32> to vector<8x8xf32>
      %118 = arith.truncf %117 : vector<8x8xf32> to vector<8x8xbf16>
      %c0_74 = arith.constant 0 : index
      %c0_75 = arith.constant 0 : index
      %c16_76 = arith.constant 16 : index
      %119 = vector.load %arg5[%c0_74, %c0_75, %c16_76] : memref<1x8x32xf32, #tpu.memory_space<vmem>>, vector<1x8x8xf32>
      %120 = vector.shape_cast %119 : vector<1x8x8xf32> to vector<8x8xf32>
      %121 = arith.truncf %120 : vector<8x8xf32> to vector<8x8xbf16>
      %cst_77 = arith.constant dense<0.000000e+00> : vector<8x8xf32>
      %122 = tpu.matmul %115, %118, %cst_77 {dimension_numbers = #tpu.dot_dimension_numbers<[1], [1], [0], [0], [0, 0, 1, 0], [], []>} : vector<8x8xbf16>, vector<8x8xbf16>, vector<8x8xf32> -> vector<8x8xf32>
      %cst_78 = arith.constant 0.353553385 : f32
      %123 = vector.broadcast %cst_78 : f32 to vector<8x8xf32>
      %124 = arith.mulf %122, %123 : vector<8x8xf32>
      %cst_79 = arith.constant -1.000000e+30 : f32
      %125 = vector.broadcast %cst_79 : f32 to vector<8x8xf32>
      %126 = arith.select %20, %124, %125 : vector<8x8xi1>, vector<8x8xf32>
      %c2 = arith.constant 2 : index
      %c0_80 = arith.constant 0 : index
      %c0_81 = arith.constant 0 : index
      %127 = vector.load %arg7[%c2, %c0_80, %c0_81] : memref<4x8x1xf32, #tpu.memory_space<vmem>>, vector<1x8x1xf32>
      %128 = vector.shape_cast %127 : vector<1x8x1xf32> to vector<8x1xf32>
      %cst_82 = arith.constant dense<0xFF800000> : vector<8xf32>
      %129 = vector.multi_reduction <maximumf>, %126, %cst_82 [1] : vector<8x8xf32> to vector<8xf32>
      %130 = vector.shape_cast %129 : vector<8xf32> to vector<8x1xf32>
      %131 = arith.maximumf %128, %130 : vector<8x1xf32>
      %132 = arith.subf %128, %131 : vector<8x1xf32>
      %133 = math.exp %132 : vector<8x1xf32>
      %134 = vector.broadcast %131 : vector<8x1xf32> to vector<8x8xf32>
      %135 = arith.subf %126, %134 : vector<8x8xf32>
      %136 = math.exp %135 : vector<8x8xf32>
      %c2_83 = arith.constant 2 : index
      %c0_84 = arith.constant 0 : index
      %c0_85 = arith.constant 0 : index
      %137 = vector.load %arg8[%c2_83, %c0_84, %c0_85] : memref<4x8x1xf32, #tpu.memory_space<vmem>>, vector<1x8x1xf32>
      %138 = vector.shape_cast %137 : vector<1x8x1xf32> to vector<8x1xf32>
      %139 = arith.mulf %133, %138 : vector<8x1xf32>
      %cst_86 = arith.constant dense<0.000000e+00> : vector<8xf32>
      %140 = vector.multi_reduction <add>, %136, %cst_86 [1] : vector<8x8xf32> to vector<8xf32>
      %141 = vector.shape_cast %140 : vector<8xf32> to vector<8x1xf32>
      %142 = arith.addf %139, %141 : vector<8x1xf32>
      %c2_87 = arith.constant 2 : index
      %c0_88 = arith.constant 0 : index
      %c0_89 = arith.constant 0 : index
      %143 = vector.load %arg8[%c2_87, %c0_88, %c0_89] : memref<4x8x1xf32, #tpu.memory_space<vmem>>, vector<1x8x1xf32>
      %144 = vector.shape_cast %143 : vector<1x8x1xf32> to vector<8x1xf32>
      %145 = vector.shape_cast %142 : vector<8x1xf32> to vector<1x8x1xf32>
      tpu.vector_store %arg8[%c2_87, %c0_88, %c0_89], %145 {strides = array<i32>} : memref<4x8x1xf32, #tpu.memory_space<vmem>>, vector<1x8x1xf32>,
      %c2_90 = arith.constant 2 : index
      %c0_91 = arith.constant 0 : index
      %c0_92 = arith.constant 0 : index
      %146 = vector.load %arg9[%c2_90, %c0_91, %c0_92] : memref<4x8x8xf32, #tpu.memory_space<vmem>>, vector<1x8x8xf32>
      %147 = vector.shape_cast %146 : vector<1x8x8xf32> to vector<8x8xf32>
      %148 = vector.broadcast %133 : vector<8x1xf32> to vector<8x8xf32>
      %149 = arith.mulf %148, %147 : vector<8x8xf32>
      %150 = arith.truncf %136 : vector<8x8xf32> to vector<8x8xbf16>
      %cst_93 = arith.constant dense<0.000000e+00> : vector<8x8xf32>
      %151 = tpu.matmul %150, %121, %cst_93 {dimension_numbers = #tpu.dot_dimension_numbers<[1], [0], [0], [1], [0, 0, 1, 1], [], []>} : vector<8x8xbf16>, vector<8x8xbf16>, vector<8x8xf32> -> vector<8x8xf32>
      %152 = arith.addf %149, %151 : vector<8x8xf32>
      %c2_94 = arith.constant 2 : index
      %c0_95 = arith.constant 0 : index
      %c0_96 = arith.constant 0 : index
      %153 = vector.load %arg9[%c2_94, %c0_95, %c0_96] : memref<4x8x8xf32, #tpu.memory_space<vmem>>, vector<1x8x8xf32>
      %154 = vector.shape_cast %153 : vector<1x8x8xf32> to vector<8x8xf32>
      %155 = vector.shape_cast %152 : vector<8x8xf32> to vector<1x8x8xf32>
      tpu.vector_store %arg9[%c2_94, %c0_95, %c0_96], %155 {strides = array<i32>} : memref<4x8x8xf32, #tpu.memory_space<vmem>>, vector<1x8x8xf32>,
      %c2_97 = arith.constant 2 : index
      %c0_98 = arith.constant 0 : index
      %c0_99 = arith.constant 0 : index
      %156 = vector.load %arg7[%c2_97, %c0_98, %c0_99] : memref<4x8x1xf32, #tpu.memory_space<vmem>>, vector<1x8x1xf32>
      %157 = vector.shape_cast %156 : vector<1x8x1xf32> to vector<8x1xf32>
      %158 = vector.shape_cast %131 : vector<8x1xf32> to vector<1x8x1xf32>
      tpu.vector_store %arg7[%c2_97, %c0_98, %c0_99], %158 {strides = array<i32>} : memref<4x8x1xf32, #tpu.memory_space<vmem>>, vector<1x8x1xf32>,
      %c0_100 = arith.constant 0 : index
      %c0_101 = arith.constant 0 : index
      %c24 = arith.constant 24 : index
      %159 = vector.load %arg3[%c0_100, %c0_101, %c24] : memref<1x8x32xf32, #tpu.memory_space<vmem>>, vector<1x8x8xf32>
      %160 = vector.shape_cast %159 : vector<1x8x8xf32> to vector<8x8xf32>
      %161 = arith.truncf %160 : vector<8x8xf32> to vector<8x8xbf16>
      %c0_102 = arith.constant 0 : index
      %c0_103 = arith.constant 0 : index
      %c24_104 = arith.constant 24 : index
      %162 = vector.load %arg4[%c0_102, %c0_103, %c24_104] : memref<1x8x32xf32, #tpu.memory_space<vmem>>, vector<1x8x8xf32>
      %163 = vector.shape_cast %162 : vector<1x8x8xf32> to vector<8x8xf32>
      %164 = arith.truncf %163 : vector<8x8xf32> to vector<8x8xbf16>
      %c0_105 = arith.constant 0 : index
      %c0_106 = arith.constant 0 : index
      %c24_107 = arith.constant 24 : index
      %165 = vector.load %arg5[%c0_105, %c0_106, %c24_107] : memref<1x8x32xf32, #tpu.memory_space<vmem>>, vector<1x8x8xf32>
      %166 = vector.shape_cast %165 : vector<1x8x8xf32> to vector<8x8xf32>
      %167 = arith.truncf %166 : vector<8x8xf32> to vector<8x8xbf16>
      %cst_108 = arith.constant dense<0.000000e+00> : vector<8x8xf32>
      %168 = tpu.matmul %161, %164, %cst_108 {dimension_numbers = #tpu.dot_dimension_numbers<[1], [1], [0], [0], [0, 0, 1, 0], [], []>} : vector<8x8xbf16>, vector<8x8xbf16>, vector<8x8xf32> -> vector<8x8xf32>
      %cst_109 = arith.constant 0.353553385 : f32
      %169 = vector.broadcast %cst_109 : f32 to vector<8x8xf32>
      %170 = arith.mulf %168, %169 : vector<8x8xf32>
      %cst_110 = arith.constant -1.000000e+30 : f32
      %171 = vector.broadcast %cst_110 : f32 to vector<8x8xf32>
      %172 = arith.select %20, %170, %171 : vector<8x8xi1>, vector<8x8xf32>
      %c3 = arith.constant 3 : index
      %c0_111 = arith.constant 0 : index
      %c0_112 = arith.constant 0 : index
      %173 = vector.load %arg7[%c3, %c0_111, %c0_112] : memref<4x8x1xf32, #tpu.memory_space<vmem>>, vector<1x8x1xf32>
      %174 = vector.shape_cast %173 : vector<1x8x1xf32> to vector<8x1xf32>
      %cst_113 = arith.constant dense<0xFF800000> : vector<8xf32>
      %175 = vector.multi_reduction <maximumf>, %172, %cst_113 [1] : vector<8x8xf32> to vector<8xf32>
      %176 = vector.shape_cast %175 : vector<8xf32> to vector<8x1xf32>
      %177 = arith.maximumf %174, %176 : vector<8x1xf32>
      %178 = arith.subf %174, %177 : vector<8x1xf32>
      %179 = math.exp %178 : vector<8x1xf32>
      %180 = vector.broadcast %177 : vector<8x1xf32> to vector<8x8xf32>
      %181 = arith.subf %172, %180 : vector<8x8xf32>
      %182 = math.exp %181 : vector<8x8xf32>
      %c3_114 = arith.constant 3 : index
      %c0_115 = arith.constant 0 : index
      %c0_116 = arith.constant 0 : index
      %183 = vector.load %arg8[%c3_114, %c0_115, %c0_116] : memref<4x8x1xf32, #tpu.memory_space<vmem>>, vector<1x8x1xf32>
      %184 = vector.shape_cast %183 : vector<1x8x1xf32> to vector<8x1xf32>
      %185 = arith.mulf %179, %184 : vector<8x1xf32>
      %cst_117 = arith.constant dense<0.000000e+00> : vector<8xf32>
      %186 = vector.multi_reduction <add>, %182, %cst_117 [1] : vector<8x8xf32> to vector<8xf32>
      %187 = vector.shape_cast %186 : vector<8xf32> to vector<8x1xf32>
      %188 = arith.addf %185, %187 : vector<8x1xf32>
      %c3_118 = arith.constant 3 : index
      %c0_119 = arith.constant 0 : index
      %c0_120 = arith.constant 0 : index
      %189 = vector.load %arg8[%c3_118, %c0_119, %c0_120] : memref<4x8x1xf32, #tpu.memory_space<vmem>>, vector<1x8x1xf32>
      %190 = vector.shape_cast %189 : vector<1x8x1xf32> to vector<8x1xf32>
      %191 = vector.shape_cast %188 : vector<8x1xf32> to vector<1x8x1xf32>
      tpu.vector_store %arg8[%c3_118, %c0_119, %c0_120], %191 {strides = array<i32>} : memref<4x8x1xf32, #tpu.memory_space<vmem>>, vector<1x8x1xf32>,
      %c3_121 = arith.constant 3 : index
      %c0_122 = arith.constant 0 : index
      %c0_123 = arith.constant 0 : index
      %192 = vector.load %arg9[%c3_121, %c0_122, %c0_123] : memref<4x8x8xf32, #tpu.memory_space<vmem>>, vector<1x8x8xf32>
      %193 = vector.shape_cast %192 : vector<1x8x8xf32> to vector<8x8xf32>
      %194 = vector.broadcast %179 : vector<8x1xf32> to vector<8x8xf32>
      %195 = arith.mulf %194, %193 : vector<8x8xf32>
      %196 = arith.truncf %182 : vector<8x8xf32> to vector<8x8xbf16>
      %cst_124 = arith.constant dense<0.000000e+00> : vector<8x8xf32>
      %197 = tpu.matmul %196, %167, %cst_124 {dimension_numbers = #tpu.dot_dimension_numbers<[1], [0], [0], [1], [0, 0, 1, 1], [], []>} : vector<8x8xbf16>, vector<8x8xbf16>, vector<8x8xf32> -> vector<8x8xf32>
      %198 = arith.addf %195, %197 : vector<8x8xf32>
      %c3_125 = arith.constant 3 : index
      %c0_126 = arith.constant 0 : index
      %c0_127 = arith.constant 0 : index
      %199 = vector.load %arg9[%c3_125, %c0_126, %c0_127] : memref<4x8x8xf32, #tpu.memory_space<vmem>>, vector<1x8x8xf32>
      %200 = vector.shape_cast %199 : vector<1x8x8xf32> to vector<8x8xf32>
      %201 = vector.shape_cast %198 : vector<8x8xf32> to vector<1x8x8xf32>
      tpu.vector_store %arg9[%c3_125, %c0_126, %c0_127], %201 {strides = array<i32>} : memref<4x8x8xf32, #tpu.memory_space<vmem>>, vector<1x8x8xf32>,
      %c3_128 = arith.constant 3 : index
      %c0_129 = arith.constant 0 : index
      %c0_130 = arith.constant 0 : index
      %202 = vector.load %arg7[%c3_128, %c0_129, %c0_130] : memref<4x8x1xf32, #tpu.memory_space<vmem>>, vector<1x8x1xf32>
      %203 = vector.shape_cast %202 : vector<1x8x1xf32> to vector<8x1xf32>
      %204 = vector.shape_cast %177 : vector<8x1xf32> to vector<1x8x1xf32>
      tpu.vector_store %arg7[%c3_128, %c0_129, %c0_130], %204 {strides = array<i32>} : memref<4x8x1xf32, #tpu.memory_space<vmem>>, vector<1x8x1xf32>,
    } else {
    }
    %c0_i32_3 = arith.constant 0 : i32
    %9 = arith.cmpi eq, %arg2, %c0_i32_3 : i32
    %10 = arith.extui %9 : i1 to i32
    %c0_i32_4 = arith.constant 0 : i32
    %11 = arith.cmpi ne, %10, %c0_i32_4 : i32
    scf.if %11 {
      %c0 = arith.constant 0 : index
      %c0_5 = arith.constant 0 : index
      %c0_6 = arith.constant 0 : index
      %12 = vector.load %arg9[%c0, %c0_5, %c0_6] : memref<4x8x8xf32, #tpu.memory_space<vmem>>, vector<1x8x8xf32>
      %13 = vector.shape_cast %12 : vector<1x8x8xf32> to vector<8x8xf32>
      %c0_7 = arith.constant 0 : index
      %c0_8 = arith.constant 0 : index
      %c0_9 = arith.constant 0 : index
      %14 = vector.load %arg8[%c0_7, %c0_8, %c0_9] : memref<4x8x1xf32, #tpu.memory_space<vmem>>, vector<1x8x1xf32>
      %15 = vector.shape_cast %14 : vector<1x8x1xf32> to vector<8x1xf32>
      %16 = vector.broadcast %15 : vector<8x1xf32> to vector<8x8xf32>
      %17 = arith.divf %13, %16 : vector<8x8xf32>
      %c0_10 = arith.constant 0 : index
      %c0_11 = arith.constant 0 : index
      %c0_12 = arith.constant 0 : index
      %18 = vector.load %arg6[%c0_10, %c0_11, %c0_12] : memref<1x8x32xf32, #tpu.memory_space<vmem>>, vector<1x8x8xf32>
      %19 = vector.shape_cast %18 : vector<1x8x8xf32> to vector<8x8xf32>
      %20 = vector.shape_cast %17 : vector<8x8xf32> to vector<1x8x8xf32>
      tpu.vector_store %arg6[%c0_10, %c0_11, %c0_12], %20 {strides = array<i32>} : memref<1x8x32xf32, #tpu.memory_space<vmem>>, vector<1x8x8xf32>,
      %c1 = arith.constant 1 : index
      %c0_13 = arith.constant 0 : index
      %c0_14 = arith.constant 0 : index
      %21 = vector.load %arg9[%c1, %c0_13, %c0_14] : memref<4x8x8xf32, #tpu.memory_space<vmem>>, vector<1x8x8xf32>
      %22 = vector.shape_cast %21 : vector<1x8x8xf32> to vector<8x8xf32>
      %c1_15 = arith.constant 1 : index
      %c0_16 = arith.constant 0 : index
      %c0_17 = arith.constant 0 : index
      %23 = vector.load %arg8[%c1_15, %c0_16, %c0_17] : memref<4x8x1xf32, #tpu.memory_space<vmem>>, vector<1x8x1xf32>
      %24 = vector.shape_cast %23 : vector<1x8x1xf32> to vector<8x1xf32>
      %25 = vector.broadcast %24 : vector<8x1xf32> to vector<8x8xf32>
      %26 = arith.divf %22, %25 : vector<8x8xf32>
      %c0_18 = arith.constant 0 : index
      %c0_19 = arith.constant 0 : index
      %c8 = arith.constant 8 : index
      %27 = vector.load %arg6[%c0_18, %c0_19, %c8] : memref<1x8x32xf32, #tpu.memory_space<vmem>>, vector<1x8x8xf32>
      %28 = vector.shape_cast %27 : vector<1x8x8xf32> to vector<8x8xf32>
      %29 = vector.shape_cast %26 : vector<8x8xf32> to vector<1x8x8xf32>
      tpu.vector_store %arg6[%c0_18, %c0_19, %c8], %29 {strides = array<i32>} : memref<1x8x32xf32, #tpu.memory_space<vmem>>, vector<1x8x8xf32>,
      %c2 = arith.constant 2 : index
      %c0_20 = arith.constant 0 : index
      %c0_21 = arith.constant 0 : index
      %30 = vector.load %arg9[%c2, %c0_20, %c0_21] : memref<4x8x8xf32, #tpu.memory_space<vmem>>, vector<1x8x8xf32>
      %31 = vector.shape_cast %30 : vector<1x8x8xf32> to vector<8x8xf32>
      %c2_22 = arith.constant 2 : index
      %c0_23 = arith.constant 0 : index
      %c0_24 = arith.constant 0 : index
      %32 = vector.load %arg8[%c2_22, %c0_23, %c0_24] : memref<4x8x1xf32, #tpu.memory_space<vmem>>, vector<1x8x1xf32>
      %33 = vector.shape_cast %32 : vector<1x8x1xf32> to vector<8x1xf32>
      %34 = vector.broadcast %33 : vector<8x1xf32> to vector<8x8xf32>
      %35 = arith.divf %31, %34 : vector<8x8xf32>
      %c0_25 = arith.constant 0 : index
      %c0_26 = arith.constant 0 : index
      %c16 = arith.constant 16 : index
      %36 = vector.load %arg6[%c0_25, %c0_26, %c16] : memref<1x8x32xf32, #tpu.memory_space<vmem>>, vector<1x8x8xf32>
      %37 = vector.shape_cast %36 : vector<1x8x8xf32> to vector<8x8xf32>
      %38 = vector.shape_cast %35 : vector<8x8xf32> to vector<1x8x8xf32>
      tpu.vector_store %arg6[%c0_25, %c0_26, %c16], %38 {strides = array<i32>} : memref<1x8x32xf32, #tpu.memory_space<vmem>>, vector<1x8x8xf32>,
      %c3 = arith.constant 3 : index
      %c0_27 = arith.constant 0 : index
      %c0_28 = arith.constant 0 : index
      %39 = vector.load %arg9[%c3, %c0_27, %c0_28] : memref<4x8x8xf32, #tpu.memory_space<vmem>>, vector<1x8x8xf32>
      %40 = vector.shape_cast %39 : vector<1x8x8xf32> to vector<8x8xf32>
      %c3_29 = arith.constant 3 : index
      %c0_30 = arith.constant 0 : index
      %c0_31 = arith.constant 0 : index
      %41 = vector.load %arg8[%c3_29, %c0_30, %c0_31] : memref<4x8x1xf32, #tpu.memory_space<vmem>>, vector<1x8x1xf32>
      %42 = vector.shape_cast %41 : vector<1x8x1xf32> to vector<8x1xf32>
      %43 = vector.broadcast %42 : vector<8x1xf32> to vector<8x8xf32>
      %44 = arith.divf %40, %43 : vector<8x8xf32>
      %c0_32 = arith.constant 0 : index
      %c0_33 = arith.constant 0 : index
      %c24 = arith.constant 24 : index
      %45 = vector.load %arg6[%c0_32, %c0_33, %c24] : memref<1x8x32xf32, #tpu.memory_space<vmem>>, vector<1x8x8xf32>
      %46 = vector.shape_cast %45 : vector<1x8x8xf32> to vector<8x8xf32>
      %47 = vector.shape_cast %44 : vector<8x8xf32> to vector<1x8x8xf32>
      tpu.vector_store %arg6[%c0_32, %c0_33, %c24], %47 {strides = array<i32>} : memref<1x8x32xf32, #tpu.memory_space<vmem>>, vector<1x8x8xf32>,
    } else {
    }
    return
  }
  func.func @transform_0(%arg0: i32, %arg1: i32, %arg2: i32) -> (i32, i32, i32) {
    %c0_i32 = arith.constant 0 : i32
    %c0_i32_0 = arith.constant 0 : i32
    return %arg0, %arg1, %c0_i32 : i32, i32, i32
  }
  func.func @transform_1(%arg0: i32, %arg1: i32, %arg2: i32) -> (i32, i32, i32) {
    %c0_i32 = arith.constant 0 : i32
    %c0_i32_0 = arith.constant 0 : i32
    return %arg0, %arg2, %c0_i32 : i32, i32, i32
  }
  func.func @transform_2(%arg0: i32, %arg1: i32, %arg2: i32) -> (i32, i32, i32) {
    %c0_i32 = arith.constant 0 : i32
    %c0_i32_0 = arith.constant 0 : i32
    return %arg0, %arg2, %c0_i32 : i32, i32, i32
  }
  func.func @transform_3(%arg0: i32, %arg1: i32, %arg2: i32) -> (i32, i32, i32) {
    %c0_i32 = arith.constant 0 : i32
    %c0_i32_0 = arith.constant 0 : i32
    return %arg0, %arg1, %c0_i32 : i32, i32, i32
  }
}

module attributes {stable_mosaic.version = 11 : i64} {
  func.func @_linear_kernel(%arg0: i32, %arg1: i32, %arg2: i32, %arg3: memref<32x32xf32, #tpu.memory_space<vmem>>, %arg4: memref<32x32xbf16, #tpu.memory_space<vmem>>, %arg5: memref<1x32xf32, #tpu.memory_space<vmem>>, %arg6: memref<32x32xf32, #tpu.memory_space<vmem>>) attributes {dimension_semantics = [#tpu.dimension_semantics<parallel>, #tpu.dimension_semantics<parallel>, #tpu.dimension_semantics<arbitrary>], iteration_bounds = array<i64: 1, 1, 1>, scalar_prefetch = 0 : i64, scratch_operands = 0 : i64, tpu.core_type = #tpu.core_type<tc>, window_params = [{transform_indices = @transform_0, window_bounds = array<i64: 32, 32>}, {transform_indices = @transform_1, window_bounds = array<i64: 32, 32>}, {transform_indices = @transform_2, window_bounds = array<i64: 1, 32>}, {transform_indices = @transform_3, window_bounds = array<i64: 32, 32>}]} {
    %c0_i32 = arith.constant 0 : i32
    %0 = arith.cmpi eq, %arg2, %c0_i32 : i32
    %1 = arith.extui %0 : i1 to i32
    %c0_i32_0 = arith.constant 0 : i32
    %2 = arith.cmpi ne, %1, %c0_i32_0 : i32
    scf.if %2 {
      %cst_10 = arith.constant 0.000000e+00 : f32
      %13 = vector.broadcast %cst_10 : f32 to vector<32x32xf32>
      %c0_11 = arith.constant 0 : index
      %c0_12 = arith.constant 0 : index
      %14 = vector.load %arg6[%c0_11, %c0_12] : memref<32x32xf32, #tpu.memory_space<vmem>>, vector<32x32xf32>
      tpu.vector_store %arg6[%c0_11, %c0_12], %13 {strides = array<i32>} : memref<32x32xf32, #tpu.memory_space<vmem>>, vector<32x32xf32>,
    } else {
    }
    %c0 = arith.constant 0 : index
    %c0_1 = arith.constant 0 : index
    %3 = vector.load %arg6[%c0, %c0_1] : memref<32x32xf32, #tpu.memory_space<vmem>>, vector<32x32xf32>
    %c0_2 = arith.constant 0 : index
    %c0_3 = arith.constant 0 : index
    %4 = vector.load %arg3[%c0_2, %c0_3] : memref<32x32xf32, #tpu.memory_space<vmem>>, vector<32x32xf32>
    %5 = arith.truncf %4 : vector<32x32xf32> to vector<32x32xbf16>
    %c0_4 = arith.constant 0 : index
    %c0_5 = arith.constant 0 : index
    %6 = vector.load %arg4[%c0_4, %c0_5] : memref<32x32xbf16, #tpu.memory_space<vmem>>, vector<32x32xbf16>
    %cst = arith.constant dense<0.000000e+00> : vector<32x32xf32>
    %7 = tpu.matmul %5, %6, %cst {dimension_numbers = #tpu.dot_dimension_numbers<[1], [0], [0], [1], [0, 0, 1, 1], [], []>} : vector<32x32xbf16>, vector<32x32xbf16>, vector<32x32xf32> -> vector<32x32xf32>
    %8 = arith.addf %3, %7 : vector<32x32xf32>
    %c0_6 = arith.constant 0 : index
    %c0_7 = arith.constant 0 : index
    %9 = vector.load %arg6[%c0_6, %c0_7] : memref<32x32xf32, #tpu.memory_space<vmem>>, vector<32x32xf32>
    tpu.vector_store %arg6[%c0_6, %c0_7], %8 {strides = array<i32>} : memref<32x32xf32, #tpu.memory_space<vmem>>, vector<32x32xf32>,
    %c0_i32_8 = arith.constant 0 : i32
    %10 = arith.cmpi eq, %arg2, %c0_i32_8 : i32
    %11 = arith.extui %10 : i1 to i32
    %c0_i32_9 = arith.constant 0 : i32
    %12 = arith.cmpi ne, %11, %c0_i32_9 : i32
    scf.if %12 {
      %c0_10 = arith.constant 0 : index
      %c0_11 = arith.constant 0 : index
      %13 = vector.load %arg6[%c0_10, %c0_11] : memref<32x32xf32, #tpu.memory_space<vmem>>, vector<32x32xf32>
      %c0_12 = arith.constant 0 : index
      %c0_13 = arith.constant 0 : index
      %14 = vector.load %arg5[%c0_12, %c0_13] : memref<1x32xf32, #tpu.memory_space<vmem>>, vector<1x32xf32>
      %15 = vector.broadcast %14 : vector<1x32xf32> to vector<32x32xf32>
      %16 = arith.addf %13, %15 : vector<32x32xf32>
      %c0_14 = arith.constant 0 : index
      %c0_15 = arith.constant 0 : index
      %17 = vector.load %arg6[%c0_14, %c0_15] : memref<32x32xf32, #tpu.memory_space<vmem>>, vector<32x32xf32>
      tpu.vector_store %arg6[%c0_14, %c0_15], %16 {strides = array<i32>} : memref<32x32xf32, #tpu.memory_space<vmem>>, vector<32x32xf32>,
    } else {
    }
    return
  }
  func.func @transform_0(%arg0: i32, %arg1: i32, %arg2: i32) -> (i32, i32) {
    %c0_i32 = arith.constant 0 : i32
    return %arg0, %arg2 : i32, i32
  }
  func.func @transform_1(%arg0: i32, %arg1: i32, %arg2: i32) -> (i32, i32) {
    %c0_i32 = arith.constant 0 : i32
    return %arg2, %arg1 : i32, i32
  }
  func.func @transform_2(%arg0: i32, %arg1: i32, %arg2: i32) -> (i32, i32) {
    %c0_i32 = arith.constant 0 : i32
    %c0_i32_0 = arith.constant 0 : i32
    return %c0_i32, %arg1 : i32, i32
  }
  func.func @transform_3(%arg0: i32, %arg1: i32, %arg2: i32) -> (i32, i32) {
    %c0_i32 = arith.constant 0 : i32
    return %arg0, %arg1 : i32, i32
  }
}

module attributes {stable_mosaic.version = 11 : i64} {
  func.func @_linear_kernel(%arg0: i32, %arg1: i32, %arg2: i32, %arg3: memref<16x32xf32, #tpu.memory_space<vmem>>, %arg4: memref<32x64xbf16, #tpu.memory_space<vmem>>, %arg5: memref<1x64xf32, #tpu.memory_space<vmem>>, %arg6: memref<16x64xf32, #tpu.memory_space<vmem>>) attributes {dimension_semantics = [#tpu.dimension_semantics<parallel>, #tpu.dimension_semantics<parallel>, #tpu.dimension_semantics<arbitrary>], iteration_bounds = array<i64: 1, 1, 1>, scalar_prefetch = 0 : i64, scratch_operands = 0 : i64, tpu.core_type = #tpu.core_type<tc>, window_params = [{transform_indices = @transform_0, window_bounds = array<i64: 16, 32>}, {transform_indices = @transform_1, window_bounds = array<i64: 32, 64>}, {transform_indices = @transform_2, window_bounds = array<i64: 1, 64>}, {transform_indices = @transform_3, window_bounds = array<i64: 16, 64>}]} {
    %c0_i32 = arith.constant 0 : i32
    %0 = arith.cmpi eq, %arg2, %c0_i32 : i32
    %1 = arith.extui %0 : i1 to i32
    %c0_i32_0 = arith.constant 0 : i32
    %2 = arith.cmpi ne, %1, %c0_i32_0 : i32
    scf.if %2 {
      %cst_10 = arith.constant 0.000000e+00 : f32
      %13 = vector.broadcast %cst_10 : f32 to vector<16x64xf32>
      %c0_11 = arith.constant 0 : index
      %c0_12 = arith.constant 0 : index
      %14 = vector.load %arg6[%c0_11, %c0_12] : memref<16x64xf32, #tpu.memory_space<vmem>>, vector<16x64xf32>
      tpu.vector_store %arg6[%c0_11, %c0_12], %13 {strides = array<i32>} : memref<16x64xf32, #tpu.memory_space<vmem>>, vector<16x64xf32>,
    } else {
    }
    %c0 = arith.constant 0 : index
    %c0_1 = arith.constant 0 : index
    %3 = vector.load %arg6[%c0, %c0_1] : memref<16x64xf32, #tpu.memory_space<vmem>>, vector<16x64xf32>
    %c0_2 = arith.constant 0 : index
    %c0_3 = arith.constant 0 : index
    %4 = vector.load %arg3[%c0_2, %c0_3] : memref<16x32xf32, #tpu.memory_space<vmem>>, vector<16x32xf32>
    %5 = arith.truncf %4 : vector<16x32xf32> to vector<16x32xbf16>
    %c0_4 = arith.constant 0 : index
    %c0_5 = arith.constant 0 : index
    %6 = vector.load %arg4[%c0_4, %c0_5] : memref<32x64xbf16, #tpu.memory_space<vmem>>, vector<32x64xbf16>
    %cst = arith.constant dense<0.000000e+00> : vector<16x64xf32>
    %7 = tpu.matmul %5, %6, %cst {dimension_numbers = #tpu.dot_dimension_numbers<[1], [0], [0], [1], [0, 0, 1, 1], [], []>} : vector<16x32xbf16>, vector<32x64xbf16>, vector<16x64xf32> -> vector<16x64xf32>
    %8 = arith.addf %3, %7 : vector<16x64xf32>
    %c0_6 = arith.constant 0 : index
    %c0_7 = arith.constant 0 : index
    %9 = vector.load %arg6[%c0_6, %c0_7] : memref<16x64xf32, #tpu.memory_space<vmem>>, vector<16x64xf32>
    tpu.vector_store %arg6[%c0_6, %c0_7], %8 {strides = array<i32>} : memref<16x64xf32, #tpu.memory_space<vmem>>, vector<16x64xf32>,
    %c0_i32_8 = arith.constant 0 : i32
    %10 = arith.cmpi eq, %arg2, %c0_i32_8 : i32
    %11 = arith.extui %10 : i1 to i32
    %c0_i32_9 = arith.constant 0 : i32
    %12 = arith.cmpi ne, %11, %c0_i32_9 : i32
    scf.if %12 {
      %c0_10 = arith.constant 0 : index
      %c0_11 = arith.constant 0 : index
      %13 = vector.load %arg6[%c0_10, %c0_11] : memref<16x64xf32, #tpu.memory_space<vmem>>, vector<16x64xf32>
      %c0_12 = arith.constant 0 : index
      %c0_13 = arith.constant 0 : index
      %14 = vector.load %arg5[%c0_12, %c0_13] : memref<1x64xf32, #tpu.memory_space<vmem>>, vector<1x64xf32>
      %15 = vector.broadcast %14 : vector<1x64xf32> to vector<16x64xf32>
      %16 = arith.addf %13, %15 : vector<16x64xf32>
      %cst_14 = arith.constant 0.000000e+00 : f32
      %17 = vector.broadcast %cst_14 : f32 to vector<16x64xf32>
      %18 = arith.maximumf %16, %17 : vector<16x64xf32>
      %c0_15 = arith.constant 0 : index
      %c0_16 = arith.constant 0 : index
      %19 = vector.load %arg6[%c0_15, %c0_16] : memref<16x64xf32, #tpu.memory_space<vmem>>, vector<16x64xf32>
      tpu.vector_store %arg6[%c0_15, %c0_16], %18 {strides = array<i32>} : memref<16x64xf32, #tpu.memory_space<vmem>>, vector<16x64xf32>,
    } else {
    }
    return
  }
  func.func @transform_0(%arg0: i32, %arg1: i32, %arg2: i32) -> (i32, i32) {
    %c0_i32 = arith.constant 0 : i32
    return %arg0, %arg2 : i32, i32
  }
  func.func @transform_1(%arg0: i32, %arg1: i32, %arg2: i32) -> (i32, i32) {
    %c0_i32 = arith.constant 0 : i32
    return %arg2, %arg1 : i32, i32
  }
  func.func @transform_2(%arg0: i32, %arg1: i32, %arg2: i32) -> (i32, i32) {
    %c0_i32 = arith.constant 0 : i32
    %c0_i32_0 = arith.constant 0 : i32
    return %c0_i32, %arg1 : i32, i32
  }
  func.func @transform_3(%arg0: i32, %arg1: i32, %arg2: i32) -> (i32, i32) {
    %c0_i32 = arith.constant 0 : i32
    return %arg0, %arg1 : i32, i32
  }
}

module attributes {stable_mosaic.version = 11 : i64} {
  func.func @_flash_attn_kernel(%arg0: i32, %arg1: i32, %arg2: i32, %arg3: memref<1x8x32xf32, #tpu.memory_space<vmem>>, %arg4: memref<1x16x32xf32, #tpu.memory_space<vmem>>, %arg5: memref<1x16x32xf32, #tpu.memory_space<vmem>>, %arg6: memref<1x8x32xf32, #tpu.memory_space<vmem>>, %arg7: memref<4x8x1xf32, #tpu.memory_space<vmem>>, %arg8: memref<4x8x1xf32, #tpu.memory_space<vmem>>, %arg9: memref<4x8x8xf32, #tpu.memory_space<vmem>>) attributes {dimension_semantics = [#tpu.dimension_semantics<parallel>, #tpu.dimension_semantics<parallel>, #tpu.dimension_semantics<arbitrary>], iteration_bounds = array<i64: 2, 1, 1>, scalar_prefetch = 0 : i64, scratch_operands = 3 : i64, tpu.core_type = #tpu.core_type<tc>, window_params = [{transform_indices = @transform_0, window_bounds = array<i64: 1, 8, 32>}, {transform_indices = @transform_1, window_bounds = array<i64: 1, 16, 32>}, {transform_indices = @transform_2, window_bounds = array<i64: 1, 16, 32>}, {transform_indices = @transform_3, window_bounds = array<i64: 1, 8, 32>}]} {
    %c0_i32 = arith.constant 0 : i32
    %0 = arith.cmpi eq, %arg2, %c0_i32 : i32
    %1 = arith.extui %0 : i1 to i32
    %c0_i32_0 = arith.constant 0 : i32
    %2 = arith.cmpi ne, %1, %c0_i32_0 : i32
    scf.if %2 {
      %cst_123 = arith.constant -1.000000e+30 : f32
      %182 = vector.broadcast %cst_123 : f32 to vector<4x8x1xf32>
      %c0_124 = arith.constant 0 : index
      %c0_125 = arith.constant 0 : index
      %c0_126 = arith.constant 0 : index
      %183 = vector.load %arg7[%c0_124, %c0_125, %c0_126] : memref<4x8x1xf32, #tpu.memory_space<vmem>>, vector<4x8x1xf32>
      tpu.vector_store %arg7[%c0_124, %c0_125, %c0_126], %182 {strides = array<i32>} : memref<4x8x1xf32, #tpu.memory_space<vmem>>, vector<4x8x1xf32>,
      %cst_127 = arith.constant 0.000000e+00 : f32
      %184 = vector.broadcast %cst_127 : f32 to vector<4x8x1xf32>
      %c0_128 = arith.constant 0 : index
      %c0_129 = arith.constant 0 : index
      %c0_130 = arith.constant 0 : index
      %185 = vector.load %arg8[%c0_128, %c0_129, %c0_130] : memref<4x8x1xf32, #tpu.memory_space<vmem>>, vector<4x8x1xf32>
      tpu.vector_store %arg8[%c0_128, %c0_129, %c0_130], %184 {strides = array<i32>} : memref<4x8x1xf32, #tpu.memory_space<vmem>>, vector<4x8x1xf32>,
      %cst_131 = arith.constant 0.000000e+00 : f32
      %186 = vector.broadcast %cst_131 : f32 to vector<4x8x8xf32>
      %c0_132 = arith.constant 0 : index
      %c0_133 = arith.constant 0 : index
      %c0_134 = arith.constant 0 : index
      %187 = vector.load %arg9[%c0_132, %c0_133, %c0_134] : memref<4x8x8xf32, #tpu.memory_space<vmem>>, vector<4x8x8xf32>
      tpu.vector_store %arg9[%c0_132, %c0_133, %c0_134], %186 {strides = array<i32>} : memref<4x8x8xf32, #tpu.memory_space<vmem>>, vector<4x8x8xf32>,
    } else {
    }
    %c0 = arith.constant 0 : index
    %c0_1 = arith.constant 0 : index
    %c0_2 = arith.constant 0 : index
    %3 = vector.load %arg3[%c0, %c0_1, %c0_2] : memref<1x8x32xf32, #tpu.memory_space<vmem>>, vector<1x8x8xf32>
    %4 = vector.shape_cast %3 : vector<1x8x8xf32> to vector<8x8xf32>
    %5 = arith.truncf %4 : vector<8x8xf32> to vector<8x8xbf16>
    %c0_3 = arith.constant 0 : index
    %c0_4 = arith.constant 0 : index
    %c0_5 = arith.constant 0 : index
    %6 = vector.load %arg4[%c0_3, %c0_4, %c0_5] : memref<1x16x32xf32, #tpu.memory_space<vmem>>, vector<1x16x8xf32>
    %7 = vector.shape_cast %6 : vector<1x16x8xf32> to vector<16x8xf32>
    %8 = arith.truncf %7 : vector<16x8xf32> to vector<16x8xbf16>
    %c0_6 = arith.constant 0 : index
    %c0_7 = arith.constant 0 : index
    %c0_8 = arith.constant 0 : index
    %9 = vector.load %arg5[%c0_6, %c0_7, %c0_8] : memref<1x16x32xf32, #tpu.memory_space<vmem>>, vector<1x16x8xf32>
    %10 = vector.shape_cast %9 : vector<1x16x8xf32> to vector<16x8xf32>
    %11 = arith.truncf %10 : vector<16x8xf32> to vector<16x8xbf16>
    %cst = arith.constant dense<0.000000e+00> : vector<8x16xf32>
    %12 = tpu.matmul %5, %8, %cst {dimension_numbers = #tpu.dot_dimension_numbers<[1], [1], [0], [0], [0, 0, 1, 0], [], []>} : vector<8x8xbf16>, vector<16x8xbf16>, vector<8x16xf32> -> vector<8x16xf32>
    %cst_9 = arith.constant 0.353553385 : f32
    %13 = vector.broadcast %cst_9 : f32 to vector<8x16xf32>
    %14 = arith.mulf %12, %13 : vector<8x16xf32>
    %c0_10 = arith.constant 0 : index
    %c0_11 = arith.constant 0 : index
    %c0_12 = arith.constant 0 : index
    %15 = vector.load %arg7[%c0_10, %c0_11, %c0_12] : memref<4x8x1xf32, #tpu.memory_space<vmem>>, vector<1x8x1xf32>
    %16 = vector.shape_cast %15 : vector<1x8x1xf32> to vector<8x1xf32>
    %cst_13 = arith.constant dense<0xFF800000> : vector<8xf32>
    %17 = vector.multi_reduction <maximumf>, %14, %cst_13 [1] : vector<8x16xf32> to vector<8xf32>
    %18 = vector.shape_cast %17 : vector<8xf32> to vector<8x1xf32>
    %19 = arith.maximumf %16, %18 : vector<8x1xf32>
    %20 = arith.subf %16, %19 : vector<8x1xf32>
    %21 = math.exp %20 : vector<8x1xf32>
    %22 = vector.broadcast %19 : vector<8x1xf32> to vector<8x16xf32>
    %23 = arith.subf %14, %22 : vector<8x16xf32>
    %24 = math.exp %23 : vector<8x16xf32>
    %c0_14 = arith.constant 0 : index
    %c0_15 = arith.constant 0 : index
    %c0_16 = arith.constant 0 : index
    %25 = vector.load %arg8[%c0_14, %c0_15, %c0_16] : memref<4x8x1xf32, #tpu.memory_space<vmem>>, vector<1x8x1xf32>
    %26 = vector.shape_cast %25 : vector<1x8x1xf32> to vector<8x1xf32>
    %27 = arith.mulf %21, %26 : vector<8x1xf32>
    %cst_17 = arith.constant dense<0.000000e+00> : vector<8xf32>
    %28 = vector.multi_reduction <add>, %24, %cst_17 [1] : vector<8x16xf32> to vector<8xf32>
    %29 = vector.shape_cast %28 : vector<8xf32> to vector<8x1xf32>
    %30 = arith.addf %27, %29 : vector<8x1xf32>
    %c0_18 = arith.constant 0 : index
    %c0_19 = arith.constant 0 : index
    %c0_20 = arith.constant 0 : index
    %31 = vector.load %arg8[%c0_18, %c0_19, %c0_20] : memref<4x8x1xf32, #tpu.memory_space<vmem>>, vector<1x8x1xf32>
    %32 = vector.shape_cast %31 : vector<1x8x1xf32> to vector<8x1xf32>
    %33 = vector.shape_cast %30 : vector<8x1xf32> to vector<1x8x1xf32>
    tpu.vector_store %arg8[%c0_18, %c0_19, %c0_20], %33 {strides = array<i32>} : memref<4x8x1xf32, #tpu.memory_space<vmem>>, vector<1x8x1xf32>,
    %c0_21 = arith.constant 0 : index
    %c0_22 = arith.constant 0 : index
    %c0_23 = arith.constant 0 : index
    %34 = vector.load %arg9[%c0_21, %c0_22, %c0_23] : memref<4x8x8xf32, #tpu.memory_space<vmem>>, vector<1x8x8xf32>
    %35 = vector.shape_cast %34 : vector<1x8x8xf32> to vector<8x8xf32>
    %36 = vector.broadcast %21 : vector<8x1xf32> to vector<8x8xf32>
    %37 = arith.mulf %36, %35 : vector<8x8xf32>
    %38 = arith.truncf %24 : vector<8x16xf32> to vector<8x16xbf16>
    %cst_24 = arith.constant dense<0.000000e+00> : vector<8x8xf32>
    %39 = tpu.matmul %38, %11, %cst_24 {dimension_numbers = #tpu.dot_dimension_numbers<[1], [0], [0], [1], [0, 0, 1, 1], [], []>} : vector<8x16xbf16>, vector<16x8xbf16>, vector<8x8xf32> -> vector<8x8xf32>
    %40 = arith.addf %37, %39 : vector<8x8xf32>
    %c0_25 = arith.constant 0 : index
    %c0_26 = arith.constant 0 : index
    %c0_27 = arith.constant 0 : index
    %41 = vector.load %arg9[%c0_25, %c0_26, %c0_27] : memref<4x8x8xf32, #tpu.memory_space<vmem>>, vector<1x8x8xf32>
    %42 = vector.shape_cast %41 : vector<1x8x8xf32> to vector<8x8xf32>
    %43 = vector.shape_cast %40 : vector<8x8xf32> to vector<1x8x8xf32>
    tpu.vector_store %arg9[%c0_25, %c0_26, %c0_27], %43 {strides = array<i32>} : memref<4x8x8xf32, #tpu.memory_space<vmem>>, vector<1x8x8xf32>,
    %c0_28 = arith.constant 0 : index
    %c0_29 = arith.constant 0 : index
    %c0_30 = arith.constant 0 : index
    %44 = vector.load %arg7[%c0_28, %c0_29, %c0_30] : memref<4x8x1xf32, #tpu.memory_space<vmem>>, vector<1x8x1xf32>
    %45 = vector.shape_cast %44 : vector<1x8x1xf32> to vector<8x1xf32>
    %46 = vector.shape_cast %19 : vector<8x1xf32> to vector<1x8x1xf32>
    tpu.vector_store %arg7[%c0_28, %c0_29, %c0_30], %46 {strides = array<i32>} : memref<4x8x1xf32, #tpu.memory_space<vmem>>, vector<1x8x1xf32>,
    %c0_31 = arith.constant 0 : index
    %c0_32 = arith.constant 0 : index
    %c8 = arith.constant 8 : index
    %47 = vector.load %arg3[%c0_31, %c0_32, %c8] : memref<1x8x32xf32, #tpu.memory_space<vmem>>, vector<1x8x8xf32>
    %48 = vector.shape_cast %47 : vector<1x8x8xf32> to vector<8x8xf32>
    %49 = arith.truncf %48 : vector<8x8xf32> to vector<8x8xbf16>
    %c0_33 = arith.constant 0 : index
    %c0_34 = arith.constant 0 : index
    %c8_35 = arith.constant 8 : index
    %50 = vector.load %arg4[%c0_33, %c0_34, %c8_35] : memref<1x16x32xf32, #tpu.memory_space<vmem>>, vector<1x16x8xf32>
    %51 = vector.shape_cast %50 : vector<1x16x8xf32> to vector<16x8xf32>
    %52 = arith.truncf %51 : vector<16x8xf32> to vector<16x8xbf16>
    %c0_36 = arith.constant 0 : index
    %c0_37 = arith.constant 0 : index
    %c8_38 = arith.constant 8 : index
    %53 = vector.load %arg5[%c0_36, %c0_37, %c8_38] : memref<1x16x32xf32, #tpu.memory_space<vmem>>, vector<1x16x8xf32>
    %54 = vector.shape_cast %53 : vector<1x16x8xf32> to vector<16x8xf32>
    %55 = arith.truncf %54 : vector<16x8xf32> to vector<16x8xbf16>
    %cst_39 = arith.constant dense<0.000000e+00> : vector<8x16xf32>
    %56 = tpu.matmul %49, %52, %cst_39 {dimension_numbers = #tpu.dot_dimension_numbers<[1], [1], [0], [0], [0, 0, 1, 0], [], []>} : vector<8x8xbf16>, vector<16x8xbf16>, vector<8x16xf32> -> vector<8x16xf32>
    %cst_40 = arith.constant 0.353553385 : f32
    %57 = vector.broadcast %cst_40 : f32 to vector<8x16xf32>
    %58 = arith.mulf %56, %57 : vector<8x16xf32>
    %c1 = arith.constant 1 : index
    %c0_41 = arith.constant 0 : index
    %c0_42 = arith.constant 0 : index
    %59 = vector.load %arg7[%c1, %c0_41, %c0_42] : memref<4x8x1xf32, #tpu.memory_space<vmem>>, vector<1x8x1xf32>
    %60 = vector.shape_cast %59 : vector<1x8x1xf32> to vector<8x1xf32>
    %cst_43 = arith.constant dense<0xFF800000> : vector<8xf32>
    %61 = vector.multi_reduction <maximumf>, %58, %cst_43 [1] : vector<8x16xf32> to vector<8xf32>
    %62 = vector.shape_cast %61 : vector<8xf32> to vector<8x1xf32>
    %63 = arith.maximumf %60, %62 : vector<8x1xf32>
    %64 = arith.subf %60, %63 : vector<8x1xf32>
    %65 = math.exp %64 : vector<8x1xf32>
    %66 = vector.broadcast %63 : vector<8x1xf32> to vector<8x16xf32>
    %67 = arith.subf %58, %66 : vector<8x16xf32>
    %68 = math.exp %67 : vector<8x16xf32>
    %c1_44 = arith.constant 1 : index
    %c0_45 = arith.constant 0 : index
    %c0_46 = arith.constant 0 : index
    %69 = vector.load %arg8[%c1_44, %c0_45, %c0_46] : memref<4x8x1xf32, #tpu.memory_space<vmem>>, vector<1x8x1xf32>
    %70 = vector.shape_cast %69 : vector<1x8x1xf32> to vector<8x1xf32>
    %71 = arith.mulf %65, %70 : vector<8x1xf32>
    %cst_47 = arith.constant dense<0.000000e+00> : vector<8xf32>
    %72 = vector.multi_reduction <add>, %68, %cst_47 [1] : vector<8x16xf32> to vector<8xf32>
    %73 = vector.shape_cast %72 : vector<8xf32> to vector<8x1xf32>
    %74 = arith.addf %71, %73 : vector<8x1xf32>
    %c1_48 = arith.constant 1 : index
    %c0_49 = arith.constant 0 : index
    %c0_50 = arith.constant 0 : index
    %75 = vector.load %arg8[%c1_48, %c0_49, %c0_50] : memref<4x8x1xf32, #tpu.memory_space<vmem>>, vector<1x8x1xf32>
    %76 = vector.shape_cast %75 : vector<1x8x1xf32> to vector<8x1xf32>
    %77 = vector.shape_cast %74 : vector<8x1xf32> to vector<1x8x1xf32>
    tpu.vector_store %arg8[%c1_48, %c0_49, %c0_50], %77 {strides = array<i32>} : memref<4x8x1xf32, #tpu.memory_space<vmem>>, vector<1x8x1xf32>,
    %c1_51 = arith.constant 1 : index
    %c0_52 = arith.constant 0 : index
    %c0_53 = arith.constant 0 : index
    %78 = vector.load %arg9[%c1_51, %c0_52, %c0_53] : memref<4x8x8xf32, #tpu.memory_space<vmem>>, vector<1x8x8xf32>
    %79 = vector.shape_cast %78 : vector<1x8x8xf32> to vector<8x8xf32>
    %80 = vector.broadcast %65 : vector<8x1xf32> to vector<8x8xf32>
    %81 = arith.mulf %80, %79 : vector<8x8xf32>
    %82 = arith.truncf %68 : vector<8x16xf32> to vector<8x16xbf16>
    %cst_54 = arith.constant dense<0.000000e+00> : vector<8x8xf32>
    %83 = tpu.matmul %82, %55, %cst_54 {dimension_numbers = #tpu.dot_dimension_numbers<[1], [0], [0], [1], [0, 0, 1, 1], [], []>} : vector<8x16xbf16>, vector<16x8xbf16>, vector<8x8xf32> -> vector<8x8xf32>
    %84 = arith.addf %81, %83 : vector<8x8xf32>
    %c1_55 = arith.constant 1 : index
    %c0_56 = arith.constant 0 : index
    %c0_57 = arith.constant 0 : index
    %85 = vector.load %arg9[%c1_55, %c0_56, %c0_57] : memref<4x8x8xf32, #tpu.memory_space<vmem>>, vector<1x8x8xf32>
    %86 = vector.shape_cast %85 : vector<1x8x8xf32> to vector<8x8xf32>
    %87 = vector.shape_cast %84 : vector<8x8xf32> to vector<1x8x8xf32>
    tpu.vector_store %arg9[%c1_55, %c0_56, %c0_57], %87 {strides = array<i32>} : memref<4x8x8xf32, #tpu.memory_space<vmem>>, vector<1x8x8xf32>,
    %c1_58 = arith.constant 1 : index
    %c0_59 = arith.constant 0 : index
    %c0_60 = arith.constant 0 : index
    %88 = vector.load %arg7[%c1_58, %c0_59, %c0_60] : memref<4x8x1xf32, #tpu.memory_space<vmem>>, vector<1x8x1xf32>
    %89 = vector.shape_cast %88 : vector<1x8x1xf32> to vector<8x1xf32>
    %90 = vector.shape_cast %63 : vector<8x1xf32> to vector<1x8x1xf32>
    tpu.vector_store %arg7[%c1_58, %c0_59, %c0_60], %90 {strides = array<i32>} : memref<4x8x1xf32, #tpu.memory_space<vmem>>, vector<1x8x1xf32>,
    %c0_61 = arith.constant 0 : index
    %c0_62 = arith.constant 0 : index
    %c16 = arith.constant 16 : index
    %91 = vector.load %arg3[%c0_61, %c0_62, %c16] : memref<1x8x32xf32, #tpu.memory_space<vmem>>, vector<1x8x8xf32>
    %92 = vector.shape_cast %91 : vector<1x8x8xf32> to vector<8x8xf32>
    %93 = arith.truncf %92 : vector<8x8xf32> to vector<8x8xbf16>
    %c0_63 = arith.constant 0 : index
    %c0_64 = arith.constant 0 : index
    %c16_65 = arith.constant 16 : index
    %94 = vector.load %arg4[%c0_63, %c0_64, %c16_65] : memref<1x16x32xf32, #tpu.memory_space<vmem>>, vector<1x16x8xf32>
    %95 = vector.shape_cast %94 : vector<1x16x8xf32> to vector<16x8xf32>
    %96 = arith.truncf %95 : vector<16x8xf32> to vector<16x8xbf16>
    %c0_66 = arith.constant 0 : index
    %c0_67 = arith.constant 0 : index
    %c16_68 = arith.constant 16 : index
    %97 = vector.load %arg5[%c0_66, %c0_67, %c16_68] : memref<1x16x32xf32, #tpu.memory_space<vmem>>, vector<1x16x8xf32>
    %98 = vector.shape_cast %97 : vector<1x16x8xf32> to vector<16x8xf32>
    %99 = arith.truncf %98 : vector<16x8xf32> to vector<16x8xbf16>
    %cst_69 = arith.constant dense<0.000000e+00> : vector<8x16xf32>
    %100 = tpu.matmul %93, %96, %cst_69 {dimension_numbers = #tpu.dot_dimension_numbers<[1], [1], [0], [0], [0, 0, 1, 0], [], []>} : vector<8x8xbf16>, vector<16x8xbf16>, vector<8x16xf32> -> vector<8x16xf32>
    %cst_70 = arith.constant 0.353553385 : f32
    %101 = vector.broadcast %cst_70 : f32 to vector<8x16xf32>
    %102 = arith.mulf %100, %101 : vector<8x16xf32>
    %c2 = arith.constant 2 : index
    %c0_71 = arith.constant 0 : index
    %c0_72 = arith.constant 0 : index
    %103 = vector.load %arg7[%c2, %c0_71, %c0_72] : memref<4x8x1xf32, #tpu.memory_space<vmem>>, vector<1x8x1xf32>
    %104 = vector.shape_cast %103 : vector<1x8x1xf32> to vector<8x1xf32>
    %cst_73 = arith.constant dense<0xFF800000> : vector<8xf32>
    %105 = vector.multi_reduction <maximumf>, %102, %cst_73 [1] : vector<8x16xf32> to vector<8xf32>
    %106 = vector.shape_cast %105 : vector<8xf32> to vector<8x1xf32>
    %107 = arith.maximumf %104, %106 : vector<8x1xf32>
    %108 = arith.subf %104, %107 : vector<8x1xf32>
    %109 = math.exp %108 : vector<8x1xf32>
    %110 = vector.broadcast %107 : vector<8x1xf32> to vector<8x16xf32>
    %111 = arith.subf %102, %110 : vector<8x16xf32>
    %112 = math.exp %111 : vector<8x16xf32>
    %c2_74 = arith.constant 2 : index
    %c0_75 = arith.constant 0 : index
    %c0_76 = arith.constant 0 : index
    %113 = vector.load %arg8[%c2_74, %c0_75, %c0_76] : memref<4x8x1xf32, #tpu.memory_space<vmem>>, vector<1x8x1xf32>
    %114 = vector.shape_cast %113 : vector<1x8x1xf32> to vector<8x1xf32>
    %115 = arith.mulf %109, %114 : vector<8x1xf32>
    %cst_77 = arith.constant dense<0.000000e+00> : vector<8xf32>
    %116 = vector.multi_reduction <add>, %112, %cst_77 [1] : vector<8x16xf32> to vector<8xf32>
    %117 = vector.shape_cast %116 : vector<8xf32> to vector<8x1xf32>
    %118 = arith.addf %115, %117 : vector<8x1xf32>
    %c2_78 = arith.constant 2 : index
    %c0_79 = arith.constant 0 : index
    %c0_80 = arith.constant 0 : index
    %119 = vector.load %arg8[%c2_78, %c0_79, %c0_80] : memref<4x8x1xf32, #tpu.memory_space<vmem>>, vector<1x8x1xf32>
    %120 = vector.shape_cast %119 : vector<1x8x1xf32> to vector<8x1xf32>
    %121 = vector.shape_cast %118 : vector<8x1xf32> to vector<1x8x1xf32>
    tpu.vector_store %arg8[%c2_78, %c0_79, %c0_80], %121 {strides = array<i32>} : memref<4x8x1xf32, #tpu.memory_space<vmem>>, vector<1x8x1xf32>,
    %c2_81 = arith.constant 2 : index
    %c0_82 = arith.constant 0 : index
    %c0_83 = arith.constant 0 : index
    %122 = vector.load %arg9[%c2_81, %c0_82, %c0_83] : memref<4x8x8xf32, #tpu.memory_space<vmem>>, vector<1x8x8xf32>
    %123 = vector.shape_cast %122 : vector<1x8x8xf32> to vector<8x8xf32>
    %124 = vector.broadcast %109 : vector<8x1xf32> to vector<8x8xf32>
    %125 = arith.mulf %124, %123 : vector<8x8xf32>
    %126 = arith.truncf %112 : vector<8x16xf32> to vector<8x16xbf16>
    %cst_84 = arith.constant dense<0.000000e+00> : vector<8x8xf32>
    %127 = tpu.matmul %126, %99, %cst_84 {dimension_numbers = #tpu.dot_dimension_numbers<[1], [0], [0], [1], [0, 0, 1, 1], [], []>} : vector<8x16xbf16>, vector<16x8xbf16>, vector<8x8xf32> -> vector<8x8xf32>
    %128 = arith.addf %125, %127 : vector<8x8xf32>
    %c2_85 = arith.constant 2 : index
    %c0_86 = arith.constant 0 : index
    %c0_87 = arith.constant 0 : index
    %129 = vector.load %arg9[%c2_85, %c0_86, %c0_87] : memref<4x8x8xf32, #tpu.memory_space<vmem>>, vector<1x8x8xf32>
    %130 = vector.shape_cast %129 : vector<1x8x8xf32> to vector<8x8xf32>
    %131 = vector.shape_cast %128 : vector<8x8xf32> to vector<1x8x8xf32>
    tpu.vector_store %arg9[%c2_85, %c0_86, %c0_87], %131 {strides = array<i32>} : memref<4x8x8xf32, #tpu.memory_space<vmem>>, vector<1x8x8xf32>,
    %c2_88 = arith.constant 2 : index
    %c0_89 = arith.constant 0 : index
    %c0_90 = arith.constant 0 : index
    %132 = vector.load %arg7[%c2_88, %c0_89, %c0_90] : memref<4x8x1xf32, #tpu.memory_space<vmem>>, vector<1x8x1xf32>
    %133 = vector.shape_cast %132 : vector<1x8x1xf32> to vector<8x1xf32>
    %134 = vector.shape_cast %107 : vector<8x1xf32> to vector<1x8x1xf32>
    tpu.vector_store %arg7[%c2_88, %c0_89, %c0_90], %134 {strides = array<i32>} : memref<4x8x1xf32, #tpu.memory_space<vmem>>, vector<1x8x1xf32>,
    %c0_91 = arith.constant 0 : index
    %c0_92 = arith.constant 0 : index
    %c24 = arith.constant 24 : index
    %135 = vector.load %arg3[%c0_91, %c0_92, %c24] : memref<1x8x32xf32, #tpu.memory_space<vmem>>, vector<1x8x8xf32>
    %136 = vector.shape_cast %135 : vector<1x8x8xf32> to vector<8x8xf32>
    %137 = arith.truncf %136 : vector<8x8xf32> to vector<8x8xbf16>
    %c0_93 = arith.constant 0 : index
    %c0_94 = arith.constant 0 : index
    %c24_95 = arith.constant 24 : index
    %138 = vector.load %arg4[%c0_93, %c0_94, %c24_95] : memref<1x16x32xf32, #tpu.memory_space<vmem>>, vector<1x16x8xf32>
    %139 = vector.shape_cast %138 : vector<1x16x8xf32> to vector<16x8xf32>
    %140 = arith.truncf %139 : vector<16x8xf32> to vector<16x8xbf16>
    %c0_96 = arith.constant 0 : index
    %c0_97 = arith.constant 0 : index
    %c24_98 = arith.constant 24 : index
    %141 = vector.load %arg5[%c0_96, %c0_97, %c24_98] : memref<1x16x32xf32, #tpu.memory_space<vmem>>, vector<1x16x8xf32>
    %142 = vector.shape_cast %141 : vector<1x16x8xf32> to vector<16x8xf32>
    %143 = arith.truncf %142 : vector<16x8xf32> to vector<16x8xbf16>
    %cst_99 = arith.constant dense<0.000000e+00> : vector<8x16xf32>
    %144 = tpu.matmul %137, %140, %cst_99 {dimension_numbers = #tpu.dot_dimension_numbers<[1], [1], [0], [0], [0, 0, 1, 0], [], []>} : vector<8x8xbf16>, vector<16x8xbf16>, vector<8x16xf32> -> vector<8x16xf32>
    %cst_100 = arith.constant 0.353553385 : f32
    %145 = vector.broadcast %cst_100 : f32 to vector<8x16xf32>
    %146 = arith.mulf %144, %145 : vector<8x16xf32>
    %c3 = arith.constant 3 : index
    %c0_101 = arith.constant 0 : index
    %c0_102 = arith.constant 0 : index
    %147 = vector.load %arg7[%c3, %c0_101, %c0_102] : memref<4x8x1xf32, #tpu.memory_space<vmem>>, vector<1x8x1xf32>
    %148 = vector.shape_cast %147 : vector<1x8x1xf32> to vector<8x1xf32>
    %cst_103 = arith.constant dense<0xFF800000> : vector<8xf32>
    %149 = vector.multi_reduction <maximumf>, %146, %cst_103 [1] : vector<8x16xf32> to vector<8xf32>
    %150 = vector.shape_cast %149 : vector<8xf32> to vector<8x1xf32>
    %151 = arith.maximumf %148, %150 : vector<8x1xf32>
    %152 = arith.subf %148, %151 : vector<8x1xf32>
    %153 = math.exp %152 : vector<8x1xf32>
    %154 = vector.broadcast %151 : vector<8x1xf32> to vector<8x16xf32>
    %155 = arith.subf %146, %154 : vector<8x16xf32>
    %156 = math.exp %155 : vector<8x16xf32>
    %c3_104 = arith.constant 3 : index
    %c0_105 = arith.constant 0 : index
    %c0_106 = arith.constant 0 : index
    %157 = vector.load %arg8[%c3_104, %c0_105, %c0_106] : memref<4x8x1xf32, #tpu.memory_space<vmem>>, vector<1x8x1xf32>
    %158 = vector.shape_cast %157 : vector<1x8x1xf32> to vector<8x1xf32>
    %159 = arith.mulf %153, %158 : vector<8x1xf32>
    %cst_107 = arith.constant dense<0.000000e+00> : vector<8xf32>
    %160 = vector.multi_reduction <add>, %156, %cst_107 [1] : vector<8x16xf32> to vector<8xf32>
    %161 = vector.shape_cast %160 : vector<8xf32> to vector<8x1xf32>
    %162 = arith.addf %159, %161 : vector<8x1xf32>
    %c3_108 = arith.constant 3 : index
    %c0_109 = arith.constant 0 : index
    %c0_110 = arith.constant 0 : index
    %163 = vector.load %arg8[%c3_108, %c0_109, %c0_110] : memref<4x8x1xf32, #tpu.memory_space<vmem>>, vector<1x8x1xf32>
    %164 = vector.shape_cast %163 : vector<1x8x1xf32> to vector<8x1xf32>
    %165 = vector.shape_cast %162 : vector<8x1xf32> to vector<1x8x1xf32>
    tpu.vector_store %arg8[%c3_108, %c0_109, %c0_110], %165 {strides = array<i32>} : memref<4x8x1xf32, #tpu.memory_space<vmem>>, vector<1x8x1xf32>,
    %c3_111 = arith.constant 3 : index
    %c0_112 = arith.constant 0 : index
    %c0_113 = arith.constant 0 : index
    %166 = vector.load %arg9[%c3_111, %c0_112, %c0_113] : memref<4x8x8xf32, #tpu.memory_space<vmem>>, vector<1x8x8xf32>
    %167 = vector.shape_cast %166 : vector<1x8x8xf32> to vector<8x8xf32>
    %168 = vector.broadcast %153 : vector<8x1xf32> to vector<8x8xf32>
    %169 = arith.mulf %168, %167 : vector<8x8xf32>
    %170 = arith.truncf %156 : vector<8x16xf32> to vector<8x16xbf16>
    %cst_114 = arith.constant dense<0.000000e+00> : vector<8x8xf32>
    %171 = tpu.matmul %170, %143, %cst_114 {dimension_numbers = #tpu.dot_dimension_numbers<[1], [0], [0], [1], [0, 0, 1, 1], [], []>} : vector<8x16xbf16>, vector<16x8xbf16>, vector<8x8xf32> -> vector<8x8xf32>
    %172 = arith.addf %169, %171 : vector<8x8xf32>
    %c3_115 = arith.constant 3 : index
    %c0_116 = arith.constant 0 : index
    %c0_117 = arith.constant 0 : index
    %173 = vector.load %arg9[%c3_115, %c0_116, %c0_117] : memref<4x8x8xf32, #tpu.memory_space<vmem>>, vector<1x8x8xf32>
    %174 = vector.shape_cast %173 : vector<1x8x8xf32> to vector<8x8xf32>
    %175 = vector.shape_cast %172 : vector<8x8xf32> to vector<1x8x8xf32>
    tpu.vector_store %arg9[%c3_115, %c0_116, %c0_117], %175 {strides = array<i32>} : memref<4x8x8xf32, #tpu.memory_space<vmem>>, vector<1x8x8xf32>,
    %c3_118 = arith.constant 3 : index
    %c0_119 = arith.constant 0 : index
    %c0_120 = arith.constant 0 : index
    %176 = vector.load %arg7[%c3_118, %c0_119, %c0_120] : memref<4x8x1xf32, #tpu.memory_space<vmem>>, vector<1x8x1xf32>
    %177 = vector.shape_cast %176 : vector<1x8x1xf32> to vector<8x1xf32>
    %178 = vector.shape_cast %151 : vector<8x1xf32> to vector<1x8x1xf32>
    tpu.vector_store %arg7[%c3_118, %c0_119, %c0_120], %178 {strides = array<i32>} : memref<4x8x1xf32, #tpu.memory_space<vmem>>, vector<1x8x1xf32>,
    %c0_i32_121 = arith.constant 0 : i32
    %179 = arith.cmpi eq, %arg2, %c0_i32_121 : i32
    %180 = arith.extui %179 : i1 to i32
    %c0_i32_122 = arith.constant 0 : i32
    %181 = arith.cmpi ne, %180, %c0_i32_122 : i32
    scf.if %181 {
      %c0_123 = arith.constant 0 : index
      %c0_124 = arith.constant 0 : index
      %c0_125 = arith.constant 0 : index
      %182 = vector.load %arg9[%c0_123, %c0_124, %c0_125] : memref<4x8x8xf32, #tpu.memory_space<vmem>>, vector<1x8x8xf32>
      %183 = vector.shape_cast %182 : vector<1x8x8xf32> to vector<8x8xf32>
      %c0_126 = arith.constant 0 : index
      %c0_127 = arith.constant 0 : index
      %c0_128 = arith.constant 0 : index
      %184 = vector.load %arg8[%c0_126, %c0_127, %c0_128] : memref<4x8x1xf32, #tpu.memory_space<vmem>>, vector<1x8x1xf32>
      %185 = vector.shape_cast %184 : vector<1x8x1xf32> to vector<8x1xf32>
      %186 = vector.broadcast %185 : vector<8x1xf32> to vector<8x8xf32>
      %187 = arith.divf %183, %186 : vector<8x8xf32>
      %c0_129 = arith.constant 0 : index
      %c0_130 = arith.constant 0 : index
      %c0_131 = arith.constant 0 : index
      %188 = vector.load %arg6[%c0_129, %c0_130, %c0_131] : memref<1x8x32xf32, #tpu.memory_space<vmem>>, vector<1x8x8xf32>
      %189 = vector.shape_cast %188 : vector<1x8x8xf32> to vector<8x8xf32>
      %190 = vector.shape_cast %187 : vector<8x8xf32> to vector<1x8x8xf32>
      tpu.vector_store %arg6[%c0_129, %c0_130, %c0_131], %190 {strides = array<i32>} : memref<1x8x32xf32, #tpu.memory_space<vmem>>, vector<1x8x8xf32>,
      %c1_132 = arith.constant 1 : index
      %c0_133 = arith.constant 0 : index
      %c0_134 = arith.constant 0 : index
      %191 = vector.load %arg9[%c1_132, %c0_133, %c0_134] : memref<4x8x8xf32, #tpu.memory_space<vmem>>, vector<1x8x8xf32>
      %192 = vector.shape_cast %191 : vector<1x8x8xf32> to vector<8x8xf32>
      %c1_135 = arith.constant 1 : index
      %c0_136 = arith.constant 0 : index
      %c0_137 = arith.constant 0 : index
      %193 = vector.load %arg8[%c1_135, %c0_136, %c0_137] : memref<4x8x1xf32, #tpu.memory_space<vmem>>, vector<1x8x1xf32>
      %194 = vector.shape_cast %193 : vector<1x8x1xf32> to vector<8x1xf32>
      %195 = vector.broadcast %194 : vector<8x1xf32> to vector<8x8xf32>
      %196 = arith.divf %192, %195 : vector<8x8xf32>
      %c0_138 = arith.constant 0 : index
      %c0_139 = arith.constant 0 : index
      %c8_140 = arith.constant 8 : index
      %197 = vector.load %arg6[%c0_138, %c0_139, %c8_140] : memref<1x8x32xf32, #tpu.memory_space<vmem>>, vector<1x8x8xf32>
      %198 = vector.shape_cast %197 : vector<1x8x8xf32> to vector<8x8xf32>
      %199 = vector.shape_cast %196 : vector<8x8xf32> to vector<1x8x8xf32>
      tpu.vector_store %arg6[%c0_138, %c0_139, %c8_140], %199 {strides = array<i32>} : memref<1x8x32xf32, #tpu.memory_space<vmem>>, vector<1x8x8xf32>,
      %c2_141 = arith.constant 2 : index
      %c0_142 = arith.constant 0 : index
      %c0_143 = arith.constant 0 : index
      %200 = vector.load %arg9[%c2_141, %c0_142, %c0_143] : memref<4x8x8xf32, #tpu.memory_space<vmem>>, vector<1x8x8xf32>
      %201 = vector.shape_cast %200 : vector<1x8x8xf32> to vector<8x8xf32>
      %c2_144 = arith.constant 2 : index
      %c0_145 = arith.constant 0 : index
      %c0_146 = arith.constant 0 : index
      %202 = vector.load %arg8[%c2_144, %c0_145, %c0_146] : memref<4x8x1xf32, #tpu.memory_space<vmem>>, vector<1x8x1xf32>
      %203 = vector.shape_cast %202 : vector<1x8x1xf32> to vector<8x1xf32>
      %204 = vector.broadcast %203 : vector<8x1xf32> to vector<8x8xf32>
      %205 = arith.divf %201, %204 : vector<8x8xf32>
      %c0_147 = arith.constant 0 : index
      %c0_148 = arith.constant 0 : index
      %c16_149 = arith.constant 16 : index
      %206 = vector.load %arg6[%c0_147, %c0_148, %c16_149] : memref<1x8x32xf32, #tpu.memory_space<vmem>>, vector<1x8x8xf32>
      %207 = vector.shape_cast %206 : vector<1x8x8xf32> to vector<8x8xf32>
      %208 = vector.shape_cast %205 : vector<8x8xf32> to vector<1x8x8xf32>
      tpu.vector_store %arg6[%c0_147, %c0_148, %c16_149], %208 {strides = array<i32>} : memref<1x8x32xf32, #tpu.memory_space<vmem>>, vector<1x8x8xf32>,
      %c3_150 = arith.constant 3 : index
      %c0_151 = arith.constant 0 : index
      %c0_152 = arith.constant 0 : index
      %209 = vector.load %arg9[%c3_150, %c0_151, %c0_152] : memref<4x8x8xf32, #tpu.memory_space<vmem>>, vector<1x8x8xf32>
      %210 = vector.shape_cast %209 : vector<1x8x8xf32> to vector<8x8xf32>
      %c3_153 = arith.constant 3 : index
      %c0_154 = arith.constant 0 : index
      %c0_155 = arith.constant 0 : index
      %211 = vector.load %arg8[%c3_153, %c0_154, %c0_155] : memref<4x8x1xf32, #tpu.memory_space<vmem>>, vector<1x8x1xf32>
      %212 = vector.shape_cast %211 : vector<1x8x1xf32> to vector<8x1xf32>
      %213 = vector.broadcast %212 : vector<8x1xf32> to vector<8x8xf32>
      %214 = arith.divf %210, %213 : vector<8x8xf32>
      %c0_156 = arith.constant 0 : index
      %c0_157 = arith.constant 0 : index
      %c24_158 = arith.constant 24 : index
      %215 = vector.load %arg6[%c0_156, %c0_157, %c24_158] : memref<1x8x32xf32, #tpu.memory_space<vmem>>, vector<1x8x8xf32>
      %216 = vector.shape_cast %215 : vector<1x8x8xf32> to vector<8x8xf32>
      %217 = vector.shape_cast %214 : vector<8x8xf32> to vector<1x8x8xf32>
      tpu.vector_store %arg6[%c0_156, %c0_157, %c24_158], %217 {strides = array<i32>} : memref<1x8x32xf32, #tpu.memory_space<vmem>>, vector<1x8x8xf32>,
    } else {
    }
    return
  }
  func.func @transform_0(%arg0: i32, %arg1: i32, %arg2: i32) -> (i32, i32, i32) {
    %c0_i32 = arith.constant 0 : i32
    %c0_i32_0 = arith.constant 0 : i32
    return %arg0, %arg1, %c0_i32 : i32, i32, i32
  }
  func.func @transform_1(%arg0: i32, %arg1: i32, %arg2: i32) -> (i32, i32, i32) {
    %c0_i32 = arith.constant 0 : i32
    %c0_i32_0 = arith.constant 0 : i32
    return %arg0, %arg2, %c0_i32 : i32, i32, i32
  }
  func.func @transform_2(%arg0: i32, %arg1: i32, %arg2: i32) -> (i32, i32, i32) {
    %c0_i32 = arith.constant 0 : i32
    %c0_i32_0 = arith.constant 0 : i32
    return %arg0, %arg2, %c0_i32 : i32, i32, i32
  }
  func.func @transform_3(%arg0: i32, %arg1: i32, %arg2: i32) -> (i32, i32, i32) {
    %c0_i32 = arith.constant 0 : i32
    %c0_i32_0 = arith.constant 0 : i32
    return %arg0, %arg1, %c0_i32 : i32, i32, i32
  }
}

module attributes {stable_mosaic.version = 11 : i64} {
  func.func @_linear_ln_res_kernel(%arg0: i32, %arg1: i32, %arg2: memref<8x64xf32, #tpu.memory_space<vmem>>, %arg3: memref<64x32xbf16, #tpu.memory_space<vmem>>, %arg4: memref<1x32xf32, #tpu.memory_space<vmem>>, %arg5: memref<8x32xf32, #tpu.memory_space<vmem>>, %arg6: memref<1x32xf32, #tpu.memory_space<vmem>>, %arg7: memref<1x32xf32, #tpu.memory_space<vmem>>, %arg8: memref<8x32xf32, #tpu.memory_space<vmem>>) attributes {dimension_semantics = [#tpu.dimension_semantics<parallel>, #tpu.dimension_semantics<arbitrary>], iteration_bounds = array<i64: 2, 1>, scalar_prefetch = 0 : i64, scratch_operands = 0 : i64, tpu.core_type = #tpu.core_type<tc>, window_params = [{transform_indices = @transform_0, window_bounds = array<i64: 8, 64>}, {transform_indices = @transform_1, window_bounds = array<i64: 64, 32>}, {pipeline_mode = #tpu.pipeline_mode<synchronous>, transform_indices = @transform_2, window_bounds = array<i64: 1, 32>}, {transform_indices = @transform_3, window_bounds = array<i64: 8, 32>}, {pipeline_mode = #tpu.pipeline_mode<synchronous>, transform_indices = @transform_4, window_bounds = array<i64: 1, 32>}, {pipeline_mode = #tpu.pipeline_mode<synchronous>, transform_indices = @transform_5, window_bounds = array<i64: 1, 32>}, {transform_indices = @transform_6, window_bounds = array<i64: 8, 32>}]} {
    %c0_i32 = arith.constant 0 : i32
    %0 = arith.cmpi eq, %arg1, %c0_i32 : i32
    %1 = arith.extui %0 : i1 to i32
    %c0_i32_0 = arith.constant 0 : i32
    %2 = arith.cmpi ne, %1, %c0_i32_0 : i32
    scf.if %2 {
      %cst_10 = arith.constant 0.000000e+00 : f32
      %13 = vector.broadcast %cst_10 : f32 to vector<8x32xf32>
      %c0_11 = arith.constant 0 : index
      %c0_12 = arith.constant 0 : index
      %14 = vector.load %arg8[%c0_11, %c0_12] : memref<8x32xf32, #tpu.memory_space<vmem>>, vector<8x32xf32>
      tpu.vector_store %arg8[%c0_11, %c0_12], %13 {strides = array<i32>} : memref<8x32xf32, #tpu.memory_space<vmem>>, vector<8x32xf32>,
    } else {
    }
    %c0 = arith.constant 0 : index
    %c0_1 = arith.constant 0 : index
    %3 = vector.load %arg8[%c0, %c0_1] : memref<8x32xf32, #tpu.memory_space<vmem>>, vector<8x32xf32>
    %c0_2 = arith.constant 0 : index
    %c0_3 = arith.constant 0 : index
    %4 = vector.load %arg2[%c0_2, %c0_3] : memref<8x64xf32, #tpu.memory_space<vmem>>, vector<8x64xf32>
    %5 = arith.truncf %4 : vector<8x64xf32> to vector<8x64xbf16>
    %c0_4 = arith.constant 0 : index
    %c0_5 = arith.constant 0 : index
    %6 = vector.load %arg3[%c0_4, %c0_5] : memref<64x32xbf16, #tpu.memory_space<vmem>>, vector<64x32xbf16>
    %cst = arith.constant dense<0.000000e+00> : vector<8x32xf32>
    %7 = tpu.matmul %5, %6, %cst {dimension_numbers = #tpu.dot_dimension_numbers<[1], [0], [0], [1], [0, 0, 1, 1], [], []>} : vector<8x64xbf16>, vector<64x32xbf16>, vector<8x32xf32> -> vector<8x32xf32>
    %8 = arith.addf %3, %7 : vector<8x32xf32>
    %c0_6 = arith.constant 0 : index
    %c0_7 = arith.constant 0 : index
    %9 = vector.load %arg8[%c0_6, %c0_7] : memref<8x32xf32, #tpu.memory_space<vmem>>, vector<8x32xf32>
    tpu.vector_store %arg8[%c0_6, %c0_7], %8 {strides = array<i32>} : memref<8x32xf32, #tpu.memory_space<vmem>>, vector<8x32xf32>,
    %c0_i32_8 = arith.constant 0 : i32
    %10 = arith.cmpi eq, %arg1, %c0_i32_8 : i32
    %11 = arith.extui %10 : i1 to i32
    %c0_i32_9 = arith.constant 0 : i32
    %12 = arith.cmpi ne, %11, %c0_i32_9 : i32
    scf.if %12 {
      %c0_10 = arith.constant 0 : index
      %c0_11 = arith.constant 0 : index
      %13 = vector.load %arg8[%c0_10, %c0_11] : memref<8x32xf32, #tpu.memory_space<vmem>>, vector<8x32xf32>
      %c0_12 = arith.constant 0 : index
      %c0_13 = arith.constant 0 : index
      %14 = vector.load %arg4[%c0_12, %c0_13] : memref<1x32xf32, #tpu.memory_space<vmem>>, vector<1x32xf32>
      %15 = vector.broadcast %14 : vector<1x32xf32> to vector<8x32xf32>
      %16 = arith.addf %13, %15 : vector<8x32xf32>
      %c0_14 = arith.constant 0 : index
      %c0_15 = arith.constant 0 : index
      %17 = vector.load %arg5[%c0_14, %c0_15] : memref<8x32xf32, #tpu.memory_space<vmem>>, vector<8x32xf32>
      %18 = arith.addf %16, %17 : vector<8x32xf32>
      %cst_16 = arith.constant dense<0.000000e+00> : vector<8xf32>
      %19 = vector.multi_reduction <add>, %18, %cst_16 [1] : vector<8x32xf32> to vector<8xf32>
      %20 = vector.shape_cast %19 : vector<8xf32> to vector<8x1xf32>
      %cst_17 = arith.constant 3.200000e+01 : f32
      %21 = vector.broadcast %cst_17 : f32 to vector<8x1xf32>
      %22 = arith.divf %20, %21 : vector<8x1xf32>
      %23 = vector.broadcast %22 : vector<8x1xf32> to vector<8x32xf32>
      %24 = arith.subf %18, %23 : vector<8x32xf32>
      %25 = arith.mulf %24, %24 : vector<8x32xf32>
      %cst_18 = arith.constant dense<0.000000e+00> : vector<8xf32>
      %26 = vector.multi_reduction <add>, %25, %cst_18 [1] : vector<8x32xf32> to vector<8xf32>
      %27 = vector.shape_cast %26 : vector<8xf32> to vector<8x1xf32>
      %cst_19 = arith.constant 3.200000e+01 : f32
      %28 = vector.broadcast %cst_19 : f32 to vector<8x1xf32>
      %29 = arith.divf %27, %28 : vector<8x1xf32>
      %cst_20 = arith.constant 9.99999974E-6 : f32
      %30 = vector.broadcast %cst_20 : f32 to vector<8x1xf32>
      %31 = arith.addf %29, %30 : vector<8x1xf32>
      %32 = math.rsqrt %31 : vector<8x1xf32>
      %33 = vector.broadcast %32 : vector<8x1xf32> to vector<8x32xf32>
      %34 = arith.mulf %24, %33 : vector<8x32xf32>
      %c0_21 = arith.constant 0 : index
      %c0_22 = arith.constant 0 : index
      %35 = vector.load %arg6[%c0_21, %c0_22] : memref<1x32xf32, #tpu.memory_space<vmem>>, vector<1x32xf32>
      %36 = vector.broadcast %35 : vector<1x32xf32> to vector<8x32xf32>
      %37 = arith.mulf %34, %36 : vector<8x32xf32>
      %c0_23 = arith.constant 0 : index
      %c0_24 = arith.constant 0 : index
      %38 = vector.load %arg7[%c0_23, %c0_24] : memref<1x32xf32, #tpu.memory_space<vmem>>, vector<1x32xf32>
      %39 = vector.broadcast %38 : vector<1x32xf32> to vector<8x32xf32>
      %40 = arith.addf %37, %39 : vector<8x32xf32>
      %c0_25 = arith.constant 0 : index
      %c0_26 = arith.constant 0 : index
      %41 = vector.load %arg8[%c0_25, %c0_26] : memref<8x32xf32, #tpu.memory_space<vmem>>, vector<8x32xf32>
      tpu.vector_store %arg8[%c0_25, %c0_26], %40 {strides = array<i32>} : memref<8x32xf32, #tpu.memory_space<vmem>>, vector<8x32xf32>,
    } else {
    }
    return
  }
  func.func @transform_0(%arg0: i32, %arg1: i32) -> (i32, i32) {
    %c0_i32 = arith.constant 0 : i32
    return %arg0, %arg1 : i32, i32
  }
  func.func @transform_1(%arg0: i32, %arg1: i32) -> (i32, i32) {
    %c0_i32 = arith.constant 0 : i32
    %c0_i32_0 = arith.constant 0 : i32
    return %arg1, %c0_i32 : i32, i32
  }
  func.func @transform_2(%arg0: i32, %arg1: i32) -> (i32, i32) {
    %c0_i32 = arith.constant 0 : i32
    %c0_i32_0 = arith.constant 0 : i32
    %c0_i32_1 = arith.constant 0 : i32
    return %c0_i32, %c0_i32_0 : i32, i32
  }
  func.func @transform_3(%arg0: i32, %arg1: i32) -> (i32, i32) {
    %c0_i32 = arith.constant 0 : i32
    %c0_i32_0 = arith.constant 0 : i32
    return %arg0, %c0_i32 : i32, i32
  }
  func.func @transform_4(%arg0: i32, %arg1: i32) -> (i32, i32) {
    %c0_i32 = arith.constant 0 : i32
    %c0_i32_0 = arith.constant 0 : i32
    %c0_i32_1 = arith.constant 0 : i32
    return %c0_i32, %c0_i32_0 : i32, i32
  }
  func.func @transform_5(%arg0: i32, %arg1: i32) -> (i32, i32) {
    %c0_i32 = arith.constant 0 : i32
    %c0_i32_0 = arith.constant 0 : i32
    %c0_i32_1 = arith.constant 0 : i32
    return %c0_i32, %c0_i32_0 : i32, i32
  }
  func.func @transform_6(%arg0: i32, %arg1: i32) -> (i32, i32) {
    %c0_i32 = arith.constant 0 : i32
    %c0_i32_0 = arith.constant 0 : i32
    return %arg0, %c0_i32 : i32, i32
  }
}

</mosaic_0001>

<bundles_post_ra>
// kernel: decoder_forward.26
= control target key start
LH: loop header
LB: loop body
LE: loop exit
PB: predicated region body
PF: predicated region fallthrough
CT: control target
= control target key end

     0   :  { %vm19_vm0 = vcmask 261120   ;;  %v131_v0 = vmov 0.0   ;;  %vm132_vm1 = vmmov 0   ;;  %s205_s1 = inlined_call_operand.vmem [shape: bf16[32,32], index: 1, kind: input, shape index: {}]   ;;  %s206_s0 = inlined_call_operand.vmem [shape: f32[16,32], index: 0, kind: input, shape index: {}]   ;;  %s207_s3 = inlined_call_operand.vmem [shape: f32[16,32], index: 3, kind: output, shape index: {}]   ;;  %s208_s2 = inlined_call_operand.vmem [shape: f32[1,32], index: 2, kind: input, shape index: {}]  }
   0x1   :  { %119 = vmatprep.subr.bf16.mxu0 %v131_v0  ;;  %v129_v1 = vld [vmem:[%s205_s1 + $0x8] sm:$0xff]   ;;  %123 = vmatprep.mubr.msk.bf16.mxu0 %vm132_vm1, %v131_v0  ;;  %20 = vst.msk [vmem:[%s207_s3] sm:$0xff] %vm19_vm0, %v131_v0  ;;  %21 = vst.msk [vmem:[%s207_s3 + $0x8] sm:$0xff] %vm19_vm0, %v131_v0  ;;  %v130_v2 = vld [vmem:[%s205_s1] sm:$0xff]  }
   0x2   :  { %120 = vmatpush3.bf16.msra.mxu0 %v129_v1  ;;  %v24_v3 = vld [vmem:[%s206_s0] sm:$0xff]  ;;  %v25_v4 = vld [vmem:[%s206_s0 + $0x8] sm:$0xff] }
   0x3   :  { %121 = vmatprep.subr.bf16.mxu0 %v131_v0  ;;  %v26_v5 = vpack.c.bf16 %v25_v4, %v24_v3  ;;  %v115_v14 = vld [vmem:[%s208_s2] ss:$0 sm:$0xff] }
   0x6   :  { %122 = vmatpush3.bf16.msra.mxu0 %v130_v2 }
   0x8   :  { %v22_v6 = vld [vmem:[%s207_s3] sm:$0xff]  ;;  %v23_v10 = vld [vmem:[%s207_s3 + $0x8] sm:$0xff] }
   0x9   :  { %124 = vmatmul.mubr.msk.bf16.vlgmr.msra.gmra.mxu0 %vm19_vm0, %v26_v5 }
  0xc9   :  { %v81_v7 = vpop.f32.mrf.mxu0 }
  0xca   :  { %v88_v8 = vadd.f32 %v81_v7, %v22_v6 }
  0xcb   :  { %v125_v9 = vpop.f32.mrf.mxu0 }
  0xcc   :  { %90 = vst.msk [vmem:[%s207_s3] sm:$0xff] %vm19_vm0, %v88_v8 }
  0xcd   :  { %v84_v11 = vpop.f32.mrf.mxu0 }
  0xce   :  { %v89_v12 = vadd.f32 %v84_v11, %v23_v10 }
  0xcf   :  { %v126_v13 = vpop.f32.mrf.mxu0 }
  0xd0   :  { %91 = vst.msk [vmem:[%s207_s3 + $0x8] sm:$0xff] %vm19_vm0, %v89_v12 }
  0xd3   :  { %v95_v15 = vld [vmem:[%s207_s3] sm:$0xff] }
  0xd4   :  { %v104_v16 = vadd.f32 %v115_v14, %v95_v15 }
  0xd6   :  { %106 = vst.msk [vmem:[%s207_s3] sm:$0xff] %vm19_vm0, %v104_v16 }
  0xd7   :  { %v96_v17 = vld [vmem:[%s207_s3 + $0x8] sm:$0xff] }
  0xd8   :  { %v105_v18 = vadd.f32 %v115_v14, %v96_v17 }
  0xda   :  { %107 = vst.msk [vmem:[%s207_s3 + $0x8] sm:$0xff] %vm19_vm0, %v105_v18 }

// kernel: decoder_forward.28
= control target key start
LH: loop header
LB: loop body
LE: loop exit
PB: predicated region body
PF: predicated region fallthrough
CT: control target
= control target key end

     0   :  { %s637_s21 = smov 0   ;;  %s639_s22 = smov 0   ;;  %s701_s0 = inlined_call_operand.vmem [shape: f32[16,32], index: 0, kind: input, shape index: {}]   ;;  %s702_s1 = inlined_call_operand.vmem [shape: bf16[32,32], index: 1, kind: input, shape index: {}]   ;;  %s703_s2 = inlined_call_operand.vmem [shape: f32[1,32], index: 2, kind: input, shape index: {}]   ;;  %s704_s3 = inlined_call_operand.vmem [shape: f32[16,32], index: 3, kind: input, shape index: {}, may-alias: {3,6}]   ;;  %s705_s4 = inlined_call_operand.vmem [shape: f32[1,32], index: 4, kind: input, shape index: {}]   ;;  %s706_s5 = inlined_call_operand.vmem [shape: f32[1,32], index: 5, kind: input, shape index: {}]   ;;  %s707_s6 = inlined_call_operand.vmem [shape: f32[16,32], index: 6, kind: output, shape index: {}, may-alias: {3,6}]  }
   0x1   :  { %s641_s23 = smov 0  }
   0x2 LB: > { %s28_s24 = sadd.s32 1, %s594_s22  ;;  %p523_p0 = scmp.ge.s32.totalorder %s598_s23, 1  ;;  %s598_s23 = sphi %s641_s23, %s16_s23   ;;  %s594_s22 = sphi %s639_s22, %s709_s22   ;;  %s590_s21 = sphi %s637_s21, %s708_s21  }
   0x3   : > { %p30_p1 = scmp.ge.s32.totalorder %s28_s24, 2  ;;  %p248_p2 = scmp.lt.s32.totalorder %s598_s23, 3 }
   0x5   : > { %s711_s24 = smov (%p30_p1, %s28_s24), 0  ;;  %p249_p3 = pnand %p523_p0, %p248_p2 }
   0x6   : > { %p288_p4 = scmp.lt.s32.totalorder (!%p249_p3), %s590_s21, 1 }
   0x7   : > { %252 = sbr.rel (%p249_p3) target bundleno = 537 (0x219), region = 44 }
   0xc   : > { %v572_v0 = vld [vmem:[%s702_s1 + $0x8] sm:$0xff]   ;;  %v600_v1 = vmov 0.0   ;;  %s713_s21 = smov (!%p288_p4, %s590_s21), 1  ;;  %v573_v2 = vld [vmem:[%s702_s1] sm:$0xff]   ;;  %vm601_vm0 = vmmov 0   ;;  %vm314_vm1 = vcmask 261120  }
   0xd   : > { %538 = vmatprep.subr.bf16.mxu0 %v600_v1  ;;  %542 = vmatprep.mubr.msk.bf16.mxu0 %vm601_vm0, %v600_v1  ;;  %s524_s29 = sshll.u32 %s713_s21, 3  ;;  %v530_v11 = vld [vmem:[%s703_s2] ss:$0 sm:$0xff] }
   0xe   : > { %539 = vmatpush3.bf16.msra.mxu0 %v572_v0  ;;  %s664_s8 = scalar_lea.vmem %s707_s6, %s524_s29  ;;  %s294_s11 = scalar_lea.vmem %s701_s0, %s524_s29  ;;  %v531_v26 = vld [vmem:[%s705_s4] ss:$0 sm:$0xff] }
   0xf   : > { %540 = vmatprep.subr.bf16.mxu0 %v600_v1  ;;  %315 = vst.msk [vmem:[%s664_s8] sm:$0xff] %vm314_vm1, %v600_v1  ;;  %v317_v3 = vld [vmem:[%s294_s11] sm:$0xff]  ;;  %s304_s16 = scalar_lea.vmem %s704_s3, %s524_s29 }
  0x10   : > { %v318_v4 = vpack.c.bf16 %v317_v3, %v317_v3  ;;  %v532_v28 = vld [vmem:[%s706_s5] ss:$0 sm:$0xff] }
  0x12   : > { %541 = vmatpush3.bf16.msra.mxu0 %v573_v2 }
  0x15   : > { %543 = vmatmul.mubr.msk.bf16.vlgmr.msra.gmra.mxu0 %vm314_vm1, %v318_v4 }
  0x16   : > { %v316_v5 = vld [vmem:[%s664_s8] sm:$0xff] }
  0xd5   : > { %v373_v6 = vpop.f32.mrf.mxu0 }
  0xd6   : > { %v379_v7 = vadd.f32 %v373_v6, %v316_v5 }
  0xd7   : > { %v544_v8 = vpop.f32.mrf.mxu0 }
  0xd8   : > { %380 = vst.msk [vmem:[%s664_s8] sm:$0xff] %vm314_vm1, %v379_v7 }
  0xd9   : > { %v376_v9 = vpop.f32.mrf.mxu0 }
  0xdb   : > { %v545_v10 = vpop.f32.mrf.mxu0 }
  0xdf   : > { %v384_v12 = vld [vmem:[%s664_s8] sm:$0xff] }
  0xe0   : > { %v392_v13 = vadd.f32 %v530_v11, %v384_v12  ;;  %v393_v14 = vld [vmem:[%s304_s16] sm:$0xff] }
  0xe2   : > { %v394_v15 = vadd.f32 %v393_v14, %v392_v13 }
  0xe4   : > { %v395_v16 = vsel %vm314_vm1, %v394_v15, 0.0 }
  0xe5   : > { %396 = vadd.xlane.f32.xlu0 %v395_v16 }
 0x16e   : > { %v397_v17 = vpop.xlane.xlu0 %396 }
 0x16f   : > { %v399_v18 = vmul.f32 0.03125, %v397_v17 }
 0x171   : > { %v400_v19 = vsub.f32 %v394_v15, %v399_v18 }
 0x173   : > { %v401_v20 = vmul.f32 %v400_v19, %v400_v19 }
 0x175   : > { %v402_v21 = vsel %vm314_vm1, %v401_v20, 0.0 }
 0x176   : > { %403 = vadd.xlane.f32.xlu0 %v402_v21 }
 0x1ff   : > { %v404_v22 = vpop.xlane.xlu0 %403 }
 0x200   : > { %v405_v23 = vmul.f32 0.03125, %v404_v22 }
 0x202   : > { %v406_v24 = vadd.f32 1e-05, %v405_v23 }
 0x204   : > { %574 = vrsqrt.f32 %v406_v24 }
 0x211   : > { %v575_v25 = vpop.eup %574 }
 0x212   : > { %v408_v27 = vmul.f32 %v575_v25, %v400_v19 }
 0x214   : > { %v416_v29 = vmul.f32 %v531_v26, %v408_v27 }
 0x216   : > { %v424_v30 = vadd.f32 %v532_v28, %v416_v29 }
 0x218   : > { %425 = vst.msk [vmem:[%s664_s8] sm:$0xff] %vm314_vm1, %v424_v30 }
 0x219 PF: > { %s16_s23 = sadd.s32 1, %s598_s23   ;;  %s708_s21 = smov %s594_s22 }
 0x21a   : > { %p13_p5 = scmp.ge.s32.totalorder %s16_s23, 4   ;;  %s709_s22 = smov %s711_s24 }
 0x21c   :  { %15 = sbr.rel (!%p13_p5) target bundleno = 2 (0x2), region = 88 }

// kernel: decoder_forward.30
= control target key start
LH: loop header
LB: loop body
LE: loop exit
PB: predicated region body
PF: predicated region fallthrough
CT: control target
= control target key end

     0   :  { %vm19_vm0 = vcmask 261120   ;;  %v160_v1 = vmov 0.0   ;;  %s276_s1 = inlined_call_operand.vmem [shape: bf16[32,32], index: 1, kind: input, shape index: {}]   ;;  %s277_s0 = inlined_call_operand.vmem [shape: f32[32,32], index: 0, kind: input, shape index: {}]   ;;  %s278_s3 = inlined_call_operand.vmem [shape: f32[32,32], index: 3, kind: output, shape index: {}]   ;;  %s279_s2 = inlined_call_operand.vmem [shape: f32[1,32], index: 2, kind: input, shape index: {}]  }
   0x1   :  { %v158_v0 = vld [vmem:[%s276_s1 + $0x8] sm:$0xff]   ;;  %22 = vst.msk [vmem:[%s278_s3 + $0x10] sm:$0xff] %vm19_vm0, %v160_v1  ;;  %20 = vst.msk [vmem:[%s278_s3] sm:$0xff] %vm19_vm0, %v160_v1  ;;  %v159_v2 = vld [vmem:[%s276_s1] sm:$0xff]  }
   0x2   :  { %21 = vst.msk [vmem:[%s278_s3 + $0x8] sm:$0xff] %vm19_vm0, %v160_v1  ;;  %23 = vst.msk [vmem:[%s278_s3 + $0x18] sm:$0xff] %vm19_vm0, %v160_v1  ;;  %149 = vmatprep.subr.bf16.mxu0 %v158_v0  ;;  %v28_v3 = vld [vmem:[%s277_s0] sm:$0xff]  ;;  %v29_v4 = vld [vmem:[%s277_s0 + $0x8] sm:$0xff] }
   0x3   :  { %150 = vmatpush3.bf16.msra.mxu0 %v158_v0  ;;  %v32_v5 = vpack.c.bf16 %v29_v4, %v28_v3  ;;  %v30_v6 = vld [vmem:[%s277_s0 + $0x10] sm:$0xff]  ;;  %v31_v7 = vld [vmem:[%s277_s0 + $0x18] sm:$0xff]  ;;  %v144_v21 = vld [vmem:[%s279_s2] ss:$0 sm:$0xff] }
   0x4   :  { %151 = vmatprep.subr.bf16.mxu0 %v159_v2  ;;  %v33_v8 = vpack.c.bf16 %v31_v7, %v30_v6 }
   0x5   :  { %153 = vmatprep.mubr.msk.bf16.mxu0 %vm19_vm0, %v32_v5 }
   0x7   :  { %152 = vmatpush3.bf16.msra.mxu0 %v159_v2 }
   0x8   :  { %v26_v9 = vld [vmem:[%s278_s3 + $0x10] sm:$0xff]  ;;  %v24_v11 = vld [vmem:[%s278_s3] sm:$0xff] }
   0x9   :  { %v27_v14 = vld [vmem:[%s278_s3 + $0x18] sm:$0xff]  ;;  %v25_v17 = vld [vmem:[%s278_s3 + $0x8] sm:$0xff] }
   0xa   :  { %154 = vmatmul.mubr.msk.bf16.vlgmr.msra.gmra.mxu0 %vm19_vm0, %v33_v8 }
  0xca   :  { %v155_v10 = vpop.f32.mrf.mxu0 }
  0xcb   :  { %v108_v12 = vadd.f32 %v155_v10, %v26_v9 }
  0xcc   :  { %v91_v13 = vpop.f32.mrf.mxu0 }
  0xcd   :  { %112 = vst.msk [vmem:[%s278_s3 + $0x10] sm:$0xff] %vm19_vm0, %v108_v12  ;;  %v106_v15 = vadd.f32 %v91_v13, %v24_v11 }
  0xce   :  { %v156_v16 = vpop.f32.mrf.mxu0 }
  0xcf   :  { %110 = vst.msk [vmem:[%s278_s3] sm:$0xff] %vm19_vm0, %v106_v15  ;;  %v109_v18 = vadd.f32 %v156_v16, %v27_v14 }
  0xd0   :  { %v94_v19 = vpop.f32.mrf.mxu0 }
  0xd1   :  { %113 = vst.msk [vmem:[%s278_s3 + $0x18] sm:$0xff] %vm19_vm0, %v109_v18  ;;  %v107_v20 = vadd.f32 %v94_v19, %v25_v17 }
  0xd3   :  { %111 = vst.msk [vmem:[%s278_s3 + $0x8] sm:$0xff] %vm19_vm0, %v107_v20 }
  0xd4   :  { %v119_v22 = vld [vmem:[%s278_s3 + $0x10] sm:$0xff] }
  0xd5   :  { %v130_v23 = vadd.f32 %v144_v21, %v119_v22 }
  0xd6   :  { %v117_v24 = vld [vmem:[%s278_s3] sm:$0xff] }
  0xd7   :  { %134 = vst.msk [vmem:[%s278_s3 + $0x10] sm:$0xff] %vm19_vm0, %v130_v23  ;;  %v128_v25 = vadd.f32 %v144_v21, %v117_v24 }
  0xd8   :  { %v120_v26 = vld [vmem:[%s278_s3 + $0x18] sm:$0xff] }
  0xd9   :  { %132 = vst.msk [vmem:[%s278_s3] sm:$0xff] %vm19_vm0, %v128_v25  ;;  %v131_v27 = vadd.f32 %v144_v21, %v120_v26 }
  0xda   :  { %v118_v28 = vld [vmem:[%s278_s3 + $0x8] sm:$0xff] }
  0xdb   :  { %135 = vst.msk [vmem:[%s278_s3 + $0x18] sm:$0xff] %vm19_vm0, %v131_v27  ;;  %v129_v29 = vadd.f32 %v144_v21, %v118_v28 }
  0xdd   :  { %133 = vst.msk [vmem:[%s278_s3 + $0x8] sm:$0xff] %vm19_vm0, %v129_v29 }

// kernel: decoder_forward.27
= control target key start
LH: loop header
LB: loop body
LE: loop exit
PB: predicated region body
PF: predicated region fallthrough
CT: control target
= control target key end

     0   :  { %s1239_s12 = smov 0   ;;  %s1241_s13 = smov 0   ;;  %s1428_s0 = inlined_call_operand.vmem [shape: f32[2,8,32], index: 0, kind: input, shape index: {}]   ;;  %s1429_s1 = inlined_call_operand.vmem [shape: f32[2,8,32], index: 1, kind: input, shape index: {}]   ;;  %s1430_s2 = inlined_call_operand.vmem [shape: f32[2,8,32], index: 2, kind: input, shape index: {}]   ;;  %s1431_s3 = inlined_call_operand.vmem [shape: f32[2,8,32], index: 3, kind: output, shape index: {}]  }
   0x1   :  { %s1243_s14 = smov 0  }
   0x2 LB: > { %s32_s15 = sadd.s32 1, %s1203_s13  ;;  %p1046_p0 = scmp.ge.s32.totalorder %s1207_s14, 1  ;;  %s1207_s14 = sphi %s1243_s14, %s13_s14   ;;  %s1203_s13 = sphi %s1241_s13, %s1433_s13   ;;  %s1199_s12 = sphi %s1239_s12, %s1432_s12  }
   0x3   : > { %p34_p1 = scmp.ge.s32.totalorder %s32_s15, 2  ;;  %p190_p2 = scmp.lt.s32.totalorder %s1207_s14, 3 }
   0x5   : > { %s1435_s15 = smov (%p34_p1, %s32_s15), 0  ;;  %p191_p3 = pnand %p1046_p0, %p190_p2 }
   0x6   : > { %p232_p4 = scmp.lt.s32.totalorder (!%p191_p3), %s1199_s12, 1  ;;  %s1213_s23 = smov (!%p191_p3), 120  }
   0x7   : > { %194 = sbr.rel (%p191_p3) target bundleno = 1415 (0x587), region = 32  ;;  %s1214_s24 = smov (!%p191_p3), 112  }
   0x8   : > { %s1215_s25 = smov (!%p191_p3), 104   ;;  %s1216_s5 = smov (!%p191_p3), 8  }
   0x9   : > { %s1217_s6 = smov (!%p191_p3), 16   ;;  %s1218_s7 = smov (!%p191_p3), 24  }
   0xc   : > { %vm274_vm0 = vcmask 64512   ;;  %v1209_v0 = vmov 0.0   ;;  %vm1210_vm1 = vmmov 0   ;;  %s1437_s12 = smov (!%p232_p4, %s1199_s12), 1  ;;  %vm265_vm2 = vcmask 7168  }
   0xd   : > { %1077 = vmatprep.subr.bf16.mxu0 %v1209_v0  ;;  %275 = vst.msk [vmem:[#allocation4] sm:$0xff] %vm274_vm0, %v1209_v0  ;;  %276 = vst.msk [vmem:[#allocation4 + $0x8] sm:$0xff] %vm274_vm0, %v1209_v0  ;;  %1079 = vmatprep.mubr.msk.bf16.mxu0 %vm1210_vm1, %v1209_v0  ;;  %s1271_s16 = sshll.u32 %s1437_s12, 3  ;;  %v1211_v6 = vmov -1e+30   ;;  %v286_v7 = vlaneseq  ;;  %v1212_v17 = vmov 0  }
   0xe   : > { %277 = vst.msk [vmem:[#allocation4 + $0x10] sm:$0xff] %vm274_vm0, %v1209_v0  ;;  %278 = vst.msk [vmem:[#allocation4 + $0x18] sm:$0xff] %vm274_vm0, %v1209_v0  ;;  %1083 = vmatprep.subr.bf16.mxu1 %v1209_v0  ;;  %1085 = vmatprep.mubr.msk.bf16.mxu1 %vm1210_vm1, %v1209_v0  ;;  %s245_s19 = scalar_lea.vmem %s1429_s1, %s1271_s16  ;;  %s238_s22 = scalar_lea.vmem %s1428_s0, %s1271_s16  ;;  %vm385_vm4 = vcmask 1043456   ;;  %vm899_vm5 = vcmask 130112   ;;  %vm916_vm6 = vcmask 195712   ;;  %vm933_vm7 = vcmask 261312  }
   0xf   : > { %v297_v1 = vld [vmem:[%s245_s19] sm:$0xff]  ;;  %266 = vst.msk [vmem:[#allocation2] sm:$0xff] %vm265_vm2, %v1211_v6  ;;  %267 = vst.msk [vmem:[#allocation2 + $0x8] sm:$0xff] %vm265_vm2, %v1211_v6  ;;  %v1298_v8 = vshrl.u32 %v286_v7, 7  ;;  %v1300_v9 = vand.u32 127, %v286_v7  ;;  %1159 = vset.pattern.permute.xlu0 %v1212_v17  ;;  %1160 = vset.pattern.permute.xlu1 %v1212_v17  ;;  %s252_s28 = scalar_lea.vmem %s1430_s2, %s1271_s16  ;;  %s1410_s4 = scalar_lea.vmem %s1431_s3, %s1271_s16 }
  0x10   : > { %v298_v2 = vpack.c.bf16 %v297_v1, %v297_v1  ;;  %v295_v4 = vld [vmem:[%s238_s22] sm:$0xff]  ;;  %268 = vst.msk [vmem:[#allocation2 + $0x10] sm:$0xff] %vm265_vm2, %v1211_v6  ;;  %269 = vst.msk [vmem:[#allocation2 + $0x18] sm:$0xff] %vm265_vm2, %v1211_v6 }
  0x11   : > { %v296_v5 = vpack.c.bf16 %v295_v4, %v295_v4  ;;  %270 = vst.msk [vmem:[#allocation3] sm:$0xff] %vm265_vm2, %v1209_v0  ;;  %271 = vst.msk [vmem:[#allocation3 + $0x8] sm:$0xff] %vm265_vm2, %v1209_v0  ;;  %vm294_vm3 = vcmp.le.s32.totalorder %v1300_v9, %v1298_v8  ;;  %v299_v22 = vld [vmem:[%s252_s28] sm:$0xff] }
  0x12   : > { %v306_v3 = vsel %vm274_vm0, %v298_v2, 0  ;;  %272 = vst.msk [vmem:[#allocation3 + $0x10] sm:$0xff] %vm265_vm2, %v1209_v0  ;;  %273 = vst.msk [vmem:[#allocation3 + $0x18] sm:$0xff] %vm265_vm2, %v1209_v0  ;;  %442 = vrot.lane.b32.xlu1 %v298_v2, %s1213_s23  ;;  %v1328_v23 = vpack.c.bf16 %v299_v22, %v299_v22 }
  0x13   : > { %1078 = vmatpush3.bf16.xpose.msra.mxu0 %v306_v3 }
  0x14   : > { %1095 = vmatprep.subr.bf16.mxu0 %v1209_v0  ;;  %v387_v24 = vsel %vm385_vm4, %v1328_v23, 0 }
  0x15   : > { %1084 = vmatpush3.bf16.msra.mxu1 %v387_v24 }
  0x16   : > { %439 = vrot.lane.b32.xlu1 %v296_v5, %s1213_s23  ;;  %v1314_v18 = vld [vmem:[#allocation2] sm:$0xff]  ;;  %1089 = vmatprep.subr.bf16.mxu1 %v1209_v0  ;;  %v493_v1 = vld [vmem:[#allocation2 + $0x8] sm:$0xff] }
  0x17   : > { %v785_v9 = vld [vmem:[#allocation2 + $0x18] sm:$0xff] }
  0x1a   : > { %1080 = vmatmul.mubr.msk.bf16.vlgmr.msra.gmra.mxu0 %vm274_vm0, %v296_v5  ;;  %588 = vrot.lane.b32.xlu1 %v298_v2, %s1214_s24 }
  0x1b   : > { %1097 = vmatprep.mubr.msk.bf16.mxu0 %vm1210_vm1, %v1209_v0 }
  0x1e   : > { %585 = vrot.lane.b32.xlu1 %v296_v5, %s1214_s24 }
  0x22   : > { %734 = vrot.lane.b32.xlu1 %v298_v2, %s1215_s25 }
  0x26   : > { %731 = vrot.lane.b32.xlu1 %v296_v5, %s1215_s25  ;;  %v1367_v5 = vld [vmem:[#allocation2 + $0x10] sm:$0xff] }
  0x84   : > { %v443_v28 = vpop.permute.xlu1 %442 }
  0x85   : > { %v448_v31 = vsel %vm274_vm0, %v443_v28, 0 }
  0x88   : > { %v440_v29 = vpop.permute.xlu1 %439 }
  0x8c   : > { %v589_v33 = vpop.permute.xlu1 %588 }
  0x8d   : > { %v594_v35 = vsel %vm274_vm0, %v589_v33, 0 }
  0x90   : > { %v586_v34 = vpop.permute.xlu1 %585 }
  0x94   : > { %v735_v36 = vpop.permute.xlu1 %734 }
  0x95   : > { %v740_v37 = vsel %vm274_vm0, %v735_v36, 0 }
  0x98   : > { %v732_v38 = vpop.permute.xlu1 %731 }
  0xda   : > { %v342_v10 = vpop.f32.mrf.mxu0 }
  0xdb   : > { %v348_v11 = vmul.f32 0.35355338, %v342_v10 }
  0xdc   : > { %v1081_v12 = vpop.f32.mrf.mxu0 }
  0xdd   : > { %v349_v13 = vsel %vm294_vm3, %v348_v11, -1e+30 }
  0xde   : > { %v345_v14 = vpop.f32.mrf.mxu0  ;;  %v351_v15 = vsel %vm274_vm0, %v349_v13, -inf }
  0xdf   : > { %352 = vmax.xlane.f32.xlu0 %v351_v15 }
  0xe0   : > { %v1082_v16 = vpop.f32.mrf.mxu0 }
 0x168   : > { %v353_v19 = vpop.xlane.xlu0 %352 }
 0x169   : > { %v1317_v20 = vmax.f32 %v1314_v18, %v353_v19 }
 0x16b   : > { %v355_v21 = vsub.f32 %v1314_v18, %v1317_v20  ;;  %431 = vst.msk [vmem:[#allocation2] sm:$0xff] %vm265_vm2, %v1317_v20  ;;  %360 = vperm.xlu0 %1159, %v1317_v20   ;;  %v510_v20 = vld [vmem:[#allocation3 + $0x8] sm:$0xff] }
 0x1e6   : > { %v361_v25 = vpop.permute.xlu0 %360 }
 0x1e7   : > { %v363_v26 = vsub.f32 %v349_v13, %v361_v25 }
 0x1e9   : > { %v364_v27 = vmul.f32 1.442695, %v363_v26 }
 0x1eb   : > { %1161 = vpow2.f32 %v364_v27 }
 0x1f8   : > { %v1333_v30 = vpop.eup %1161 }
 0x1f9   : > { %v381_v32 = vpack.c.bf16 %v1333_v30, %v1333_v30  ;;  %v368_v13 = vsel %vm274_vm0, %v1333_v30, 0.0 }
 0x1fb   : > { %1086 = vmatmul.mubr.msk.bf16.vlgmr.msra.gmra.mxu1 %vm274_vm0, %v381_v32 }
 0x1fc   : > { %1090 = vmatpush3.bf16.xpose.msra.mxu1 %v448_v31  ;;  %1091 = vmatprep.mubr.msk.bf16.mxu1 %vm1210_vm1, %v1209_v0 }
 0x1fd   : > { %1101 = vmatprep.subr.bf16.mxu1 %v1209_v0 }
 0x203   : > { %1092 = vmatmul.mubr.msk.bf16.vlgmr.msra.gmra.mxu1 %vm274_vm0, %v440_v29 }
 0x204   : > { %1102 = vmatpush3.bf16.xpose.msra.mxu1 %v594_v35  ;;  %1103 = vmatprep.mubr.msk.bf16.mxu1 %vm1210_vm1, %v1209_v0 }
 0x205   : > { %1113 = vmatprep.subr.bf16.mxu1 %v1209_v0 }
 0x20b   : > { %1104 = vmatmul.mubr.msk.bf16.vlgmr.msra.gmra.mxu1 %vm274_vm0, %v586_v34 }
 0x20c   : > { %1114 = vmatpush3.bf16.xpose.msra.mxu1 %v740_v37  ;;  %1115 = vmatprep.mubr.msk.bf16.mxu1 %vm1210_vm1, %v1209_v0 }
 0x213   : > { %1116 = vmatmul.mubr.msk.bf16.vlgmr.msra.gmra.mxu1 %vm274_vm0, %v732_v38 }
 0x2bb   : > { %v1352_v39 = vpop.f32.mrf.mxu1 }
 0x2bd   : > { %v1087_v40 = vpop.f32.mrf.mxu1 }
 0x2bf   : > { %v426_v41 = vpop.f32.mrf.mxu1 }
 0x2c1   : > { %v1088_v42 = vpop.f32.mrf.mxu1 }
 0x2c3   : > { %v484_v43 = vpop.f32.mrf.mxu1 }
 0x2c4   : > { %v490_v44 = vmul.f32 0.35355338, %v484_v43 }
 0x2c5   : > { %v1093_v45 = vpop.f32.mrf.mxu1 }
 0x2c6   : > { %v491_v46 = vsel %vm294_vm3, %v490_v44, -1e+30  ;;  %v356_v44 = vmul.f32 1.442695, %v355_v21 }
 0x2c7   : > { %v487_v47 = vpop.f32.mrf.mxu1  ;;  %v494_v48 = vsel %vm274_vm0, %v491_v46, -inf }
 0x2c8   : > { %495 = vmax.xlane.f32.xlu1 %v494_v48 }
 0x2c9   : > { %v1094_v49 = vpop.f32.mrf.mxu1 }
 0x2ca   : > { %v366_v49 = vld [vmem:[#allocation3] sm:$0xff] }
 0x2cb   : > { %v630_v50 = vpop.f32.mrf.mxu1 }
 0x2cc   : > { %v636_v51 = vmul.f32 0.35355338, %v630_v50 }
 0x2cd   : > { %v1105_v52 = vpop.f32.mrf.mxu1 }
 0x2ce   : > { %v637_v53 = vsel %vm294_vm3, %v636_v51, -1e+30 }
 0x2cf   : > { %v633_v54 = vpop.f32.mrf.mxu1  ;;  %v640_v55 = vsel %vm274_vm0, %v637_v53, -inf }
 0x2d0   : > { %641 = vmax.xlane.f32.xlu0 %v640_v55  ;;  %v656_v55 = vld [vmem:[#allocation3 + $0x10] sm:$0xff] }
 0x2d1   : > { %v1106_v56 = vpop.f32.mrf.mxu1 }
 0x2d3   : > { %v776_v57 = vpop.f32.mrf.mxu1 }
 0x2d4   : > { %v782_v58 = vmul.f32 0.35355338, %v776_v57 }
 0x2d5   : > { %v1117_v59 = vpop.f32.mrf.mxu1 }
 0x2d6   : > { %v783_v60 = vsel %vm294_vm3, %v782_v58, -1e+30 }
 0x2d7   : > { %v779_v61 = vpop.f32.mrf.mxu1  ;;  %v786_v62 = vsel %vm274_vm0, %v783_v60, -inf }
 0x2d8   : > { %787 = vmax.xlane.f32.xlu1 %v786_v62 }
 0x2d9   : > { %v1118_v63 = vpop.f32.mrf.mxu1 }
 0x351   : > { %v496_v2 = vpop.xlane.xlu1 %495 }
 0x352   : > { %v497_v3 = vmax.f32 %v493_v1, %v496_v2  ;;  %v374_v2 = vld [vmem:[#allocation4] sm:$0xff] }
 0x354   : > { %v498_v4 = vsub.f32 %v493_v1, %v497_v3  ;;  %577 = vst.msk [vmem:[#allocation2 + $0x8] sm:$0xff] %vm265_vm2, %v497_v3  ;;  %503 = vperm.xlu1 %1160, %v497_v3  }
 0x356   : > { %v499_v34 = vmul.f32 1.442695, %v498_v4 }
 0x359   : > { %v642_v6 = vpop.xlane.xlu0 %641 }
 0x35a   : > { %v643_v7 = vmax.f32 %v1367_v5, %v642_v6 }
 0x35c   : > { %v644_v8 = vsub.f32 %v1367_v5, %v643_v7  ;;  %723 = vst.msk [vmem:[#allocation2 + $0x10] sm:$0xff] %vm265_vm2, %v643_v7  ;;  %649 = vperm.xlu0 %1159, %v643_v7  }
 0x361   : > { %v788_v10 = vpop.xlane.xlu1 %787 }
 0x362   : > { %v789_v11 = vmax.f32 %v785_v9, %v788_v10  ;;  %v518_v10 = vld [vmem:[#allocation4 + $0x8] sm:$0xff] }
 0x364   : > { %v790_v12 = vsub.f32 %v785_v9, %v789_v11  ;;  %869 = vst.msk [vmem:[#allocation2 + $0x18] sm:$0xff] %vm265_vm2, %v789_v11  ;;  %795 = vperm.xlu1 %1160, %v789_v11  }
 0x366   : > { %v791_v37 = vmul.f32 1.442695, %v790_v12 }
 0x368   : > { %527 = vrot.lane.b32.xlu1 %v1328_v23, %s1213_s23 }
 0x36c   : > { %673 = vrot.lane.b32.xlu1 %v1328_v23, %s1214_s24 }
 0x370   : > { %819 = vrot.lane.b32.xlu1 %v1328_v23, %s1215_s25 }
 0x394   : > { %369 = vadd.xlane.f32.xlu1 %v368_v13 }
 0x3cf   : > { %v504_v14 = vpop.permute.xlu1 %503 }
 0x3d0   : > { %v506_v15 = vsub.f32 %v491_v46, %v504_v14  ;;  %v645_v46 = vmul.f32 1.442695, %v644_v8 }
 0x3d2   : > { %v507_v16 = vmul.f32 1.442695, %v506_v15  ;;  %v664_v15 = vld [vmem:[#allocation4 + $0x10] sm:$0xff] }
 0x3d4   : > { %1163 = vpow2.f32 %v507_v16 }
 0x3d7   : > { %v650_v17 = vpop.permute.xlu0 %649 }
 0x3d8   : > { %v652_v19 = vsub.f32 %v637_v53, %v650_v17 }
 0x3da   : > { %v653_v22 = vmul.f32 1.442695, %v652_v19 }
 0x3dc   : > { %1165 = vpow2.f32 %v653_v22 }
 0x3df   : > { %v796_v24 = vpop.permute.xlu1 %795 }
 0x3e0   : > { %v798_v25 = vsub.f32 %v783_v60, %v796_v24  ;;  %v802_v60 = vld [vmem:[#allocation3 + $0x18] sm:$0xff] }
 0x3e1   : > { %v1164_v26 = vpop.eup %1163 }
 0x3e2   : > { %v799_v27 = vmul.f32 1.442695, %v798_v25  ;;  %v512_v28 = vsel %vm274_vm0, %v1164_v26, 0.0  ;;  %v525_v30 = vpack.c.bf16 %v1164_v26, %v1164_v26 }
 0x3e3   : > { %513 = vadd.xlane.f32.xlu0 %v512_v28  ;;  %v528_v23 = vpop.permute.xlu1 %527 }
 0x3e4   : > { %1167 = vpow2.f32 %v799_v27  ;;  %v533_v29 = vsel %vm385_vm4, %v528_v23, 0  ;;  %v810_v23 = vld [vmem:[#allocation4 + $0x18] sm:$0xff] }
 0x3e5   : > { %1096 = vmatpush3.bf16.msra.mxu0 %v533_v29  ;;  %1169 = vpow2.f32 %v499_v34 }
 0x3e6   : > { %1107 = vmatprep.subr.bf16.mxu0 %v1209_v0  ;;  %1171 = vpow2.f32 %v791_v37 }
 0x3e7   : > { %v674_v31 = vpop.permute.xlu1 %673  ;;  %1173 = vpow2.f32 %v356_v44 }
 0x3e8   : > { %1098 = vmatmul.mubr.msk.bf16.vlgmr.msra.gmra.mxu0 %vm274_vm0, %v525_v30  ;;  %v679_v32 = vsel %vm385_vm4, %v674_v31, 0  ;;  %1175 = vpow2.f32 %v645_v46 }
 0x3e9   : > { %v1166_v33 = vpop.eup %1165  ;;  %1108 = vmatpush3.bf16.msra.mxu0 %v679_v32  ;;  %1109 = vmatprep.mubr.msk.bf16.mxu0 %vm1210_vm1, %v1209_v0 }
 0x3ea   : > { %v658_v35 = vsel %vm274_vm0, %v1166_v33, 0.0  ;;  %1119 = vmatprep.subr.bf16.mxu0 %v1209_v0  ;;  %v671_v38 = vpack.c.bf16 %v1166_v33, %v1166_v33 }
 0x3eb   : > { %659 = vadd.xlane.f32.xlu1 %v658_v35  ;;  %v820_v36 = vpop.permute.xlu1 %819 }
 0x3ec   : > { %v825_v40 = vsel %vm385_vm4, %v820_v36, 0 }
 0x3f0   : > { %1110 = vmatmul.mubr.msk.bf16.vlgmr.msra.gmra.mxu0 %vm274_vm0, %v671_v38 }
 0x3f1   : > { %v1168_v41 = vpop.eup %1167  ;;  %1120 = vmatpush3.bf16.msra.mxu0 %v825_v40  ;;  %1121 = vmatprep.mubr.msk.bf16.mxu0 %vm1210_vm1, %v1209_v0 }
 0x3f2   : > { %v804_v42 = vsel %vm274_vm0, %v1168_v41, 0.0  ;;  %v817_v43 = vpack.c.bf16 %v1168_v41, %v1168_v41  ;;  %v1170_v45 = vpop.eup %1169 }
 0x3f3   : > { %805 = vadd.xlane.f32.xlu0 %v804_v42  ;;  %v1172_v47 = vpop.eup %1171  ;;  %v511_v21 = vmul.f32 %v1170_v45, %v510_v20 }
 0x3f4   : > { %v1174_v48 = vpop.eup %1173  ;;  %v803_v61 = vmul.f32 %v1172_v47, %v802_v60 }
 0x3f5   : > { %v1176_v0 = vpop.eup %1175  ;;  %v367_v50 = vmul.f32 %v1174_v48, %v366_v49 }
 0x3f6   : > { %v657_v56 = vmul.f32 %v1176_v0, %v656_v55 }
 0x3f8   : > { %1122 = vmatmul.mubr.msk.bf16.vlgmr.msra.gmra.mxu0 %vm274_vm0, %v817_v43 }
 0x3fc   : > { %521 = vperm.xlu1 %1160, %v1170_v45  }
 0x400   : > { %813 = vperm.xlu1 %1160, %v1172_v47  }
 0x409   : > { %377 = vperm.xlu0 %1159, %v1174_v48  }
 0x40d   : > { %667 = vperm.xlu0 %1159, %v1176_v0  }
 0x41d   : > { %v370_v51 = vpop.xlane.xlu1 %369 }
 0x41e   : > { %v371_v52 = vadd.f32 %v370_v51, %v367_v50 }
 0x420   : > { %373 = vst.msk [vmem:[#allocation3] sm:$0xff] %vm265_vm2, %v371_v52 }
 0x427   : > { %v874_v18 = vld [vmem:[#allocation3] sm:$0xff] }
 0x428   : > { %877 = vperm.xlu1 %1160, %v874_v18  }
 0x46c   : > { %v514_v53 = vpop.xlane.xlu0 %513 }
 0x46d   : > { %v515_v54 = vadd.f32 %v514_v53, %v511_v21 }
 0x46f   : > { %516 = vst.msk [vmem:[#allocation3 + $0x8] sm:$0xff] %vm265_vm2, %v515_v54 }
 0x474   : > { %v660_v57 = vpop.xlane.xlu1 %659 }
 0x475   : > { %v661_v58 = vadd.f32 %v660_v57, %v657_v56 }
 0x476   : > { %v887_v59 = vld [vmem:[#allocation3 + $0x8] sm:$0xff] }
 0x477   : > { %662 = vst.msk [vmem:[#allocation3 + $0x10] sm:$0xff] %vm265_vm2, %v661_v58  ;;  %890 = vperm.xlu0 %1159, %v887_v59  }
 0x478   : > { %v522_v7 = vpop.permute.xlu1 %521 }
 0x479   : > { %v524_v11 = vmul.f32 %v522_v7, %v518_v10 }
 0x47c   : > { %v806_v62 = vpop.xlane.xlu0 %805  ;;  %v814_v8 = vpop.permute.xlu1 %813 }
 0x47d   : > { %v807_v63 = vadd.f32 %v806_v62, %v803_v61  ;;  %v816_v31 = vmul.f32 %v814_v8, %v810_v23 }
 0x47e   : > { %v904_v1 = vld [vmem:[#allocation3 + $0x10] sm:$0xff] }
 0x47f   : > { %808 = vst.msk [vmem:[#allocation3 + $0x18] sm:$0xff] %vm265_vm2, %v807_v63  ;;  %907 = vperm.xlu0 %1159, %v904_v1  }
 0x484   : > { %v378_v3 = vpop.permute.xlu0 %377 }
 0x485   : > { %v380_v4 = vmul.f32 %v378_v3, %v374_v2 }
 0x486   : > { %v921_v5 = vld [vmem:[#allocation3 + $0x18] sm:$0xff] }
 0x487   : > { %v429_v6 = vadd.f32 %v1352_v39, %v380_v4  ;;  %924 = vperm.xlu1 %1160, %v921_v5  }
 0x488   : > { %v668_v16 = vpop.permute.xlu0 %667 }
 0x489   : > { %430 = vst.msk [vmem:[#allocation4] sm:$0xff] %vm274_vm0, %v429_v6  ;;  %v670_v39 = vmul.f32 %v668_v16, %v664_v15 }
 0x490   : > { %v873_v26 = vld [vmem:[#allocation4] sm:$0xff] }
 0x4a3   : > { %v878_v9 = vpop.permute.xlu1 %877 }
 0x4a4   : > { %1177 = vrcp.f32 %v878_v9 }
 0x4a8   : > { %v569_v12 = vpop.f32.mrf.mxu0 }
 0x4a9   : > { %v575_v13 = vadd.f32 %v569_v12, %v524_v11 }
 0x4aa   : > { %v1099_v14 = vpop.f32.mrf.mxu0 }
 0x4ab   : > { %576 = vst.msk [vmem:[#allocation4 + $0x8] sm:$0xff] %vm274_vm0, %v575_v13 }
 0x4ac   : > { %v572_v17 = vpop.f32.mrf.mxu0 }
 0x4ae   : > { %v1100_v19 = vpop.f32.mrf.mxu0 }
 0x4b0   : > { %v715_v22 = vpop.f32.mrf.mxu0 }
 0x4b1   : > { %v1178_v24 = vpop.eup %1177  ;;  %v721_v25 = vadd.f32 %v715_v22, %v670_v39 }
 0x4b2   : > { %v1111_v27 = vpop.f32.mrf.mxu0  ;;  %v881_v28 = vmul.f32 %v1178_v24, %v873_v26  ;;  %v885_v41 = vld [vmem:[#allocation4 + $0x8] sm:$0xff] }
 0x4b3   : > { %722 = vst.msk [vmem:[#allocation4 + $0x10] sm:$0xff] %vm274_vm0, %v721_v25 }
 0x4b4   : > { %v718_v29 = vpop.f32.mrf.mxu0  ;;  %883 = vst.msk [vmem:[%s1410_s4] sm:$0xff] %vm274_vm0, %v881_v28 }
 0x4b6   : > { %v1112_v30 = vpop.f32.mrf.mxu0 }
 0x4b8   : > { %v861_v32 = vpop.f32.mrf.mxu0 }
 0x4b9   : > { %v867_v33 = vadd.f32 %v861_v32, %v816_v31 }
 0x4ba   : > { %v1123_v34 = vpop.f32.mrf.mxu0  ;;  %v902_v45 = vld [vmem:[#allocation4 + $0x10] sm:$0xff] }
 0x4bb   : > { %868 = vst.msk [vmem:[#allocation4 + $0x18] sm:$0xff] %vm274_vm0, %v867_v33 }
 0x4bc   : > { %v864_v35 = vpop.f32.mrf.mxu0 }
 0x4be   : > { %v1124_v36 = vpop.f32.mrf.mxu0 }
 0x4c2   : > { %v919_v48 = vld [vmem:[#allocation4 + $0x18] sm:$0xff] }
 0x4f2   : > { %v891_v37 = vpop.permute.xlu0 %890 }
 0x4f3   : > { %1179 = vrcp.f32 %v891_v37 }
 0x4fa   : > { %v908_v38 = vpop.permute.xlu0 %907 }
 0x4fb   : > { %1181 = vrcp.f32 %v908_v38 }
 0x500   : > { %v1180_v40 = vpop.eup %1179 }
 0x501   : > { %v894_v42 = vmul.f32 %v1180_v40, %v885_v41 }
 0x502   : > { %v925_v43 = vpop.permute.xlu1 %924 }
 0x503   : > { %1183 = vrcp.f32 %v925_v43  ;;  %896 = vrot.lane.b32.xlu1 %v894_v42, %s1216_s5 }
 0x508   : > { %v1182_v44 = vpop.eup %1181 }
 0x509   : > { %v911_v46 = vmul.f32 %v1182_v44, %v902_v45 }
 0x50b   : > { %913 = vrot.lane.b32.xlu0 %v911_v46, %s1217_s6 }
 0x510   : > { %v1184_v47 = vpop.eup %1183 }
 0x511   : > { %v928_v0 = vmul.f32 %v1184_v47, %v919_v48 }
 0x513   : > { %930 = vrot.lane.b32.xlu1 %v928_v0, %s1218_s7 }
 0x575   : > { %v897_v49 = vpop.permute.xlu1 %896 }
 0x576   : > { %900 = vst.msk [vmem:[%s1410_s4] sm:$0xff] %vm899_vm5, %v897_v49 }
 0x57d   : > { %v914_v50 = vpop.permute.xlu0 %913 }
 0x57e   : > { %917 = vst.msk [vmem:[%s1410_s4] sm:$0xff] %vm916_vm6, %v914_v50 }
 0x585   : > { %v931_v51 = vpop.permute.xlu1 %930 }
 0x586   : > { %934 = vst.msk [vmem:[%s1410_s4] sm:$0xff] %vm933_vm7, %v931_v51 }
 0x587 PF: > { %s13_s14 = sadd.s32 1, %s1207_s14   ;;  %s1432_s12 = smov %s1203_s13 }
 0x588   : > { %p10_p5 = scmp.ge.s32.totalorder %s13_s14, 4   ;;  %s1433_s13 = smov %s1435_s15 }
 0x58a   :  { %12 = sbr.rel (!%p10_p5) target bundleno = 2 (0x2), region = 95 }

// kernel: decoder_forward.34
= control target key start
LH: loop header
LB: loop body
LE: loop exit
PB: predicated region body
PF: predicated region fallthrough
CT: control target
= control target key end

     0   :  { %vm19_vm0 = vcmask 523264   ;;  %v134_v0 = vmov 0.0   ;;  %vm135_vm1 = vmmov 0   ;;  %vm43_vm2 = vcmask 261120   ;;  %s207_s3 = inlined_call_operand.vmem [shape: f32[16,64], index: 3, kind: output, shape index: {}]   ;;  %s208_s1 = inlined_call_operand.vmem [shape: bf16[32,64], index: 1, kind: input, shape index: {}]   ;;  %s209_s0 = inlined_call_operand.vmem [shape: f32[16,32], index: 0, kind: input, shape index: {}]   ;;  %s210_s2 = inlined_call_operand.vmem [shape: f32[1,64], index: 2, kind: input, shape index: {}]  }
   0x1   :  { %20 = vst.msk [vmem:[%s207_s3] sm:$0xff] %vm19_vm0, %v134_v0  ;;  %21 = vst.msk [vmem:[%s207_s3 + $0x8] sm:$0xff] %vm19_vm0, %v134_v0  ;;  %122 = vmatprep.subr.bf16.mxu0 %v134_v0  ;;  %v132_v1 = vld [vmem:[%s208_s1 + $0x8] sm:$0xff]   ;;  %126 = vmatprep.mubr.msk.bf16.mxu0 %vm135_vm1, %v134_v0  ;;  %v133_v2 = vld [vmem:[%s208_s1] sm:$0xff]  }
   0x2   :  { %123 = vmatpush3.bf16.msra.mxu0 %v132_v1  ;;  %v24_v3 = vld [vmem:[%s209_s0] sm:$0xff]  ;;  %v25_v4 = vld [vmem:[%s209_s0 + $0x8] sm:$0xff] }
   0x3   :  { %124 = vmatprep.subr.bf16.mxu0 %v134_v0  ;;  %v26_v5 = vpack.c.bf16 %v25_v4, %v24_v3  ;;  %v118_v14 = vld [vmem:[%s210_s2] ss:$0 sm:$0xff] }
   0x6   :  { %125 = vmatpush3.bf16.msra.mxu0 %v133_v2 }
   0x8   :  { %v22_v6 = vld [vmem:[%s207_s3] sm:$0xff]  ;;  %v23_v10 = vld [vmem:[%s207_s3 + $0x8] sm:$0xff] }
   0x9   :  { %127 = vmatmul.mubr.msk.bf16.vlgmr.msra.gmra.mxu0 %vm43_vm2, %v26_v5 }
  0xc9   :  { %v81_v7 = vpop.f32.mrf.mxu0 }
  0xca   :  { %v88_v8 = vadd.f32 %v81_v7, %v22_v6 }
  0xcb   :  { %v128_v9 = vpop.f32.mrf.mxu0 }
  0xcc   :  { %91 = vst.msk [vmem:[%s207_s3] sm:$0xff] %vm19_vm0, %v88_v8 }
  0xcd   :  { %v84_v11 = vpop.f32.mrf.mxu0 }
  0xce   :  { %v89_v12 = vadd.f32 %v84_v11, %v23_v10 }
  0xcf   :  { %v129_v13 = vpop.f32.mrf.mxu0 }
  0xd0   :  { %92 = vst.msk [vmem:[%s207_s3 + $0x8] sm:$0xff] %vm19_vm0, %v89_v12 }
  0xd3   :  { %v96_v15 = vld [vmem:[%s207_s3] sm:$0xff] }
  0xd4   :  { %v105_v16 = vadd.f32 %v118_v14, %v96_v15 }
  0xd6   :  { %v107_v17 = vmax.f32 %v105_v16, 0.0 }
  0xd7   :  { %v97_v18 = vld [vmem:[%s207_s3 + $0x8] sm:$0xff] }
  0xd8   :  { %109 = vst.msk [vmem:[%s207_s3] sm:$0xff] %vm19_vm0, %v107_v17  ;;  %v106_v19 = vadd.f32 %v118_v14, %v97_v18 }
  0xda   :  { %v108_v20 = vmax.f32 %v106_v19, 0.0 }
  0xdc   :  { %110 = vst.msk [vmem:[%s207_s3 + $0x8] sm:$0xff] %vm19_vm0, %v108_v20 }

// kernel: decoder_forward.32
= control target key start
LH: loop header
LB: loop body
LE: loop exit
PB: predicated region body
PF: predicated region fallthrough
CT: control target
= control target key end

     0   :  { %s1237_s12 = smov 0   ;;  %s1239_s13 = smov 0   ;;  %s1406_s0 = inlined_call_operand.vmem [shape: f32[2,8,32], index: 0, kind: input, shape index: {}]   ;;  %s1407_s1 = inlined_call_operand.vmem [shape: f32[2,16,32], index: 1, kind: input, shape index: {}]   ;;  %s1408_s2 = inlined_call_operand.vmem [shape: f32[2,16,32], index: 2, kind: input, shape index: {}]   ;;  %s1409_s3 = inlined_call_operand.vmem [shape: f32[2,8,32], index: 3, kind: output, shape index: {}]  }
   0x1   :  { %s1241_s14 = smov 0  }
   0x2 LB: > { %s32_s15 = sadd.s32 1, %s1201_s13  ;;  %p1040_p0 = scmp.ge.s32.totalorder %s1205_s14, 1  ;;  %s1205_s14 = sphi %s1241_s14, %s13_s14   ;;  %s1201_s13 = sphi %s1239_s13, %s1411_s13   ;;  %s1197_s12 = sphi %s1237_s12, %s1410_s12  }
   0x3   : > { %p34_p1 = scmp.ge.s32.totalorder %s32_s15, 2  ;;  %p196_p2 = scmp.lt.s32.totalorder %s1205_s14, 3 }
   0x5   : > { %s1413_s15 = smov (%p34_p1, %s32_s15), 0  ;;  %p197_p3 = pnand %p1040_p0, %p196_p2 }
   0x6   : > { %p242_p4 = scmp.lt.s32.totalorder (!%p197_p3), %s1197_s12, 1  ;;  %s1211_s24 = smov (!%p197_p3), 120  }
   0x7   : > { %200 = sbr.rel (%p197_p3) target bundleno = 1413 (0x585), region = 32  ;;  %s1212_s25 = smov (!%p197_p3), 112  }
   0x8   : > { %s1213_s26 = smov (!%p197_p3), 104   ;;  %s1214_s6 = smov (!%p197_p3), 8  }
   0x9   : > { %s1215_s7 = smov (!%p197_p3), 16   ;;  %s1216_s8 = smov (!%p197_p3), 24  }
   0xc   : > { %vm290_vm0 = vcmask 64512   ;;  %v1207_v0 = vmov 0.0   ;;  %vm1208_vm1 = vmmov 0   ;;  %s1415_s12 = smov (!%p242_p4, %s1197_s12), 1  ;;  %vm281_vm2 = vcmask 7168  }
   0xd   : > { %1075 = vmatprep.subr.bf16.mxu0 %v1207_v0  ;;  %291 = vst.msk [vmem:[#allocation4] sm:$0xff] %vm290_vm0, %v1207_v0  ;;  %292 = vst.msk [vmem:[#allocation4 + $0x8] sm:$0xff] %vm290_vm0, %v1207_v0  ;;  %1077 = vmatprep.mubr.msk.bf16.mxu0 %vm1208_vm1, %v1207_v0  ;;  %s1057_s16 = sshll.u32 %s1415_s12, 4  ;;  %s1041_s17 = sshll.u32 %s1415_s12, 3  ;;  %v1209_v7 = vmov -1e+30  }
   0xe   : > { %293 = vst.msk [vmem:[#allocation4 + $0x10] sm:$0xff] %vm290_vm0, %v1207_v0  ;;  %294 = vst.msk [vmem:[#allocation4 + $0x18] sm:$0xff] %vm290_vm0, %v1207_v0  ;;  %1081 = vmatprep.subr.bf16.mxu1 %v1207_v0  ;;  %1083 = vmatprep.mubr.msk.bf16.mxu1 %vm1208_vm1, %v1207_v0  ;;  %s257_s20 = scalar_lea.vmem %s1407_s1, %s1057_s16  ;;  %s248_s23 = scalar_lea.vmem %s1406_s0, %s1041_s17  ;;  %vm352_vm3 = vcmask 130048   ;;  %v1210_v14 = vmov 0   ;;  %vm891_vm4 = vcmask 130112   ;;  %vm906_vm5 = vcmask 195712  }
   0xf   : > { %v297_v1 = vld [vmem:[%s257_s20] sm:$0xff]  ;;  %v298_v2 = vld [vmem:[%s257_s20 + $0x8] sm:$0xff]  ;;  %282 = vst.msk [vmem:[#allocation2] sm:$0xff] %vm281_vm2, %v1209_v7  ;;  %283 = vst.msk [vmem:[#allocation2 + $0x8] sm:$0xff] %vm281_vm2, %v1209_v7  ;;  %1157 = vset.pattern.permute.xlu0 %v1210_v14  ;;  %1158 = vset.pattern.permute.xlu1 %v1210_v14  ;;  %s267_s29 = scalar_lea.vmem %s1408_s2, %s1057_s16  ;;  %s1388_s5 = scalar_lea.vmem %s1409_s3, %s1041_s17  ;;  %vm921_vm6 = vcmask 261312  }
  0x10   : > { %v299_v3 = vpack.c.bf16 %v298_v2, %v297_v1  ;;  %v295_v5 = vld [vmem:[%s248_s23] sm:$0xff]  ;;  %284 = vst.msk [vmem:[#allocation2 + $0x10] sm:$0xff] %vm281_vm2, %v1209_v7  ;;  %285 = vst.msk [vmem:[#allocation2 + $0x18] sm:$0xff] %vm281_vm2, %v1209_v7  ;;  %v301_v20 = vld [vmem:[%s267_s29 + $0x8] sm:$0xff] }
  0x11   : > { %v296_v6 = vpack.c.bf16 %v295_v5, %v295_v5  ;;  %286 = vst.msk [vmem:[#allocation3] sm:$0xff] %vm281_vm2, %v1207_v0  ;;  %287 = vst.msk [vmem:[#allocation3 + $0x8] sm:$0xff] %vm281_vm2, %v1207_v0  ;;  %v300_v19 = vld [vmem:[%s267_s29] sm:$0xff] }
  0x12   : > { %v308_v4 = vsel %vm290_vm0, %v299_v3, 0  ;;  %288 = vst.msk [vmem:[#allocation3 + $0x10] sm:$0xff] %vm281_vm2, %v1207_v0  ;;  %289 = vst.msk [vmem:[#allocation3 + $0x18] sm:$0xff] %vm281_vm2, %v1207_v0  ;;  %442 = vrot.lane.b32.xlu1 %v299_v3, %s1211_s24  ;;  %v1322_v21 = vpack.c.bf16 %v301_v20, %v300_v19 }
  0x13   : > { %1076 = vmatpush3.bf16.xpose.msra.mxu0 %v308_v4 }
  0x14   : > { %1093 = vmatprep.subr.bf16.mxu0 %v1207_v0  ;;  %1082 = vmatpush3.bf16.msra.mxu1 %v1322_v21 }
  0x15   : > { %1087 = vmatprep.subr.bf16.mxu1 %v1207_v0 }
  0x16   : > { %439 = vrot.lane.b32.xlu1 %v296_v6, %s1211_s24  ;;  %v1307_v15 = vld [vmem:[#allocation2] sm:$0xff]  ;;  %v492_v58 = vld [vmem:[#allocation2 + $0x8] sm:$0xff] }
  0x17   : > { %v637_v62 = vld [vmem:[#allocation2 + $0x10] sm:$0xff] }
  0x1a   : > { %1078 = vmatmul.mubr.msk.bf16.vlgmr.msra.gmra.mxu0 %vm290_vm0, %v296_v6  ;;  %587 = vrot.lane.b32.xlu1 %v299_v3, %s1212_s25 }
  0x1b   : > { %1095 = vmatprep.mubr.msk.bf16.mxu0 %vm1208_vm1, %v1207_v0 }
  0x1e   : > { %584 = vrot.lane.b32.xlu1 %v296_v6, %s1212_s25 }
  0x22   : > { %732 = vrot.lane.b32.xlu1 %v299_v3, %s1213_s26  ;;  %v782_v3 = vld [vmem:[#allocation2 + $0x18] sm:$0xff] }
  0x26   : > { %729 = vrot.lane.b32.xlu1 %v296_v6, %s1213_s26 }
  0x84   : > { %v443_v25 = vpop.permute.xlu1 %442 }
  0x85   : > { %v448_v28 = vsel %vm290_vm0, %v443_v25, 0 }
  0x88   : > { %v440_v26 = vpop.permute.xlu1 %439 }
  0x8c   : > { %v588_v30 = vpop.permute.xlu1 %587 }
  0x8d   : > { %v593_v32 = vsel %vm290_vm0, %v588_v30, 0 }
  0x90   : > { %v585_v31 = vpop.permute.xlu1 %584 }
  0x94   : > { %v733_v33 = vpop.permute.xlu1 %732 }
  0x95   : > { %v738_v34 = vsel %vm290_vm0, %v733_v33, 0 }
  0x98   : > { %v730_v35 = vpop.permute.xlu1 %729 }
  0xda   : > { %v344_v8 = vpop.f32.mrf.mxu0 }
  0xdb   : > { %v350_v9 = vmul.f32 0.35355338, %v344_v8 }
  0xdc   : > { %v1079_v10 = vpop.f32.mrf.mxu0 }
  0xdd   : > { %v353_v11 = vsel %vm352_vm3, %v350_v9, -inf }
  0xde   : > { %354 = vmax.xlane.f32.xlu0 %v353_v11  ;;  %v347_v12 = vpop.f32.mrf.mxu0 }
  0xe0   : > { %v1080_v13 = vpop.f32.mrf.mxu0 }
 0x167   : > { %v355_v16 = vpop.xlane.xlu0 %354 }
 0x168   : > { %v1310_v17 = vmax.f32 %v1307_v15, %v355_v16 }
 0x16a   : > { %v357_v18 = vsub.f32 %v1307_v15, %v1310_v17  ;;  %429 = vst.msk [vmem:[#allocation2] sm:$0xff] %vm281_vm2, %v1310_v17  ;;  %362 = vperm.xlu0 %1157, %v1310_v17   ;;  %v509_v17 = vld [vmem:[#allocation3 + $0x8] sm:$0xff] }
 0x1e5   : > { %v363_v22 = vpop.permute.xlu0 %362 }
 0x1e6   : > { %v365_v23 = vsub.f32 %v350_v9, %v363_v22 }
 0x1e8   : > { %v366_v24 = vmul.f32 1.442695, %v365_v23 }
 0x1ea   : > { %1159 = vpow2.f32 %v366_v24 }
 0x1f7   : > { %v1326_v27 = vpop.eup %1159 }
 0x1f8   : > { %v383_v29 = vpack.c.bf16 %v1326_v27, %v1326_v27  ;;  %v370_v7 = vsel %vm352_vm3, %v1326_v27, 0.0 }
 0x1fa   : > { %1084 = vmatmul.mubr.msk.bf16.vlgmr.msra.gmra.mxu1 %vm352_vm3, %v383_v29 }
 0x1fb   : > { %1088 = vmatpush3.bf16.xpose.msra.mxu1 %v448_v28  ;;  %1089 = vmatprep.mubr.msk.bf16.mxu1 %vm1208_vm1, %v1207_v0 }
 0x1fc   : > { %1099 = vmatprep.subr.bf16.mxu1 %v1207_v0 }
 0x202   : > { %1090 = vmatmul.mubr.msk.bf16.vlgmr.msra.gmra.mxu1 %vm290_vm0, %v440_v26 }
 0x203   : > { %1100 = vmatpush3.bf16.xpose.msra.mxu1 %v593_v32  ;;  %1101 = vmatprep.mubr.msk.bf16.mxu1 %vm1208_vm1, %v1207_v0 }
 0x204   : > { %1111 = vmatprep.subr.bf16.mxu1 %v1207_v0 }
 0x20a   : > { %1102 = vmatmul.mubr.msk.bf16.vlgmr.msra.gmra.mxu1 %vm290_vm0, %v585_v31 }
 0x20b   : > { %1112 = vmatpush3.bf16.xpose.msra.mxu1 %v738_v34  ;;  %1113 = vmatprep.mubr.msk.bf16.mxu1 %vm1208_vm1, %v1207_v0  ;;  %v358_v34 = vmul.f32 1.442695, %v357_v18 }
 0x212   : > { %1114 = vmatmul.mubr.msk.bf16.vlgmr.msra.gmra.mxu1 %vm290_vm0, %v730_v35 }
 0x2ba   : > { %v1345_v36 = vpop.f32.mrf.mxu1 }
 0x2bc   : > { %v1085_v37 = vpop.f32.mrf.mxu1 }
 0x2be   : > { %v424_v38 = vpop.f32.mrf.mxu1 }
 0x2c0   : > { %v1086_v39 = vpop.f32.mrf.mxu1 }
 0x2c2   : > { %v484_v40 = vpop.f32.mrf.mxu1 }
 0x2c3   : > { %v490_v41 = vmul.f32 0.35355338, %v484_v40  ;;  %v368_v40 = vld [vmem:[#allocation3] sm:$0xff] }
 0x2c4   : > { %v1091_v42 = vpop.f32.mrf.mxu1 }
 0x2c5   : > { %v493_v43 = vsel %vm352_vm3, %v490_v41, -inf }
 0x2c6   : > { %494 = vmax.xlane.f32.xlu1 %v493_v43  ;;  %v487_v44 = vpop.f32.mrf.mxu1 }
 0x2c8   : > { %v1092_v45 = vpop.f32.mrf.mxu1 }
 0x2ca   : > { %v629_v46 = vpop.f32.mrf.mxu1 }
 0x2cb   : > { %v635_v47 = vmul.f32 0.35355338, %v629_v46  ;;  %v654_v46 = vld [vmem:[#allocation3 + $0x10] sm:$0xff] }
 0x2cc   : > { %v1103_v48 = vpop.f32.mrf.mxu1 }
 0x2cd   : > { %v638_v49 = vsel %vm352_vm3, %v635_v47, -inf }
 0x2ce   : > { %639 = vmax.xlane.f32.xlu0 %v638_v49  ;;  %v632_v50 = vpop.f32.mrf.mxu1 }
 0x2d0   : > { %v1104_v51 = vpop.f32.mrf.mxu1 }
 0x2d1   : > { %v799_v51 = vld [vmem:[#allocation3 + $0x18] sm:$0xff] }
 0x2d2   : > { %v774_v52 = vpop.f32.mrf.mxu1 }
 0x2d3   : > { %v780_v53 = vmul.f32 0.35355338, %v774_v52 }
 0x2d4   : > { %v1115_v54 = vpop.f32.mrf.mxu1 }
 0x2d5   : > { %v783_v55 = vsel %vm352_vm3, %v780_v53, -inf }
 0x2d6   : > { %784 = vmax.xlane.f32.xlu1 %v783_v55  ;;  %v777_v56 = vpop.f32.mrf.mxu1 }
 0x2d7   : > { %v376_v56 = vld [vmem:[#allocation4] sm:$0xff] }
 0x2d8   : > { %v1116_v57 = vpop.f32.mrf.mxu1 }
 0x34f   : > { %v495_v59 = vpop.xlane.xlu1 %494 }
 0x350   : > { %v496_v60 = vmax.f32 %v492_v58, %v495_v59 }
 0x352   : > { %v497_v61 = vsub.f32 %v492_v58, %v496_v60  ;;  %574 = vst.msk [vmem:[#allocation2 + $0x8] sm:$0xff] %vm281_vm2, %v496_v60  ;;  %502 = vperm.xlu1 %1158, %v496_v60  }
 0x354   : > { %v498_v26 = vmul.f32 1.442695, %v497_v61 }
 0x357   : > { %v640_v63 = vpop.xlane.xlu0 %639 }
 0x358   : > { %v641_v1 = vmax.f32 %v637_v62, %v640_v63  ;;  %v517_v63 = vld [vmem:[#allocation4 + $0x8] sm:$0xff] }
 0x35a   : > { %v642_v2 = vsub.f32 %v637_v62, %v641_v1  ;;  %719 = vst.msk [vmem:[#allocation2 + $0x10] sm:$0xff] %vm281_vm2, %v641_v1  ;;  %647 = vperm.xlu0 %1157, %v641_v1  }
 0x35c   : > { %v643_v37 = vmul.f32 1.442695, %v642_v2 }
 0x35f   : > { %v785_v4 = vpop.xlane.xlu1 %784 }
 0x360   : > { %v786_v5 = vmax.f32 %v782_v3, %v785_v4 }
 0x362   : > { %v787_v6 = vsub.f32 %v782_v3, %v786_v5  ;;  %864 = vst.msk [vmem:[#allocation2 + $0x18] sm:$0xff] %vm281_vm2, %v786_v5  ;;  %792 = vperm.xlu1 %1158, %v786_v5  }
 0x364   : > { %v788_v30 = vmul.f32 1.442695, %v787_v6  ;;  %v662_v6 = vld [vmem:[#allocation4 + $0x10] sm:$0xff] }
 0x366   : > { %526 = vrot.lane.b32.xlu1 %v1322_v21, %s1211_s24 }
 0x36a   : > { %671 = vrot.lane.b32.xlu1 %v1322_v21, %s1212_s25 }
 0x36e   : > { %816 = vrot.lane.b32.xlu1 %v1322_v21, %s1213_s26 }
 0x392   : > { %371 = vadd.xlane.f32.xlu1 %v370_v7 }
 0x3cd   : > { %v503_v8 = vpop.permute.xlu1 %502 }
 0x3ce   : > { %v505_v9 = vsub.f32 %v490_v41, %v503_v8 }
 0x3d0   : > { %v506_v10 = vmul.f32 1.442695, %v505_v9 }
 0x3d2   : > { %1161 = vpow2.f32 %v506_v10 }
 0x3d5   : > { %v648_v11 = vpop.permute.xlu0 %647 }
 0x3d6   : > { %v650_v12 = vsub.f32 %v635_v47, %v648_v11 }
 0x3d8   : > { %v651_v13 = vmul.f32 1.442695, %v650_v12 }
 0x3da   : > { %1163 = vpow2.f32 %v651_v13 }
 0x3dd   : > { %v793_v14 = vpop.permute.xlu1 %792 }
 0x3de   : > { %v795_v16 = vsub.f32 %v780_v53, %v793_v14 }
 0x3df   : > { %v1162_v19 = vpop.eup %1161 }
 0x3e0   : > { %v796_v20 = vmul.f32 1.442695, %v795_v16  ;;  %v511_v22 = vsel %vm352_vm3, %v1162_v19, 0.0  ;;  %v524_v23 = vpack.c.bf16 %v1162_v19, %v1162_v19  ;;  %v807_v19 = vld [vmem:[#allocation4 + $0x18] sm:$0xff] }
 0x3e1   : > { %512 = vadd.xlane.f32.xlu0 %v511_v22  ;;  %v527_v21 = vpop.permute.xlu1 %526 }
 0x3e2   : > { %1165 = vpow2.f32 %v796_v20  ;;  %1094 = vmatpush3.bf16.msra.mxu0 %v527_v21 }
 0x3e3   : > { %1105 = vmatprep.subr.bf16.mxu0 %v1207_v0  ;;  %1167 = vpow2.f32 %v498_v26 }
 0x3e4   : > { %1169 = vpow2.f32 %v788_v30 }
 0x3e5   : > { %1096 = vmatmul.mubr.msk.bf16.vlgmr.msra.gmra.mxu0 %vm352_vm3, %v524_v23  ;;  %v672_v24 = vpop.permute.xlu1 %671  ;;  %1171 = vpow2.f32 %v358_v34 }
 0x3e6   : > { %1106 = vmatpush3.bf16.msra.mxu0 %v672_v24  ;;  %1107 = vmatprep.mubr.msk.bf16.mxu0 %vm1208_vm1, %v1207_v0  ;;  %1173 = vpow2.f32 %v643_v37 }
 0x3e7   : > { %v1164_v25 = vpop.eup %1163  ;;  %1117 = vmatprep.subr.bf16.mxu0 %v1207_v0 }
 0x3e8   : > { %v656_v27 = vsel %vm352_vm3, %v1164_v25, 0.0  ;;  %v669_v28 = vpack.c.bf16 %v1164_v25, %v1164_v25 }
 0x3e9   : > { %657 = vadd.xlane.f32.xlu1 %v656_v27  ;;  %v817_v29 = vpop.permute.xlu1 %816 }
 0x3ed   : > { %1108 = vmatmul.mubr.msk.bf16.vlgmr.msra.gmra.mxu0 %vm352_vm3, %v669_v28 }
 0x3ee   : > { %1118 = vmatpush3.bf16.msra.mxu0 %v817_v29  ;;  %1119 = vmatprep.mubr.msk.bf16.mxu0 %vm1208_vm1, %v1207_v0 }
 0x3ef   : > { %v1166_v31 = vpop.eup %1165 }
 0x3f0   : > { %v801_v32 = vsel %vm352_vm3, %v1166_v31, 0.0  ;;  %v814_v33 = vpack.c.bf16 %v1166_v31, %v1166_v31  ;;  %v1168_v35 = vpop.eup %1167 }
 0x3f1   : > { %802 = vadd.xlane.f32.xlu0 %v801_v32  ;;  %v1170_v38 = vpop.eup %1169  ;;  %v510_v18 = vmul.f32 %v1168_v35, %v509_v17 }
 0x3f2   : > { %v1172_v0 = vpop.eup %1171  ;;  %v800_v52 = vmul.f32 %v1170_v38, %v799_v51 }
 0x3f3   : > { %v1174_v39 = vpop.eup %1173  ;;  %v369_v41 = vmul.f32 %v1172_v0, %v368_v40 }
 0x3f4   : > { %v655_v47 = vmul.f32 %v1174_v39, %v654_v46 }
 0x3f5   : > { %1120 = vmatmul.mubr.msk.bf16.vlgmr.msra.gmra.mxu0 %vm352_vm3, %v814_v33 }
 0x3fa   : > { %520 = vperm.xlu1 %1158, %v1168_v35  }
 0x3fe   : > { %810 = vperm.xlu1 %1158, %v1170_v38  }
 0x407   : > { %379 = vperm.xlu0 %1157, %v1172_v0  }
 0x40b   : > { %665 = vperm.xlu0 %1157, %v1174_v39  }
 0x41b   : > { %v372_v42 = vpop.xlane.xlu1 %371 }
 0x41c   : > { %v373_v43 = vadd.f32 %v372_v42, %v369_v41 }
 0x41e   : > { %375 = vst.msk [vmem:[#allocation3] sm:$0xff] %vm281_vm2, %v373_v43 }
 0x425   : > { %v869_v15 = vld [vmem:[#allocation3] sm:$0xff] }
 0x426   : > { %872 = vperm.xlu1 %1158, %v869_v15  }
 0x46a   : > { %v513_v44 = vpop.xlane.xlu0 %512 }
 0x46b   : > { %v514_v45 = vadd.f32 %v513_v44, %v510_v18 }
 0x46d   : > { %515 = vst.msk [vmem:[#allocation3 + $0x8] sm:$0xff] %vm281_vm2, %v514_v45 }
 0x472   : > { %v658_v48 = vpop.xlane.xlu1 %657 }
 0x473   : > { %v659_v49 = vadd.f32 %v658_v48, %v655_v47 }
 0x474   : > { %v879_v50 = vld [vmem:[#allocation3 + $0x8] sm:$0xff] }
 0x475   : > { %660 = vst.msk [vmem:[#allocation3 + $0x10] sm:$0xff] %vm281_vm2, %v659_v49  ;;  %882 = vperm.xlu0 %1157, %v879_v50  }
 0x476   : > { %v521_v61 = vpop.permute.xlu1 %520 }
 0x477   : > { %v523_v2 = vmul.f32 %v521_v61, %v517_v63 }
 0x47a   : > { %v803_v53 = vpop.xlane.xlu0 %802  ;;  %v811_v62 = vpop.permute.xlu1 %810 }
 0x47b   : > { %v804_v54 = vadd.f32 %v803_v53, %v800_v52  ;;  %v813_v21 = vmul.f32 %v811_v62, %v807_v19 }
 0x47c   : > { %v894_v55 = vld [vmem:[#allocation3 + $0x10] sm:$0xff] }
 0x47d   : > { %805 = vst.msk [vmem:[#allocation3 + $0x18] sm:$0xff] %vm281_vm2, %v804_v54  ;;  %897 = vperm.xlu0 %1157, %v894_v55  }
 0x482   : > { %v380_v57 = vpop.permute.xlu0 %379 }
 0x483   : > { %v382_v58 = vmul.f32 %v380_v57, %v376_v56 }
 0x484   : > { %v909_v59 = vld [vmem:[#allocation3 + $0x18] sm:$0xff] }
 0x485   : > { %v427_v60 = vadd.f32 %v1345_v36, %v382_v58  ;;  %912 = vperm.xlu1 %1158, %v909_v59  }
 0x486   : > { %v666_v7 = vpop.permute.xlu0 %665 }
 0x487   : > { %428 = vst.msk [vmem:[#allocation4] sm:$0xff] %vm290_vm0, %v427_v60  ;;  %v668_v36 = vmul.f32 %v666_v7, %v662_v6 }
 0x48e   : > { %v868_v14 = vld [vmem:[#allocation4] sm:$0xff] }
 0x4a1   : > { %v873_v1 = vpop.permute.xlu1 %872 }
 0x4a2   : > { %1175 = vrcp.f32 %v873_v1 }
 0x4a5   : > { %v566_v3 = vpop.f32.mrf.mxu0 }
 0x4a6   : > { %v572_v4 = vadd.f32 %v566_v3, %v523_v2 }
 0x4a7   : > { %v1097_v5 = vpop.f32.mrf.mxu0 }
 0x4a8   : > { %573 = vst.msk [vmem:[#allocation4 + $0x8] sm:$0xff] %vm290_vm0, %v572_v4 }
 0x4a9   : > { %v569_v8 = vpop.f32.mrf.mxu0 }
 0x4ab   : > { %v1098_v9 = vpop.f32.mrf.mxu0 }
 0x4ad   : > { %v711_v10 = vpop.f32.mrf.mxu0 }
 0x4ae   : > { %v717_v11 = vadd.f32 %v711_v10, %v668_v36 }
 0x4af   : > { %v1176_v12 = vpop.eup %1175  ;;  %v1109_v13 = vpop.f32.mrf.mxu0  ;;  %v878_v31 = vld [vmem:[#allocation4 + $0x8] sm:$0xff] }
 0x4b0   : > { %718 = vst.msk [vmem:[#allocation4 + $0x10] sm:$0xff] %vm290_vm0, %v717_v11  ;;  %v876_v16 = vmul.f32 %v1176_v12, %v868_v14 }
 0x4b1   : > { %v714_v20 = vpop.f32.mrf.mxu0 }
 0x4b2   : > { %877 = vst.msk [vmem:[%s1388_s5] sm:$0xff] %vm290_vm0, %v876_v16 }
 0x4b3   : > { %v1110_v22 = vpop.f32.mrf.mxu0 }
 0x4b5   : > { %v856_v23 = vpop.f32.mrf.mxu0 }
 0x4b6   : > { %v862_v24 = vadd.f32 %v856_v23, %v813_v21 }
 0x4b7   : > { %v1121_v25 = vpop.f32.mrf.mxu0  ;;  %v893_v35 = vld [vmem:[#allocation4 + $0x10] sm:$0xff] }
 0x4b8   : > { %863 = vst.msk [vmem:[#allocation4 + $0x18] sm:$0xff] %vm290_vm0, %v862_v24 }
 0x4b9   : > { %v859_v26 = vpop.f32.mrf.mxu0 }
 0x4bb   : > { %v1122_v27 = vpop.f32.mrf.mxu0 }
 0x4bf   : > { %v908_v0 = vld [vmem:[#allocation4 + $0x18] sm:$0xff] }
 0x4f0   : > { %v883_v28 = vpop.permute.xlu0 %882 }
 0x4f1   : > { %1177 = vrcp.f32 %v883_v28 }
 0x4f8   : > { %v898_v29 = vpop.permute.xlu0 %897 }
 0x4f9   : > { %1179 = vrcp.f32 %v898_v29 }
 0x4fe   : > { %v1178_v30 = vpop.eup %1177 }
 0x4ff   : > { %v886_v32 = vmul.f32 %v1178_v30, %v878_v31 }
 0x500   : > { %v913_v33 = vpop.permute.xlu1 %912 }
 0x501   : > { %1181 = vrcp.f32 %v913_v33  ;;  %888 = vrot.lane.b32.xlu1 %v886_v32, %s1214_s6 }
 0x506   : > { %v1180_v34 = vpop.eup %1179 }
 0x507   : > { %v901_v37 = vmul.f32 %v1180_v34, %v893_v35 }
 0x509   : > { %903 = vrot.lane.b32.xlu0 %v901_v37, %s1215_s7 }
 0x50e   : > { %v1182_v38 = vpop.eup %1181 }
 0x50f   : > { %v916_v39 = vmul.f32 %v1182_v38, %v908_v0 }
 0x511   : > { %918 = vrot.lane.b32.xlu1 %v916_v39, %s1216_s8 }
 0x573   : > { %v889_v40 = vpop.permute.xlu1 %888 }
 0x574   : > { %892 = vst.msk [vmem:[%s1388_s5] sm:$0xff] %vm891_vm4, %v889_v40 }
 0x57b   : > { %v904_v41 = vpop.permute.xlu0 %903 }
 0x57c   : > { %907 = vst.msk [vmem:[%s1388_s5] sm:$0xff] %vm906_vm5, %v904_v41 }
 0x583   : > { %v919_v42 = vpop.permute.xlu1 %918 }
 0x584   : > { %922 = vst.msk [vmem:[%s1388_s5] sm:$0xff] %vm921_vm6, %v919_v42 }
 0x585 PF: > { %s13_s14 = sadd.s32 1, %s1205_s14   ;;  %s1410_s12 = smov %s1201_s13 }
 0x586   : > { %p10_p5 = scmp.ge.s32.totalorder %s13_s14, 4   ;;  %s1411_s13 = smov %s1413_s15 }
 0x588   :  { %12 = sbr.rel (!%p10_p5) target bundleno = 2 (0x2), region = 85 }

// kernel: decoder_forward.35
= control target key start
LH: loop header
LB: loop body
LE: loop exit
PB: predicated region body
PF: predicated region fallthrough
CT: control target
= control target key end

     0   :  { %s664_s21 = smov 0   ;;  %s666_s22 = smov 0   ;;  %s733_s0 = inlined_call_operand.vmem [shape: f32[16,64], index: 0, kind: input, shape index: {}]   ;;  %s734_s1 = inlined_call_operand.vmem [shape: bf16[64,32], index: 1, kind: input, shape index: {}]   ;;  %s735_s2 = inlined_call_operand.vmem [shape: f32[1,32], index: 2, kind: input, shape index: {}]   ;;  %s736_s3 = inlined_call_operand.vmem [shape: f32[16,32], index: 3, kind: input, shape index: {}, may-alias: {3,6}]   ;;  %s737_s4 = inlined_call_operand.vmem [shape: f32[1,32], index: 4, kind: input, shape index: {}]   ;;  %s738_s5 = inlined_call_operand.vmem [shape: f32[1,32], index: 5, kind: input, shape index: {}]   ;;  %s739_s6 = inlined_call_operand.vmem [shape: f32[16,32], index: 6, kind: output, shape index: {}, may-alias: {3,6}]  }
   0x1   :  { %s668_s23 = smov 0  }
   0x2 LB: > { %s28_s24 = sadd.s32 1, %s621_s22  ;;  %p540_p0 = scmp.ge.s32.totalorder %s625_s23, 1  ;;  %s625_s23 = sphi %s668_s23, %s16_s23   ;;  %s621_s22 = sphi %s666_s22, %s741_s22   ;;  %s617_s21 = sphi %s664_s21, %s740_s21  }
   0x3   : > { %p30_p1 = scmp.ge.s32.totalorder %s28_s24, 2  ;;  %p248_p2 = scmp.lt.s32.totalorder %s625_s23, 3 }
   0x5   : > { %s743_s24 = smov (%p30_p1, %s28_s24), 0  ;;  %p249_p3 = pnand %p540_p0, %p248_p2 }
   0x6   : > { %p288_p4 = scmp.lt.s32.totalorder (!%p249_p3), %s617_s21, 1 }
   0x7   : > { %252 = sbr.rel (%p249_p3) target bundleno = 545 (0x221), region = 44 }
   0xc   : > { %v597_v0 = vld [vmem:[%s734_s1 + $0x18] sm:$0xff]   ;;  %v627_v1 = vmov 0.0   ;;  %v598_v2 = vld [vmem:[%s734_s1 + $0x10] sm:$0xff]   ;;  %vm628_vm0 = vmmov 0   ;;  %s745_s21 = smov (!%p288_p4, %s617_s21), 1  ;;  %vm314_vm1 = vcmask 261120  }
   0xd   : > { %559 = vmatprep.subr.bf16.mxu0 %v627_v1  ;;  %567 = vmatprep.mubr.msk.bf16.mxu0 %vm628_vm0, %v627_v1  ;;  %v599_v3 = vld [vmem:[%s734_s1 + $0x8] sm:$0xff]   ;;  %s541_s7 = sshll.u32 %s745_s21, 3  ;;  %v600_v4 = vld [vmem:[%s734_s1] sm:$0xff]   ;;  %vm351_vm2 = vcmask 523264  }
   0xe   : > { %560 = vmatpush3.bf16.msra.mxu0 %v597_v0  ;;  %s294_s10 = scalar_lea.vmem %s733_s0, %s541_s7  ;;  %s697_s13 = scalar_lea.vmem %s739_s6, %s541_s7  ;;  %v549_v13 = vld [vmem:[%s735_s2] ss:$0 sm:$0xff] }
   0xf   : > { %561 = vmatprep.subr.bf16.mxu0 %v627_v1  ;;  %315 = vst.msk [vmem:[%s697_s13] sm:$0xff] %vm314_vm1, %v627_v1  ;;  %v317_v5 = vld [vmem:[%s294_s10] sm:$0xff]  ;;  %s304_s20 = scalar_lea.vmem %s736_s3, %s541_s7 }
  0x10   : > { %v318_v6 = vpack.c.bf16 %v317_v5, %v317_v5  ;;  %v550_v28 = vld [vmem:[%s737_s4] ss:$0 sm:$0xff] }
  0x11   : > { %v551_v30 = vld [vmem:[%s738_s5] ss:$0 sm:$0xff] }
  0x12   : > { %562 = vmatpush3.bf16.msra.mxu0 %v598_v2 }
  0x13   : > { %563 = vmatprep.subr.bf16.mxu0 %v627_v1 }
  0x16   : > { %564 = vmatpush3.bf16.msra.mxu0 %v599_v3  ;;  %v316_v7 = vld [vmem:[%s697_s13] sm:$0xff] }
  0x17   : > { %565 = vmatprep.subr.bf16.mxu0 %v627_v1 }
  0x1a   : > { %566 = vmatpush3.bf16.msra.mxu0 %v600_v4 }
  0x1d   : > { %568 = vmatmul.mubr.msk.bf16.vlgmr.msra.gmra.mxu0 %vm351_vm2, %v318_v6 }
  0xdd   : > { %v389_v8 = vpop.f32.mrf.mxu0 }
  0xde   : > { %v395_v9 = vadd.f32 %v389_v8, %v316_v7 }
  0xdf   : > { %v569_v10 = vpop.f32.mrf.mxu0 }
  0xe0   : > { %397 = vst.msk [vmem:[%s697_s13] sm:$0xff] %vm314_vm1, %v395_v9 }
  0xe1   : > { %v392_v11 = vpop.f32.mrf.mxu0 }
  0xe3   : > { %v570_v12 = vpop.f32.mrf.mxu0 }
  0xe7   : > { %v401_v14 = vld [vmem:[%s697_s13] sm:$0xff] }
  0xe8   : > { %v409_v15 = vadd.f32 %v549_v13, %v401_v14  ;;  %v410_v16 = vld [vmem:[%s304_s20] sm:$0xff] }
  0xea   : > { %v411_v17 = vadd.f32 %v410_v16, %v409_v15 }
  0xec   : > { %v412_v18 = vsel %vm314_vm1, %v411_v17, 0.0 }
  0xed   : > { %413 = vadd.xlane.f32.xlu0 %v412_v18 }
 0x176   : > { %v414_v19 = vpop.xlane.xlu0 %413 }
 0x177   : > { %v416_v20 = vmul.f32 0.03125, %v414_v19 }
 0x179   : > { %v417_v21 = vsub.f32 %v411_v17, %v416_v20 }
 0x17b   : > { %v418_v22 = vmul.f32 %v417_v21, %v417_v21 }
 0x17d   : > { %v419_v23 = vsel %vm314_vm1, %v418_v22, 0.0 }
 0x17e   : > { %420 = vadd.xlane.f32.xlu0 %v419_v23 }
 0x207   : > { %v421_v24 = vpop.xlane.xlu0 %420 }
 0x208   : > { %v422_v25 = vmul.f32 0.03125, %v421_v24 }
 0x20a   : > { %v423_v26 = vadd.f32 1e-05, %v422_v25 }
 0x20c   : > { %601 = vrsqrt.f32 %v423_v26 }
 0x219   : > { %v602_v27 = vpop.eup %601 }
 0x21a   : > { %v425_v29 = vmul.f32 %v602_v27, %v417_v21 }
 0x21c   : > { %v433_v31 = vmul.f32 %v550_v28, %v425_v29 }
 0x21e   : > { %v441_v32 = vadd.f32 %v551_v30, %v433_v31 }
 0x220   : > { %442 = vst.msk [vmem:[%s697_s13] sm:$0xff] %vm314_vm1, %v441_v32 }
 0x221 PF: > { %s16_s23 = sadd.s32 1, %s625_s23   ;;  %s740_s21 = smov %s621_s22 }
 0x222   : > { %p13_p5 = scmp.ge.s32.totalorder %s16_s23, 4   ;;  %s741_s22 = smov %s743_s24 }
 0x224   :  { %15 = sbr.rel (!%p13_p5) target bundleno = 2 (0x2), region = 88 }

</bundles_post_ra>
